<compile_context>
chip_gen: v7x
topology: tpu7x:2x2x1
jax: 0.10.0
libtpu: 0.0.40
codegen_flags: <defaults>
</compile_context>

<pallas_src>
import functools
import math

import jax
import jax.numpy as jnp
from jax.experimental import pallas as pl
from jax.experimental.pallas import tpu as pltpu


def _layernorm(v, g, b, eps=1e-5):
    mu = jnp.mean(v, axis=-1, keepdims=True)
    var = jnp.mean((v - mu) ** 2, axis=-1, keepdims=True)
    return (v - mu) * jax.lax.rsqrt(var + eps) * g + b


def _gelu_exact(x):
    # nn.GELU() default = exact erf formulation.
    # TODO(synk): a tanh-approx GELU would move this onto the EUP (helps v5e's
    # VALU budget) but no longer bit-matches PyTorch's erf GELU; keep exact.
    return 0.5 * x * (1.0 + jax.lax.erf(x * jnp.float32(1.0 / math.sqrt(2.0))))


def block_kernel(xq_ref, xkv_ref, ln1g_ref, ln1b_ref,
                 wq_ref, wk_ref, wv_ref, wp_ref, bp_ref,
                 ln2g_ref, ln2b_ref, w1_ref, b1_ref, w2_ref, b2_ref,
                 o_ref, k_sc, v_sc, *, num_heads):
    tq_idx = pl.program_id(1)
    ln1g = ln1g_ref[0]
    ln1b = ln1b_ref[0]

    # ---- K/V for the whole sequence: computed once per batch row and kept
    # resident in VMEM scratch across the query-tile axis. ----
    @pl.when(tq_idx == 0)
    def _():
        hk = _layernorm(xkv_ref[0], ln1g, ln1b).astype(jnp.bfloat16)        # (S, D)
        for hh in range(num_heads):   # static major-axis weight views, no lane slicing
            k_sc[hh] = jnp.dot(hk, wk_ref[hh],
                               preferred_element_type=jnp.float32).astype(jnp.bfloat16)
            v_sc[hh] = jnp.dot(hk, wv_ref[hh],
                               preferred_element_type=jnp.float32).astype(jnp.bfloat16)

    # ---- attention branch (this query tile) ----
    x = xq_ref[0]                                                            # (TQ, D) f32
    h = _layernorm(x, ln1g, ln1b).astype(jnp.bfloat16)
    # Per-head Q directly as (H, TQ, hd); 1/sqrt(hd) is folded into wq host-side.
    q = jnp.stack(
        [jnp.dot(h, wq_ref[hh],
                 preferred_element_type=jnp.float32).astype(jnp.bfloat16)
         for hh in range(num_heads)], axis=0)                               # (H, TQ, hd)

    s = jnp.einsum("hqd,hkd->hqk", q, k_sc[...],
                   preferred_element_type=jnp.float32)                      # (H, TQ, S)
    s = s - jnp.max(s, axis=-1, keepdims=True)
    p = jnp.exp(s)
    l = jnp.sum(p, axis=-1, keepdims=True)                                  # (H, TQ, 1)
    ctx = jnp.einsum("hqk,hkd->hqd", p.astype(jnp.bfloat16), v_sc[...],
                     preferred_element_type=jnp.float32)                    # (H, TQ, hd)
    # Flash-style: normalize after the PV matmul (small (H,TQ,hd) multiply).
    ctx = ctx * pl.reciprocal(l, approx=True)

    # Head merge folded into the output projection: batched per-head
    # (TQ,hd)x(hd,D) accumulated over heads -- no lane-concat of head outputs.
    proj = jnp.einsum("hqd,hdo->hqo", ctx.astype(jnp.bfloat16), wp_ref[...],
                      preferred_element_type=jnp.float32)                   # (H, TQ, D)
    attn = jnp.sum(proj, axis=0) + bp_ref[0]
    y = attn + x                                                            # residual 1 (exact f32)

    # ---- MLP branch ----
    h2 = _layernorm(y, ln2g_ref[0], ln2b_ref[0])
    m = jnp.dot(h2.astype(jnp.bfloat16), w1_ref[...],
                preferred_element_type=jnp.float32) + b1_ref[0]
    m = _gelu_exact(m)
    m = jnp.dot(m.astype(jnp.bfloat16), w2_ref[...],
                preferred_element_type=jnp.float32) + b2_ref[0]

    o_ref[0] = (m + y).astype(o_ref.dtype)                                  # residual 2


def _choose_tq(S):
    if S <= 128:
        return S
    for tq in (128, 64, 32, 16, 8):
        if S % tq == 0:
            return tq
    # TODO(synk): for ragged S (e.g. ViT's 197) pad S to a multiple of 8 on the
    # host and mask padded keys in the softmax; until then use a single tile.
    return S


def _vmem_limit_bytes():
    # Generation-aware limit: ~3/4 of physical VMEM (v7x: 64 MiB -> ~48 MiB,
    # v5e/v6e: 128 MiB -> ~96 MiB).
    try:
        cap = int(pltpu.get_tpu_info().vmem_capacity_bytes)
    except Exception:
        cap = 64 * 1024 * 1024
    return max(32 * 1024 * 1024, min(cap * 3 // 4, 112 * 1024 * 1024))


def vit_block(x, params, num_heads):
    B, S, D = x.shape
    H = num_heads
    assert D % H == 0
    hd = D // H
    E_D = params["w1"].shape[1]
    TQ = _choose_tq(S)
    n_tq = S // TQ

    # ---- host-side weight prep (free) ----
    # (D, 3D) -> (3, H, D, hd); fold the 1/sqrt(hd) attention scale into Wq.
    w_qkv = params["w_qkv"].reshape(D, 3, H, hd).transpose(1, 2, 0, 3)
    wq = (w_qkv[0] * jnp.float32(1.0 / math.sqrt(hd))).astype(jnp.bfloat16)  # (H, D, hd)
    wk = w_qkv[1].astype(jnp.bfloat16)
    wv = w_qkv[2].astype(jnp.bfloat16)
    # Output projection (D, D) -> (H, hd, D): head merge folds into this matmul.
    wp = params["w_proj"].reshape(H, hd, D).astype(jnp.bfloat16)
    w1 = params["w1"].astype(jnp.bfloat16)
    w2 = params["w2"].astype(jnp.bfloat16)

    def const_spec(arr, single_buffer):
        nd = arr.ndim

        def idx(b, t):
            return (0,) * nd

        if single_buffer:
            return pl.BlockSpec(arr.shape, idx, pipeline_mode=pl.Buffered(1))
        return pl.BlockSpec(arr.shape, idx)

    flops = 2 * B * S * (3 * D * D + D * D + 2 * S * D + 2 * D * E_D)
    transcendentals = B * (H * S * S + S * E_D)
    bytes_accessed = (
        3 * B * S * D * 4                                             # x (q + kv views) + out
        + (wq.size + wk.size + wv.size + wp.size + w1.size + w2.size) * 2
        + (params["b_proj"].size + params["b1"].size + params["b2"].size
           + params["ln1_g"].size + params["ln1_b"].size
           + params["ln2_g"].size + params["ln2_b"].size) * 4)

    def build(single_buffer_weights):
        in_specs = [
            pl.BlockSpec((1, TQ, D), lambda b, t: (b, t, 0)),          # x (query tile)
            pl.BlockSpec((1, S, D), lambda b, t: (b, 0, 0)),           # x (full seq for K/V)
            const_spec(params["ln1_g"], single_buffer_weights),
            const_spec(params["ln1_b"], single_buffer_weights),
            const_spec(wq, single_buffer_weights),
            const_spec(wk, single_buffer_weights),
            const_spec(wv, single_buffer_weights),
            const_spec(wp, single_buffer_weights),
            const_spec(params["b_proj"], single_buffer_weights),
            const_spec(params["ln2_g"], single_buffer_weights),
            const_spec(params["ln2_b"], single_buffer_weights),
            const_spec(w1, single_buffer_weights),
            const_spec(params["b1"], single_buffer_weights),
            const_spec(w2, single_buffer_weights),
            const_spec(params["b2"], single_buffer_weights),
        ]
        out_spec = pl.BlockSpec((1, TQ, D), lambda b, t: (b, t, 0))

        return pl.pallas_call(
            functools.partial(block_kernel, num_heads=num_heads),
            out_shape=jax.ShapeDtypeStruct((B, S, D), x.dtype),
            grid_spec=pltpu.PrefetchScalarGridSpec(
                num_scalar_prefetch=0,
                grid=(B, n_tq),
                in_specs=in_specs,
                out_specs=out_spec,
                scratch_shapes=[
                    pltpu.VMEM((H, S, hd), jnp.bfloat16),   # K (resident per batch row)
                    pltpu.VMEM((H, S, hd), jnp.bfloat16),   # V
                ],
            ),
            compiler_params=pltpu.CompilerParams(
                dimension_semantics=("parallel", "arbitrary"),
                vmem_limit_bytes=_vmem_limit_bytes()),
            cost_estimate=pl.CostEstimate(
                flops=flops,
                transcendentals=transcendentals,
                bytes_accessed=bytes_accessed),
        )

    args = (x, x,
            params["ln1_g"], params["ln1_b"],
            wq, wk, wv, wp, params["b_proj"],
            params["ln2_g"], params["ln2_b"],
            w1, params["b1"], w2, params["b2"])
    try:
        return build(True)(*args)
    except Exception:
        # Fallback if this JAX build rejects single-buffered weight BlockSpecs.
        return build(False)(*args)


def reference_block(x, p, num_heads):
    # Pure-f32 reference matching the PyTorch module (eval mode, dropout = 0).
    B, S, D = x.shape
    hd = D // num_heads
    h = _layernorm(x, p["ln1_g"][0], p["ln1_b"][0])
    qkv = h @ p["w_qkv"]                                      # (B, S, 3D)
    qkv = qkv.reshape(B, S, 3, num_heads, hd).transpose(2, 0, 3, 1, 4)
    q, k, v = qkv[0], qkv[1], qkv[2]                          # (B, H, S, hd)
    att = (q @ jnp.swapaxes(k, -1, -2)) / math.sqrt(hd)
    att = jax.nn.softmax(att, axis=-1)
    o = (att @ v).transpose(0, 2, 1, 3).reshape(B, S, D)
    o = o @ p["w_proj"] + p["b_proj"][0]
    y = o + x
    h2 = _layernorm(y, p["ln2_g"][0], p["ln2_b"][0])
    m = _gelu_exact(h2 @ p["w1"] + p["b1"][0])
    m = m @ p["w2"] + p["b2"][0]
    return m + y


if __name__ == "__main__":
    B, S, D = 2, 8, 32
    num_heads = 4
    expansion = 2
    E_D = D * expansion

    key = jax.random.PRNGKey(0)
    ks = jax.random.split(key, 8)
    params = {
        "ln1_g": jnp.ones((1, D), jnp.float32),
        "ln1_b": jnp.zeros((1, D), jnp.float32),
        "w_qkv": 0.05 * jax.random.normal(ks[0], (D, 3 * D), jnp.float32),
        "w_proj": 0.05 * jax.random.normal(ks[1], (D, D), jnp.float32),
        "b_proj": 0.05 * jax.random.normal(ks[2], (1, D), jnp.float32),
        "ln2_g": jnp.ones((1, D), jnp.float32),
        "ln2_b": jnp.zeros((1, D), jnp.float32),
        "w1": 0.05 * jax.random.normal(ks[3], (D, E_D), jnp.float32),
        "b1": 0.05 * jax.random.normal(ks[4], (1, E_D), jnp.float32),
        "w2": 0.05 * jax.random.normal(ks[5], (E_D, D), jnp.float32),
        "b2": 0.05 * jax.random.normal(ks[6], (1, D), jnp.float32),
    }
    x = jax.random.normal(ks[7], (B, S, D), jnp.float32)

    out = vit_block(x, params, num_heads)
    out = jax.block_until_ready(out)

    ref = reference_block(x, params, num_heads)
    # bf16 MXU operands (f32 accumulate) + approx reciprocal vs the pure-f32
    # reference -> loosened tolerance; the residual path is carried exactly in f32.
    err = float(jnp.max(jnp.abs(out - ref)))
    assert jnp.allclose(out, ref, atol=2e-2, rtol=2e-2), f"mismatch vs reference (max abs err {err})"
    print("KERNEL_OK")
</pallas_src>

<mosaic_0001>
module attributes {stable_mosaic.version = 11 : i64} {
  func.func @block_kernel(%arg0: i32, %arg1: i32, %arg2: memref<1x8x32xf32, #tpu.memory_space<vmem>>, %arg3: memref<1x8x32xf32, #tpu.memory_space<vmem>>, %arg4: memref<1x32xf32, #tpu.memory_space<vmem>>, %arg5: memref<1x32xf32, #tpu.memory_space<vmem>>, %arg6: memref<4x32x8xbf16, #tpu.memory_space<vmem>>, %arg7: memref<4x32x8xbf16, #tpu.memory_space<vmem>>, %arg8: memref<4x32x8xbf16, #tpu.memory_space<vmem>>, %arg9: memref<4x8x32xbf16, #tpu.memory_space<vmem>>, %arg10: memref<1x32xf32, #tpu.memory_space<vmem>>, %arg11: memref<1x32xf32, #tpu.memory_space<vmem>>, %arg12: memref<1x32xf32, #tpu.memory_space<vmem>>, %arg13: memref<32x64xbf16, #tpu.memory_space<vmem>>, %arg14: memref<1x64xf32, #tpu.memory_space<vmem>>, %arg15: memref<64x32xbf16, #tpu.memory_space<vmem>>, %arg16: memref<1x32xf32, #tpu.memory_space<vmem>>, %arg17: memref<1x8x32xf32, #tpu.memory_space<vmem>>, %arg18: memref<4x8x8xbf16, #tpu.memory_space<vmem>>, %arg19: memref<4x8x8xbf16, #tpu.memory_space<vmem>>) attributes {dimension_semantics = [#tpu.dimension_semantics<parallel>, #tpu.dimension_semantics<arbitrary>], iteration_bounds = array<i64: 2, 1>, scalar_prefetch = 0 : i64, scratch_operands = 2 : i64, tpu.core_type = #tpu.core_type<tc>, window_params = [{transform_indices = @transform_0, window_bounds = array<i64: 1, 8, 32>}, {transform_indices = @transform_1, window_bounds = array<i64: 1, 8, 32>}, {pipeline_mode = #tpu.pipeline_mode<synchronous>, transform_indices = @transform_2, window_bounds = array<i64: 1, 32>}, {pipeline_mode = #tpu.pipeline_mode<synchronous>, transform_indices = @transform_3, window_bounds = array<i64: 1, 32>}, {pipeline_mode = #tpu.pipeline_mode<synchronous>, transform_indices = @transform_4, window_bounds = array<i64: 4, 32, 8>}, {pipeline_mode = #tpu.pipeline_mode<synchronous>, transform_indices = @transform_5, window_bounds = array<i64: 4, 32, 8>}, {pipeline_mode = #tpu.pipeline_mode<synchronous>, transform_indices = @transform_6, window_bounds = array<i64: 4, 32, 8>}, {pipeline_mode = #tpu.pipeline_mode<synchronous>, transform_indices = @transform_7, window_bounds = array<i64: 4, 8, 32>}, {pipeline_mode = #tpu.pipeline_mode<synchronous>, transform_indices = @transform_8, window_bounds = array<i64: 1, 32>}, {pipeline_mode = #tpu.pipeline_mode<synchronous>, transform_indices = @transform_9, window_bounds = array<i64: 1, 32>}, {pipeline_mode = #tpu.pipeline_mode<synchronous>, transform_indices = @transform_10, window_bounds = array<i64: 1, 32>}, {pipeline_mode = #tpu.pipeline_mode<synchronous>, transform_indices = @transform_11, window_bounds = array<i64: 32, 64>}, {pipeline_mode = #tpu.pipeline_mode<synchronous>, transform_indices = @transform_12, window_bounds = array<i64: 1, 64>}, {pipeline_mode = #tpu.pipeline_mode<synchronous>, transform_indices = @transform_13, window_bounds = array<i64: 64, 32>}, {pipeline_mode = #tpu.pipeline_mode<synchronous>, transform_indices = @transform_14, window_bounds = array<i64: 1, 32>}, {transform_indices = @transform_15, window_bounds = array<i64: 1, 8, 32>}]} {
    %c0 = arith.constant 0 : index
    %c0_0 = arith.constant 0 : index
    %0 = vector.load %arg4[%c0, %c0_0] : memref<1x32xf32, #tpu.memory_space<vmem>>, vector<1x32xf32>
    %1 = vector.shape_cast %0 : vector<1x32xf32> to vector<32xf32>
    %c0_1 = arith.constant 0 : index
    %c0_2 = arith.constant 0 : index
    %2 = vector.load %arg5[%c0_1, %c0_2] : memref<1x32xf32, #tpu.memory_space<vmem>>, vector<1x32xf32>
    %3 = vector.shape_cast %2 : vector<1x32xf32> to vector<32xf32>
    %c0_i32 = arith.constant 0 : i32
    %4 = arith.cmpi eq, %arg1, %c0_i32 : i32
    %5 = arith.extui %4 : i1 to i32
    %c0_i32_3 = arith.constant 0 : i32
    %6 = arith.cmpi ne, %5, %c0_i32_3 : i32
    scf.if %6 {
      %c0_66 = arith.constant 0 : index
      %c0_67 = arith.constant 0 : index
      %c0_68 = arith.constant 0 : index
      %136 = vector.load %arg3[%c0_66, %c0_67, %c0_68] : memref<1x8x32xf32, #tpu.memory_space<vmem>>, vector<1x8x32xf32>
      %137 = vector.shape_cast %136 : vector<1x8x32xf32> to vector<8x32xf32>
      %cst_69 = arith.constant dense<0.000000e+00> : vector<8xf32>
      %138 = vector.multi_reduction <add>, %137, %cst_69 [1] : vector<8x32xf32> to vector<8xf32>
      %139 = vector.shape_cast %138 : vector<8xf32> to vector<8x1xf32>
      %cst_70 = arith.constant 3.200000e+01 : f32
      %140 = vector.broadcast %cst_70 : f32 to vector<8x1xf32>
      %141 = arith.divf %139, %140 : vector<8x1xf32>
      %142 = vector.broadcast %141 : vector<8x1xf32> to vector<8x32xf32>
      %143 = arith.subf %137, %142 : vector<8x32xf32>
      %144 = arith.mulf %143, %143 : vector<8x32xf32>
      %cst_71 = arith.constant dense<0.000000e+00> : vector<8xf32>
      %145 = vector.multi_reduction <add>, %144, %cst_71 [1] : vector<8x32xf32> to vector<8xf32>
      %146 = vector.shape_cast %145 : vector<8xf32> to vector<8x1xf32>
      %cst_72 = arith.constant 3.200000e+01 : f32
      %147 = vector.broadcast %cst_72 : f32 to vector<8x1xf32>
      %148 = arith.divf %146, %147 : vector<8x1xf32>
      %149 = vector.broadcast %141 : vector<8x1xf32> to vector<8x32xf32>
      %150 = arith.subf %137, %149 : vector<8x32xf32>
      %cst_73 = arith.constant 9.99999974E-6 : f32
      %151 = vector.broadcast %cst_73 : f32 to vector<8x1xf32>
      %152 = arith.addf %148, %151 : vector<8x1xf32>
      %153 = math.rsqrt %152 : vector<8x1xf32>
      %154 = vector.broadcast %153 : vector<8x1xf32> to vector<8x32xf32>
      %155 = arith.mulf %150, %154 : vector<8x32xf32>
      %156 = vector.shape_cast %1 : vector<32xf32> to vector<1x32xf32>
      %157 = vector.broadcast %156 : vector<1x32xf32> to vector<8x32xf32>
      %158 = arith.mulf %155, %157 : vector<8x32xf32>
      %159 = vector.shape_cast %3 : vector<32xf32> to vector<1x32xf32>
      %160 = vector.broadcast %159 : vector<1x32xf32> to vector<8x32xf32>
      %161 = arith.addf %158, %160 : vector<8x32xf32>
      %162 = arith.truncf %161 : vector<8x32xf32> to vector<8x32xbf16>
      %c0_74 = arith.constant 0 : index
      %c0_75 = arith.constant 0 : index
      %c0_76 = arith.constant 0 : index
      %163 = vector.load %arg7[%c0_74, %c0_75, %c0_76] : memref<4x32x8xbf16, #tpu.memory_space<vmem>>, vector<1x32x8xbf16>
      %164 = vector.shape_cast %163 : vector<1x32x8xbf16> to vector<32x8xbf16>
      %cst_77 = arith.constant dense<0.000000e+00> : vector<8x8xf32>
      %165 = tpu.matmul %162, %164, %cst_77 {dimension_numbers = #tpu.dot_dimension_numbers<[1], [0], [0], [1], [0, 0, 1, 1], [], []>} : vector<8x32xbf16>, vector<32x8xbf16>, vector<8x8xf32> -> vector<8x8xf32>
      %166 = arith.truncf %165 : vector<8x8xf32> to vector<8x8xbf16>
      %c0_78 = arith.constant 0 : index
      %c0_79 = arith.constant 0 : index
      %c0_80 = arith.constant 0 : index
      %167 = vector.load %arg18[%c0_78, %c0_79, %c0_80] : memref<4x8x8xbf16, #tpu.memory_space<vmem>>, vector<1x8x8xbf16>
      %168 = vector.shape_cast %167 : vector<1x8x8xbf16> to vector<8x8xbf16>
      %169 = vector.shape_cast %166 : vector<8x8xbf16> to vector<1x8x8xbf16>
      tpu.vector_store %arg18[%c0_78, %c0_79, %c0_80], %169 {strides = array<i32>} : memref<4x8x8xbf16, #tpu.memory_space<vmem>>, vector<1x8x8xbf16>,
      %c0_81 = arith.constant 0 : index
      %c0_82 = arith.constant 0 : index
      %c0_83 = arith.constant 0 : index
      %170 = vector.load %arg8[%c0_81, %c0_82, %c0_83] : memref<4x32x8xbf16, #tpu.memory_space<vmem>>, vector<1x32x8xbf16>
      %171 = vector.shape_cast %170 : vector<1x32x8xbf16> to vector<32x8xbf16>
      %cst_84 = arith.constant dense<0.000000e+00> : vector<8x8xf32>
      %172 = tpu.matmul %162, %171, %cst_84 {dimension_numbers = #tpu.dot_dimension_numbers<[1], [0], [0], [1], [0, 0, 1, 1], [], []>} : vector<8x32xbf16>, vector<32x8xbf16>, vector<8x8xf32> -> vector<8x8xf32>
      %173 = arith.truncf %172 : vector<8x8xf32> to vector<8x8xbf16>
      %c0_85 = arith.constant 0 : index
      %c0_86 = arith.constant 0 : index
      %c0_87 = arith.constant 0 : index
      %174 = vector.load %arg19[%c0_85, %c0_86, %c0_87] : memref<4x8x8xbf16, #tpu.memory_space<vmem>>, vector<1x8x8xbf16>
      %175 = vector.shape_cast %174 : vector<1x8x8xbf16> to vector<8x8xbf16>
      %176 = vector.shape_cast %173 : vector<8x8xbf16> to vector<1x8x8xbf16>
      tpu.vector_store %arg19[%c0_85, %c0_86, %c0_87], %176 {strides = array<i32>} : memref<4x8x8xbf16, #tpu.memory_space<vmem>>, vector<1x8x8xbf16>,
      %c1_88 = arith.constant 1 : index
      %c0_89 = arith.constant 0 : index
      %c0_90 = arith.constant 0 : index
      %177 = vector.load %arg7[%c1_88, %c0_89, %c0_90] : memref<4x32x8xbf16, #tpu.memory_space<vmem>>, vector<1x32x8xbf16>
      %178 = vector.shape_cast %177 : vector<1x32x8xbf16> to vector<32x8xbf16>
      %cst_91 = arith.constant dense<0.000000e+00> : vector<8x8xf32>
      %179 = tpu.matmul %162, %178, %cst_91 {dimension_numbers = #tpu.dot_dimension_numbers<[1], [0], [0], [1], [0, 0, 1, 1], [], []>} : vector<8x32xbf16>, vector<32x8xbf16>, vector<8x8xf32> -> vector<8x8xf32>
      %180 = arith.truncf %179 : vector<8x8xf32> to vector<8x8xbf16>
      %c1_92 = arith.constant 1 : index
      %c0_93 = arith.constant 0 : index
      %c0_94 = arith.constant 0 : index
      %181 = vector.load %arg18[%c1_92, %c0_93, %c0_94] : memref<4x8x8xbf16, #tpu.memory_space<vmem>>, vector<1x8x8xbf16>
      %182 = vector.shape_cast %181 : vector<1x8x8xbf16> to vector<8x8xbf16>
      %183 = vector.shape_cast %180 : vector<8x8xbf16> to vector<1x8x8xbf16>
      tpu.vector_store %arg18[%c1_92, %c0_93, %c0_94], %183 {strides = array<i32>} : memref<4x8x8xbf16, #tpu.memory_space<vmem>>, vector<1x8x8xbf16>,
      %c1_95 = arith.constant 1 : index
      %c0_96 = arith.constant 0 : index
      %c0_97 = arith.constant 0 : index
      %184 = vector.load %arg8[%c1_95, %c0_96, %c0_97] : memref<4x32x8xbf16, #tpu.memory_space<vmem>>, vector<1x32x8xbf16>
      %185 = vector.shape_cast %184 : vector<1x32x8xbf16> to vector<32x8xbf16>
      %cst_98 = arith.constant dense<0.000000e+00> : vector<8x8xf32>
      %186 = tpu.matmul %162, %185, %cst_98 {dimension_numbers = #tpu.dot_dimension_numbers<[1], [0], [0], [1], [0, 0, 1, 1], [], []>} : vector<8x32xbf16>, vector<32x8xbf16>, vector<8x8xf32> -> vector<8x8xf32>
      %187 = arith.truncf %186 : vector<8x8xf32> to vector<8x8xbf16>
      %c1_99 = arith.constant 1 : index
      %c0_100 = arith.constant 0 : index
      %c0_101 = arith.constant 0 : index
      %188 = vector.load %arg19[%c1_99, %c0_100, %c0_101] : memref<4x8x8xbf16, #tpu.memory_space<vmem>>, vector<1x8x8xbf16>
      %189 = vector.shape_cast %188 : vector<1x8x8xbf16> to vector<8x8xbf16>
      %190 = vector.shape_cast %187 : vector<8x8xbf16> to vector<1x8x8xbf16>
      tpu.vector_store %arg19[%c1_99, %c0_100, %c0_101], %190 {strides = array<i32>} : memref<4x8x8xbf16, #tpu.memory_space<vmem>>, vector<1x8x8xbf16>,
      %c2_102 = arith.constant 2 : index
      %c0_103 = arith.constant 0 : index
      %c0_104 = arith.constant 0 : index
      %191 = vector.load %arg7[%c2_102, %c0_103, %c0_104] : memref<4x32x8xbf16, #tpu.memory_space<vmem>>, vector<1x32x8xbf16>
      %192 = vector.shape_cast %191 : vector<1x32x8xbf16> to vector<32x8xbf16>
      %cst_105 = arith.constant dense<0.000000e+00> : vector<8x8xf32>
      %193 = tpu.matmul %162, %192, %cst_105 {dimension_numbers = #tpu.dot_dimension_numbers<[1], [0], [0], [1], [0, 0, 1, 1], [], []>} : vector<8x32xbf16>, vector<32x8xbf16>, vector<8x8xf32> -> vector<8x8xf32>
      %194 = arith.truncf %193 : vector<8x8xf32> to vector<8x8xbf16>
      %c2_106 = arith.constant 2 : index
      %c0_107 = arith.constant 0 : index
      %c0_108 = arith.constant 0 : index
      %195 = vector.load %arg18[%c2_106, %c0_107, %c0_108] : memref<4x8x8xbf16, #tpu.memory_space<vmem>>, vector<1x8x8xbf16>
      %196 = vector.shape_cast %195 : vector<1x8x8xbf16> to vector<8x8xbf16>
      %197 = vector.shape_cast %194 : vector<8x8xbf16> to vector<1x8x8xbf16>
      tpu.vector_store %arg18[%c2_106, %c0_107, %c0_108], %197 {strides = array<i32>} : memref<4x8x8xbf16, #tpu.memory_space<vmem>>, vector<1x8x8xbf16>,
      %c2_109 = arith.constant 2 : index
      %c0_110 = arith.constant 0 : index
      %c0_111 = arith.constant 0 : index
      %198 = vector.load %arg8[%c2_109, %c0_110, %c0_111] : memref<4x32x8xbf16, #tpu.memory_space<vmem>>, vector<1x32x8xbf16>
      %199 = vector.shape_cast %198 : vector<1x32x8xbf16> to vector<32x8xbf16>
      %cst_112 = arith.constant dense<0.000000e+00> : vector<8x8xf32>
      %200 = tpu.matmul %162, %199, %cst_112 {dimension_numbers = #tpu.dot_dimension_numbers<[1], [0], [0], [1], [0, 0, 1, 1], [], []>} : vector<8x32xbf16>, vector<32x8xbf16>, vector<8x8xf32> -> vector<8x8xf32>
      %201 = arith.truncf %200 : vector<8x8xf32> to vector<8x8xbf16>
      %c2_113 = arith.constant 2 : index
      %c0_114 = arith.constant 0 : index
      %c0_115 = arith.constant 0 : index
      %202 = vector.load %arg19[%c2_113, %c0_114, %c0_115] : memref<4x8x8xbf16, #tpu.memory_space<vmem>>, vector<1x8x8xbf16>
      %203 = vector.shape_cast %202 : vector<1x8x8xbf16> to vector<8x8xbf16>
      %204 = vector.shape_cast %201 : vector<8x8xbf16> to vector<1x8x8xbf16>
      tpu.vector_store %arg19[%c2_113, %c0_114, %c0_115], %204 {strides = array<i32>} : memref<4x8x8xbf16, #tpu.memory_space<vmem>>, vector<1x8x8xbf16>,
      %c3_116 = arith.constant 3 : index
      %c0_117 = arith.constant 0 : index
      %c0_118 = arith.constant 0 : index
      %205 = vector.load %arg7[%c3_116, %c0_117, %c0_118] : memref<4x32x8xbf16, #tpu.memory_space<vmem>>, vector<1x32x8xbf16>
      %206 = vector.shape_cast %205 : vector<1x32x8xbf16> to vector<32x8xbf16>
      %cst_119 = arith.constant dense<0.000000e+00> : vector<8x8xf32>
      %207 = tpu.matmul %162, %206, %cst_119 {dimension_numbers = #tpu.dot_dimension_numbers<[1], [0], [0], [1], [0, 0, 1, 1], [], []>} : vector<8x32xbf16>, vector<32x8xbf16>, vector<8x8xf32> -> vector<8x8xf32>
      %208 = arith.truncf %207 : vector<8x8xf32> to vector<8x8xbf16>
      %c3_120 = arith.constant 3 : index
      %c0_121 = arith.constant 0 : index
      %c0_122 = arith.constant 0 : index
      %209 = vector.load %arg18[%c3_120, %c0_121, %c0_122] : memref<4x8x8xbf16, #tpu.memory_space<vmem>>, vector<1x8x8xbf16>
      %210 = vector.shape_cast %209 : vector<1x8x8xbf16> to vector<8x8xbf16>
      %211 = vector.shape_cast %208 : vector<8x8xbf16> to vector<1x8x8xbf16>
      tpu.vector_store %arg18[%c3_120, %c0_121, %c0_122], %211 {strides = array<i32>} : memref<4x8x8xbf16, #tpu.memory_space<vmem>>, vector<1x8x8xbf16>,
      %c3_123 = arith.constant 3 : index
      %c0_124 = arith.constant 0 : index
      %c0_125 = arith.constant 0 : index
      %212 = vector.load %arg8[%c3_123, %c0_124, %c0_125] : memref<4x32x8xbf16, #tpu.memory_space<vmem>>, vector<1x32x8xbf16>
      %213 = vector.shape_cast %212 : vector<1x32x8xbf16> to vector<32x8xbf16>
      %cst_126 = arith.constant dense<0.000000e+00> : vector<8x8xf32>
      %214 = tpu.matmul %162, %213, %cst_126 {dimension_numbers = #tpu.dot_dimension_numbers<[1], [0], [0], [1], [0, 0, 1, 1], [], []>} : vector<8x32xbf16>, vector<32x8xbf16>, vector<8x8xf32> -> vector<8x8xf32>
      %215 = arith.truncf %214 : vector<8x8xf32> to vector<8x8xbf16>
      %c3_127 = arith.constant 3 : index
      %c0_128 = arith.constant 0 : index
      %c0_129 = arith.constant 0 : index
      %216 = vector.load %arg19[%c3_127, %c0_128, %c0_129] : memref<4x8x8xbf16, #tpu.memory_space<vmem>>, vector<1x8x8xbf16>
      %217 = vector.shape_cast %216 : vector<1x8x8xbf16> to vector<8x8xbf16>
      %218 = vector.shape_cast %215 : vector<8x8xbf16> to vector<1x8x8xbf16>
      tpu.vector_store %arg19[%c3_127, %c0_128, %c0_129], %218 {strides = array<i32>} : memref<4x8x8xbf16, #tpu.memory_space<vmem>>, vector<1x8x8xbf16>,
    } else {
    }
    %c0_4 = arith.constant 0 : index
    %c0_5 = arith.constant 0 : index
    %c0_6 = arith.constant 0 : index
    %7 = vector.load %arg2[%c0_4, %c0_5, %c0_6] : memref<1x8x32xf32, #tpu.memory_space<vmem>>, vector<1x8x32xf32>
    %8 = vector.shape_cast %7 : vector<1x8x32xf32> to vector<8x32xf32>
    %cst = arith.constant dense<0.000000e+00> : vector<8xf32>
    %9 = vector.multi_reduction <add>, %8, %cst [1] : vector<8x32xf32> to vector<8xf32>
    %10 = vector.shape_cast %9 : vector<8xf32> to vector<8x1xf32>
    %cst_7 = arith.constant 3.200000e+01 : f32
    %11 = vector.broadcast %cst_7 : f32 to vector<8x1xf32>
    %12 = arith.divf %10, %11 : vector<8x1xf32>
    %13 = vector.broadcast %12 : vector<8x1xf32> to vector<8x32xf32>
    %14 = arith.subf %8, %13 : vector<8x32xf32>
    %15 = arith.mulf %14, %14 : vector<8x32xf32>
    %cst_8 = arith.constant dense<0.000000e+00> : vector<8xf32>
    %16 = vector.multi_reduction <add>, %15, %cst_8 [1] : vector<8x32xf32> to vector<8xf32>
    %17 = vector.shape_cast %16 : vector<8xf32> to vector<8x1xf32>
    %cst_9 = arith.constant 3.200000e+01 : f32
    %18 = vector.broadcast %cst_9 : f32 to vector<8x1xf32>
    %19 = arith.divf %17, %18 : vector<8x1xf32>
    %20 = vector.broadcast %12 : vector<8x1xf32> to vector<8x32xf32>
    %21 = arith.subf %8, %20 : vector<8x32xf32>
    %cst_10 = arith.constant 9.99999974E-6 : f32
    %22 = vector.broadcast %cst_10 : f32 to vector<8x1xf32>
    %23 = arith.addf %19, %22 : vector<8x1xf32>
    %24 = math.rsqrt %23 : vector<8x1xf32>
    %25 = vector.broadcast %24 : vector<8x1xf32> to vector<8x32xf32>
    %26 = arith.mulf %21, %25 : vector<8x32xf32>
    %27 = vector.shape_cast %1 : vector<32xf32> to vector<1x32xf32>
    %28 = vector.broadcast %27 : vector<1x32xf32> to vector<8x32xf32>
    %29 = arith.mulf %26, %28 : vector<8x32xf32>
    %30 = vector.shape_cast %3 : vector<32xf32> to vector<1x32xf32>
    %31 = vector.broadcast %30 : vector<1x32xf32> to vector<8x32xf32>
    %32 = arith.addf %29, %31 : vector<8x32xf32>
    %33 = arith.truncf %32 : vector<8x32xf32> to vector<8x32xbf16>
    %c0_11 = arith.constant 0 : index
    %c0_12 = arith.constant 0 : index
    %c0_13 = arith.constant 0 : index
    %34 = vector.load %arg6[%c0_11, %c0_12, %c0_13] : memref<4x32x8xbf16, #tpu.memory_space<vmem>>, vector<1x32x8xbf16>
    %35 = vector.shape_cast %34 : vector<1x32x8xbf16> to vector<32x8xbf16>
    %cst_14 = arith.constant dense<0.000000e+00> : vector<8x8xf32>
    %36 = tpu.matmul %33, %35, %cst_14 {dimension_numbers = #tpu.dot_dimension_numbers<[1], [0], [0], [1], [0, 0, 1, 1], [], []>} : vector<8x32xbf16>, vector<32x8xbf16>, vector<8x8xf32> -> vector<8x8xf32>
    %37 = arith.truncf %36 : vector<8x8xf32> to vector<8x8xbf16>
    %c1 = arith.constant 1 : index
    %c0_15 = arith.constant 0 : index
    %c0_16 = arith.constant 0 : index
    %38 = vector.load %arg6[%c1, %c0_15, %c0_16] : memref<4x32x8xbf16, #tpu.memory_space<vmem>>, vector<1x32x8xbf16>
    %39 = vector.shape_cast %38 : vector<1x32x8xbf16> to vector<32x8xbf16>
    %cst_17 = arith.constant dense<0.000000e+00> : vector<8x8xf32>
    %40 = tpu.matmul %33, %39, %cst_17 {dimension_numbers = #tpu.dot_dimension_numbers<[1], [0], [0], [1], [0, 0, 1, 1], [], []>} : vector<8x32xbf16>, vector<32x8xbf16>, vector<8x8xf32> -> vector<8x8xf32>
    %41 = arith.truncf %40 : vector<8x8xf32> to vector<8x8xbf16>
    %c2 = arith.constant 2 : index
    %c0_18 = arith.constant 0 : index
    %c0_19 = arith.constant 0 : index
    %42 = vector.load %arg6[%c2, %c0_18, %c0_19] : memref<4x32x8xbf16, #tpu.memory_space<vmem>>, vector<1x32x8xbf16>
    %43 = vector.shape_cast %42 : vector<1x32x8xbf16> to vector<32x8xbf16>
    %cst_20 = arith.constant dense<0.000000e+00> : vector<8x8xf32>
    %44 = tpu.matmul %33, %43, %cst_20 {dimension_numbers = #tpu.dot_dimension_numbers<[1], [0], [0], [1], [0, 0, 1, 1], [], []>} : vector<8x32xbf16>, vector<32x8xbf16>, vector<8x8xf32> -> vector<8x8xf32>
    %45 = arith.truncf %44 : vector<8x8xf32> to vector<8x8xbf16>
    %c3 = arith.constant 3 : index
    %c0_21 = arith.constant 0 : index
    %c0_22 = arith.constant 0 : index
    %46 = vector.load %arg6[%c3, %c0_21, %c0_22] : memref<4x32x8xbf16, #tpu.memory_space<vmem>>, vector<1x32x8xbf16>
    %47 = vector.shape_cast %46 : vector<1x32x8xbf16> to vector<32x8xbf16>
    %cst_23 = arith.constant dense<0.000000e+00> : vector<8x8xf32>
    %48 = tpu.matmul %33, %47, %cst_23 {dimension_numbers = #tpu.dot_dimension_numbers<[1], [0], [0], [1], [0, 0, 1, 1], [], []>} : vector<8x32xbf16>, vector<32x8xbf16>, vector<8x8xf32> -> vector<8x8xf32>
    %49 = arith.truncf %48 : vector<8x8xf32> to vector<8x8xbf16>
    %50 = vector.shape_cast %37 : vector<8x8xbf16> to vector<1x8x8xbf16>
    %51 = vector.shape_cast %41 : vector<8x8xbf16> to vector<1x8x8xbf16>
    %52 = vector.shape_cast %45 : vector<8x8xbf16> to vector<1x8x8xbf16>
    %53 = vector.shape_cast %49 : vector<8x8xbf16> to vector<1x8x8xbf16>
    %54 = tpu.concatenate %50, %51, %52, %53 in 0 : vector<1x8x8xbf16>, vector<1x8x8xbf16>, vector<1x8x8xbf16>, vector<1x8x8xbf16> -> vector<4x8x8xbf16>
    %c0_24 = arith.constant 0 : index
    %c0_25 = arith.constant 0 : index
    %c0_26 = arith.constant 0 : index
    %55 = vector.load %arg18[%c0_24, %c0_25, %c0_26] : memref<4x8x8xbf16, #tpu.memory_space<vmem>>, vector<4x8x8xbf16>
    "tpu.trace_start"() <{level = 10 : i32, message = "hqd,hkd->hqk"}> : () -> ()
    %cst_27 = arith.constant dense<0.000000e+00> : vector<4x8x8xf32>
    %56 = tpu.matmul %54, %55, %cst_27 {dimension_numbers = #tpu.dot_dimension_numbers<[2], [2], [1], [1], [0, 0, 0, 1, 1, 1], [0], [0]>} : vector<4x8x8xbf16>, vector<4x8x8xbf16>, vector<4x8x8xf32> -> vector<4x8x8xf32>
    "tpu.trace_stop"() : () -> ()
    %cst_28 = arith.constant dense<0xFF800000> : vector<4x8xf32>
    %57 = vector.multi_reduction <maximumf>, %56, %cst_28 [2] : vector<4x8x8xf32> to vector<4x8xf32>
    %58 = vector.shape_cast %57 : vector<4x8xf32> to vector<4x8x1xf32>
    %59 = vector.broadcast %58 : vector<4x8x1xf32> to vector<4x8x8xf32>
    %60 = arith.subf %56, %59 : vector<4x8x8xf32>
    %61 = math.exp %60 : vector<4x8x8xf32>
    %cst_29 = arith.constant dense<0.000000e+00> : vector<4x8xf32>
    %62 = vector.multi_reduction <add>, %61, %cst_29 [2] : vector<4x8x8xf32> to vector<4x8xf32>
    %63 = vector.shape_cast %62 : vector<4x8xf32> to vector<4x8x1xf32>
    %64 = arith.truncf %61 : vector<4x8x8xf32> to vector<4x8x8xbf16>
    %c0_30 = arith.constant 0 : index
    %c0_31 = arith.constant 0 : index
    %c0_32 = arith.constant 0 : index
    %65 = vector.load %arg19[%c0_30, %c0_31, %c0_32] : memref<4x8x8xbf16, #tpu.memory_space<vmem>>, vector<4x8x8xbf16>
    "tpu.trace_start"() <{level = 10 : i32, message = "hqk,hkd->hqd"}> : () -> ()
    %cst_33 = arith.constant dense<0.000000e+00> : vector<4x8x8xf32>
    %66 = tpu.matmul %64, %65, %cst_33 {dimension_numbers = #tpu.dot_dimension_numbers<[2], [1], [1], [2], [0, 0, 0, 1, 1, 2], [0], [0]>} : vector<4x8x8xbf16>, vector<4x8x8xbf16>, vector<4x8x8xf32> -> vector<4x8x8xf32>
    "tpu.trace_stop"() : () -> ()
    %67 = tpu.reciprocal %63 {approx = true} : vector<4x8x1xf32> -> vector<4x8x1xf32>
    %68 = vector.broadcast %67 : vector<4x8x1xf32> to vector<4x8x8xf32>
    %69 = arith.mulf %66, %68 : vector<4x8x8xf32>
    %70 = arith.truncf %69 : vector<4x8x8xf32> to vector<4x8x8xbf16>
    %c0_34 = arith.constant 0 : index
    %c0_35 = arith.constant 0 : index
    %c0_36 = arith.constant 0 : index
    %71 = vector.load %arg9[%c0_34, %c0_35, %c0_36] : memref<4x8x32xbf16, #tpu.memory_space<vmem>>, vector<4x8x32xbf16>
    "tpu.trace_start"() <{level = 10 : i32, message = "hqd,hdo->hqo"}> : () -> ()
    %cst_37 = arith.constant dense<0.000000e+00> : vector<4x8x32xf32>
    %72 = tpu.matmul %70, %71, %cst_37 {dimension_numbers = #tpu.dot_dimension_numbers<[2], [1], [1], [2], [0, 0, 0, 1, 1, 2], [0], [0]>} : vector<4x8x8xbf16>, vector<4x8x32xbf16>, vector<4x8x32xf32> -> vector<4x8x32xf32>
    "tpu.trace_stop"() : () -> ()
    %cst_38 = arith.constant dense<0.000000e+00> : vector<8x32xf32>
    %73 = vector.multi_reduction <add>, %72, %cst_38 [0] : vector<4x8x32xf32> to vector<8x32xf32>
    %c0_39 = arith.constant 0 : index
    %c0_40 = arith.constant 0 : index
    %74 = vector.load %arg10[%c0_39, %c0_40] : memref<1x32xf32, #tpu.memory_space<vmem>>, vector<1x32xf32>
    %75 = vector.shape_cast %74 : vector<1x32xf32> to vector<32xf32>
    %76 = vector.shape_cast %75 : vector<32xf32> to vector<1x32xf32>
    %77 = vector.broadcast %76 : vector<1x32xf32> to vector<8x32xf32>
    %78 = arith.addf %73, %77 : vector<8x32xf32>
    %79 = arith.addf %78, %8 : vector<8x32xf32>
    %c0_41 = arith.constant 0 : index
    %c0_42 = arith.constant 0 : index
    %80 = vector.load %arg11[%c0_41, %c0_42] : memref<1x32xf32, #tpu.memory_space<vmem>>, vector<1x32xf32>
    %81 = vector.shape_cast %80 : vector<1x32xf32> to vector<32xf32>
    %c0_43 = arith.constant 0 : index
    %c0_44 = arith.constant 0 : index
    %82 = vector.load %arg12[%c0_43, %c0_44] : memref<1x32xf32, #tpu.memory_space<vmem>>, vector<1x32xf32>
    %83 = vector.shape_cast %82 : vector<1x32xf32> to vector<32xf32>
    %cst_45 = arith.constant dense<0.000000e+00> : vector<8xf32>
    %84 = vector.multi_reduction <add>, %79, %cst_45 [1] : vector<8x32xf32> to vector<8xf32>
    %85 = vector.shape_cast %84 : vector<8xf32> to vector<8x1xf32>
    %cst_46 = arith.constant 3.200000e+01 : f32
    %86 = vector.broadcast %cst_46 : f32 to vector<8x1xf32>
    %87 = arith.divf %85, %86 : vector<8x1xf32>
    %88 = vector.broadcast %87 : vector<8x1xf32> to vector<8x32xf32>
    %89 = arith.subf %79, %88 : vector<8x32xf32>
    %90 = arith.mulf %89, %89 : vector<8x32xf32>
    %cst_47 = arith.constant dense<0.000000e+00> : vector<8xf32>
    %91 = vector.multi_reduction <add>, %90, %cst_47 [1] : vector<8x32xf32> to vector<8xf32>
    %92 = vector.shape_cast %91 : vector<8xf32> to vector<8x1xf32>
    %cst_48 = arith.constant 3.200000e+01 : f32
    %93 = vector.broadcast %cst_48 : f32 to vector<8x1xf32>
    %94 = arith.divf %92, %93 : vector<8x1xf32>
    %95 = vector.broadcast %87 : vector<8x1xf32> to vector<8x32xf32>
    %96 = arith.subf %79, %95 : vector<8x32xf32>
    %cst_49 = arith.constant 9.99999974E-6 : f32
    %97 = vector.broadcast %cst_49 : f32 to vector<8x1xf32>
    %98 = arith.addf %94, %97 : vector<8x1xf32>
    %99 = math.rsqrt %98 : vector<8x1xf32>
    %100 = vector.broadcast %99 : vector<8x1xf32> to vector<8x32xf32>
    %101 = arith.mulf %96, %100 : vector<8x32xf32>
    %102 = vector.shape_cast %81 : vector<32xf32> to vector<1x32xf32>
    %103 = vector.broadcast %102 : vector<1x32xf32> to vector<8x32xf32>
    %104 = arith.mulf %101, %103 : vector<8x32xf32>
    %105 = vector.shape_cast %83 : vector<32xf32> to vector<1x32xf32>
    %106 = vector.broadcast %105 : vector<1x32xf32> to vector<8x32xf32>
    %107 = arith.addf %104, %106 : vector<8x32xf32>
    %108 = arith.truncf %107 : vector<8x32xf32> to vector<8x32xbf16>
    %c0_50 = arith.constant 0 : index
    %c0_51 = arith.constant 0 : index
    %109 = vector.load %arg13[%c0_50, %c0_51] : memref<32x64xbf16, #tpu.memory_space<vmem>>, vector<32x64xbf16>
    %cst_52 = arith.constant dense<0.000000e+00> : vector<8x64xf32>
    %110 = tpu.matmul %108, %109, %cst_52 {dimension_numbers = #tpu.dot_dimension_numbers<[1], [0], [0], [1], [0, 0, 1, 1], [], []>} : vector<8x32xbf16>, vector<32x64xbf16>, vector<8x64xf32> -> vector<8x64xf32>
    %c0_53 = arith.constant 0 : index
    %c0_54 = arith.constant 0 : index
    %111 = vector.load %arg14[%c0_53, %c0_54] : memref<1x64xf32, #tpu.memory_space<vmem>>, vector<1x64xf32>
    %112 = vector.shape_cast %111 : vector<1x64xf32> to vector<64xf32>
    %113 = vector.shape_cast %112 : vector<64xf32> to vector<1x64xf32>
    %114 = vector.broadcast %113 : vector<1x64xf32> to vector<8x64xf32>
    %115 = arith.addf %110, %114 : vector<8x64xf32>
    %cst_55 = arith.constant 5.000000e-01 : f32
    %116 = vector.broadcast %cst_55 : f32 to vector<8x64xf32>
    %117 = arith.mulf %116, %115 : vector<8x64xf32>
    %cst_56 = arith.constant 0.707106769 : f32
    %118 = vector.broadcast %cst_56 : f32 to vector<8x64xf32>
    %119 = arith.mulf %115, %118 : vector<8x64xf32>
    %120 = math.erf %119 : vector<8x64xf32>
    %cst_57 = arith.constant 1.000000e+00 : f32
    %121 = vector.broadcast %cst_57 : f32 to vector<8x64xf32>
    %122 = arith.addf %121, %120 : vector<8x64xf32>
    %123 = arith.mulf %117, %122 : vector<8x64xf32>
    %124 = arith.truncf %123 : vector<8x64xf32> to vector<8x64xbf16>
    %c0_58 = arith.constant 0 : index
    %c0_59 = arith.constant 0 : index
    %125 = vector.load %arg15[%c0_58, %c0_59] : memref<64x32xbf16, #tpu.memory_space<vmem>>, vector<64x32xbf16>
    %cst_60 = arith.constant dense<0.000000e+00> : vector<8x32xf32>
    %126 = tpu.matmul %124, %125, %cst_60 {dimension_numbers = #tpu.dot_dimension_numbers<[1], [0], [0], [1], [0, 0, 1, 1], [], []>} : vector<8x64xbf16>, vector<64x32xbf16>, vector<8x32xf32> -> vector<8x32xf32>
    %c0_61 = arith.constant 0 : index
    %c0_62 = arith.constant 0 : index
    %127 = vector.load %arg16[%c0_61, %c0_62] : memref<1x32xf32, #tpu.memory_space<vmem>>, vector<1x32xf32>
    %128 = vector.shape_cast %127 : vector<1x32xf32> to vector<32xf32>
    %129 = vector.shape_cast %128 : vector<32xf32> to vector<1x32xf32>
    %130 = vector.broadcast %129 : vector<1x32xf32> to vector<8x32xf32>
    %131 = arith.addf %126, %130 : vector<8x32xf32>
    %132 = arith.addf %131, %79 : vector<8x32xf32>
    %c0_63 = arith.constant 0 : index
    %c0_64 = arith.constant 0 : index
    %c0_65 = arith.constant 0 : index
    %133 = vector.load %arg17[%c0_63, %c0_64, %c0_65] : memref<1x8x32xf32, #tpu.memory_space<vmem>>, vector<1x8x32xf32>
    %134 = vector.shape_cast %133 : vector<1x8x32xf32> to vector<8x32xf32>
    %135 = vector.shape_cast %132 : vector<8x32xf32> to vector<1x8x32xf32>
    tpu.vector_store %arg17[%c0_63, %c0_64, %c0_65], %135 {strides = array<i32>} : memref<1x8x32xf32, #tpu.memory_space<vmem>>, vector<1x8x32xf32>,
    return
  }
  func.func @transform_0(%arg0: i32, %arg1: i32) -> (i32, i32, i32) {
    %c0_i32 = arith.constant 0 : i32
    %c0_i32_0 = arith.constant 0 : i32
    return %arg0, %arg1, %c0_i32 : i32, i32, i32
  }
  func.func @transform_1(%arg0: i32, %arg1: i32) -> (i32, i32, i32) {
    %c0_i32 = arith.constant 0 : i32
    %c0_i32_0 = arith.constant 0 : i32
    %c0_i32_1 = arith.constant 0 : i32
    return %arg0, %c0_i32, %c0_i32_0 : i32, i32, i32
  }
  func.func @transform_2(%arg0: i32, %arg1: i32) -> (i32, i32) {
    %c0_i32 = arith.constant 0 : i32
    %c0_i32_0 = arith.constant 0 : i32
    %c0_i32_1 = arith.constant 0 : i32
    return %c0_i32, %c0_i32_0 : i32, i32
  }
  func.func @transform_3(%arg0: i32, %arg1: i32) -> (i32, i32) {
    %c0_i32 = arith.constant 0 : i32
    %c0_i32_0 = arith.constant 0 : i32
    %c0_i32_1 = arith.constant 0 : i32
    return %c0_i32, %c0_i32_0 : i32, i32
  }
  func.func @transform_4(%arg0: i32, %arg1: i32) -> (i32, i32, i32) {
    %c0_i32 = arith.constant 0 : i32
    %c0_i32_0 = arith.constant 0 : i32
    %c0_i32_1 = arith.constant 0 : i32
    %c0_i32_2 = arith.constant 0 : i32
    return %c0_i32, %c0_i32_0, %c0_i32_1 : i32, i32, i32
  }
  func.func @transform_5(%arg0: i32, %arg1: i32) -> (i32, i32, i32) {
    %c0_i32 = arith.constant 0 : i32
    %c0_i32_0 = arith.constant 0 : i32
    %c0_i32_1 = arith.constant 0 : i32
    %c0_i32_2 = arith.constant 0 : i32
    return %c0_i32, %c0_i32_0, %c0_i32_1 : i32, i32, i32
  }
  func.func @transform_6(%arg0: i32, %arg1: i32) -> (i32, i32, i32) {
    %c0_i32 = arith.constant 0 : i32
    %c0_i32_0 = arith.constant 0 : i32
    %c0_i32_1 = arith.constant 0 : i32
    %c0_i32_2 = arith.constant 0 : i32
    return %c0_i32, %c0_i32_0, %c0_i32_1 : i32, i32, i32
  }
  func.func @transform_7(%arg0: i32, %arg1: i32) -> (i32, i32, i32) {
    %c0_i32 = arith.constant 0 : i32
    %c0_i32_0 = arith.constant 0 : i32
    %c0_i32_1 = arith.constant 0 : i32
    %c0_i32_2 = arith.constant 0 : i32
    return %c0_i32, %c0_i32_0, %c0_i32_1 : i32, i32, i32
  }
  func.func @transform_8(%arg0: i32, %arg1: i32) -> (i32, i32) {
    %c0_i32 = arith.constant 0 : i32
    %c0_i32_0 = arith.constant 0 : i32
    %c0_i32_1 = arith.constant 0 : i32
    return %c0_i32, %c0_i32_0 : i32, i32
  }
  func.func @transform_9(%arg0: i32, %arg1: i32) -> (i32, i32) {
    %c0_i32 = arith.constant 0 : i32
    %c0_i32_0 = arith.constant 0 : i32
    %c0_i32_1 = arith.constant 0 : i32
    return %c0_i32, %c0_i32_0 : i32, i32
  }
  func.func @transform_10(%arg0: i32, %arg1: i32) -> (i32, i32) {
    %c0_i32 = arith.constant 0 : i32
    %c0_i32_0 = arith.constant 0 : i32
    %c0_i32_1 = arith.constant 0 : i32
    return %c0_i32, %c0_i32_0 : i32, i32
  }
  func.func @transform_11(%arg0: i32, %arg1: i32) -> (i32, i32) {
    %c0_i32 = arith.constant 0 : i32
    %c0_i32_0 = arith.constant 0 : i32
    %c0_i32_1 = arith.constant 0 : i32
    return %c0_i32, %c0_i32_0 : i32, i32
  }
  func.func @transform_12(%arg0: i32, %arg1: i32) -> (i32, i32) {
    %c0_i32 = arith.constant 0 : i32
    %c0_i32_0 = arith.constant 0 : i32
    %c0_i32_1 = arith.constant 0 : i32
    return %c0_i32, %c0_i32_0 : i32, i32
  }
  func.func @transform_13(%arg0: i32, %arg1: i32) -> (i32, i32) {
    %c0_i32 = arith.constant 0 : i32
    %c0_i32_0 = arith.constant 0 : i32
    %c0_i32_1 = arith.constant 0 : i32
    return %c0_i32, %c0_i32_0 : i32, i32
  }
  func.func @transform_14(%arg0: i32, %arg1: i32) -> (i32, i32) {
    %c0_i32 = arith.constant 0 : i32
    %c0_i32_0 = arith.constant 0 : i32
    %c0_i32_1 = arith.constant 0 : i32
    return %c0_i32, %c0_i32_0 : i32, i32
  }
  func.func @transform_15(%arg0: i32, %arg1: i32) -> (i32, i32, i32) {
    %c0_i32 = arith.constant 0 : i32
    %c0_i32_0 = arith.constant 0 : i32
    return %arg0, %arg1, %c0_i32 : i32, i32, i32
  }
}

module attributes {stable_mosaic.version = 11 : i64} {
  func.func @block_kernel(%arg0: i32, %arg1: i32, %arg2: memref<1x8x32xf32, #tpu.memory_space<vmem>>, %arg3: memref<1x8x32xf32, #tpu.memory_space<vmem>>, %arg4: memref<1x32xf32, #tpu.memory_space<vmem>>, %arg5: memref<1x32xf32, #tpu.memory_space<vmem>>, %arg6: memref<4x32x8xbf16, #tpu.memory_space<vmem>>, %arg7: memref<4x32x8xbf16, #tpu.memory_space<vmem>>, %arg8: memref<4x32x8xbf16, #tpu.memory_space<vmem>>, %arg9: memref<4x8x32xbf16, #tpu.memory_space<vmem>>, %arg10: memref<1x32xf32, #tpu.memory_space<vmem>>, %arg11: memref<1x32xf32, #tpu.memory_space<vmem>>, %arg12: memref<1x32xf32, #tpu.memory_space<vmem>>, %arg13: memref<32x64xbf16, #tpu.memory_space<vmem>>, %arg14: memref<1x64xf32, #tpu.memory_space<vmem>>, %arg15: memref<64x32xbf16, #tpu.memory_space<vmem>>, %arg16: memref<1x32xf32, #tpu.memory_space<vmem>>, %arg17: memref<1x8x32xf32, #tpu.memory_space<vmem>>, %arg18: memref<4x8x8xbf16, #tpu.memory_space<vmem>>, %arg19: memref<4x8x8xbf16, #tpu.memory_space<vmem>>) attributes {dimension_semantics = [#tpu.dimension_semantics<parallel>, #tpu.dimension_semantics<arbitrary>], iteration_bounds = array<i64: 2, 1>, scalar_prefetch = 0 : i64, scratch_operands = 2 : i64, tpu.core_type = #tpu.core_type<tc>, window_params = [{transform_indices = @transform_0, window_bounds = array<i64: 1, 8, 32>}, {transform_indices = @transform_1, window_bounds = array<i64: 1, 8, 32>}, {pipeline_mode = #tpu.pipeline_mode<synchronous>, transform_indices = @transform_2, window_bounds = array<i64: 1, 32>}, {pipeline_mode = #tpu.pipeline_mode<synchronous>, transform_indices = @transform_3, window_bounds = array<i64: 1, 32>}, {pipeline_mode = #tpu.pipeline_mode<synchronous>, transform_indices = @transform_4, window_bounds = array<i64: 4, 32, 8>}, {pipeline_mode = #tpu.pipeline_mode<synchronous>, transform_indices = @transform_5, window_bounds = array<i64: 4, 32, 8>}, {pipeline_mode = #tpu.pipeline_mode<synchronous>, transform_indices = @transform_6, window_bounds = array<i64: 4, 32, 8>}, {pipeline_mode = #tpu.pipeline_mode<synchronous>, transform_indices = @transform_7, window_bounds = array<i64: 4, 8, 32>}, {pipeline_mode = #tpu.pipeline_mode<synchronous>, transform_indices = @transform_8, window_bounds = array<i64: 1, 32>}, {pipeline_mode = #tpu.pipeline_mode<synchronous>, transform_indices = @transform_9, window_bounds = array<i64: 1, 32>}, {pipeline_mode = #tpu.pipeline_mode<synchronous>, transform_indices = @transform_10, window_bounds = array<i64: 1, 32>}, {pipeline_mode = #tpu.pipeline_mode<synchronous>, transform_indices = @transform_11, window_bounds = array<i64: 32, 64>}, {pipeline_mode = #tpu.pipeline_mode<synchronous>, transform_indices = @transform_12, window_bounds = array<i64: 1, 64>}, {pipeline_mode = #tpu.pipeline_mode<synchronous>, transform_indices = @transform_13, window_bounds = array<i64: 64, 32>}, {pipeline_mode = #tpu.pipeline_mode<synchronous>, transform_indices = @transform_14, window_bounds = array<i64: 1, 32>}, {transform_indices = @transform_15, window_bounds = array<i64: 1, 8, 32>}]} {
    %c0 = arith.constant 0 : index
    %c0_0 = arith.constant 0 : index
    %0 = vector.load %arg4[%c0, %c0_0] : memref<1x32xf32, #tpu.memory_space<vmem>>, vector<1x32xf32>
    %1 = vector.shape_cast %0 : vector<1x32xf32> to vector<32xf32>
    %c0_1 = arith.constant 0 : index
    %c0_2 = arith.constant 0 : index
    %2 = vector.load %arg5[%c0_1, %c0_2] : memref<1x32xf32, #tpu.memory_space<vmem>>, vector<1x32xf32>
    %3 = vector.shape_cast %2 : vector<1x32xf32> to vector<32xf32>
    %c0_i32 = arith.constant 0 : i32
    %4 = arith.cmpi eq, %arg1, %c0_i32 : i32
    %5 = arith.extui %4 : i1 to i32
    %c0_i32_3 = arith.constant 0 : i32
    %6 = arith.cmpi ne, %5, %c0_i32_3 : i32
    scf.if %6 {
      %c0_66 = arith.constant 0 : index
      %c0_67 = arith.constant 0 : index
      %c0_68 = arith.constant 0 : index
      %136 = vector.load %arg3[%c0_66, %c0_67, %c0_68] : memref<1x8x32xf32, #tpu.memory_space<vmem>>, vector<1x8x32xf32>
      %137 = vector.shape_cast %136 : vector<1x8x32xf32> to vector<8x32xf32>
      %cst_69 = arith.constant dense<0.000000e+00> : vector<8xf32>
      %138 = vector.multi_reduction <add>, %137, %cst_69 [1] : vector<8x32xf32> to vector<8xf32>
      %139 = vector.shape_cast %138 : vector<8xf32> to vector<8x1xf32>
      %cst_70 = arith.constant 3.200000e+01 : f32
      %140 = vector.broadcast %cst_70 : f32 to vector<8x1xf32>
      %141 = arith.divf %139, %140 : vector<8x1xf32>
      %142 = vector.broadcast %141 : vector<8x1xf32> to vector<8x32xf32>
      %143 = arith.subf %137, %142 : vector<8x32xf32>
      %144 = arith.mulf %143, %143 : vector<8x32xf32>
      %cst_71 = arith.constant dense<0.000000e+00> : vector<8xf32>
      %145 = vector.multi_reduction <add>, %144, %cst_71 [1] : vector<8x32xf32> to vector<8xf32>
      %146 = vector.shape_cast %145 : vector<8xf32> to vector<8x1xf32>
      %cst_72 = arith.constant 3.200000e+01 : f32
      %147 = vector.broadcast %cst_72 : f32 to vector<8x1xf32>
      %148 = arith.divf %146, %147 : vector<8x1xf32>
      %149 = vector.broadcast %141 : vector<8x1xf32> to vector<8x32xf32>
      %150 = arith.subf %137, %149 : vector<8x32xf32>
      %cst_73 = arith.constant 9.99999974E-6 : f32
      %151 = vector.broadcast %cst_73 : f32 to vector<8x1xf32>
      %152 = arith.addf %148, %151 : vector<8x1xf32>
      %153 = math.rsqrt %152 : vector<8x1xf32>
      %154 = vector.broadcast %153 : vector<8x1xf32> to vector<8x32xf32>
      %155 = arith.mulf %150, %154 : vector<8x32xf32>
      %156 = vector.shape_cast %1 : vector<32xf32> to vector<1x32xf32>
      %157 = vector.broadcast %156 : vector<1x32xf32> to vector<8x32xf32>
      %158 = arith.mulf %155, %157 : vector<8x32xf32>
      %159 = vector.shape_cast %3 : vector<32xf32> to vector<1x32xf32>
      %160 = vector.broadcast %159 : vector<1x32xf32> to vector<8x32xf32>
      %161 = arith.addf %158, %160 : vector<8x32xf32>
      %162 = arith.truncf %161 : vector<8x32xf32> to vector<8x32xbf16>
      %c0_74 = arith.constant 0 : index
      %c0_75 = arith.constant 0 : index
      %c0_76 = arith.constant 0 : index
      %163 = vector.load %arg7[%c0_74, %c0_75, %c0_76] : memref<4x32x8xbf16, #tpu.memory_space<vmem>>, vector<1x32x8xbf16>
      %164 = vector.shape_cast %163 : vector<1x32x8xbf16> to vector<32x8xbf16>
      %cst_77 = arith.constant dense<0.000000e+00> : vector<8x8xf32>
      %165 = tpu.matmul %162, %164, %cst_77 {dimension_numbers = #tpu.dot_dimension_numbers<[1], [0], [0], [1], [0, 0, 1, 1], [], []>} : vector<8x32xbf16>, vector<32x8xbf16>, vector<8x8xf32> -> vector<8x8xf32>
      %166 = arith.truncf %165 : vector<8x8xf32> to vector<8x8xbf16>
      %c0_78 = arith.constant 0 : index
      %c0_79 = arith.constant 0 : index
      %c0_80 = arith.constant 0 : index
      %167 = vector.load %arg18[%c0_78, %c0_79, %c0_80] : memref<4x8x8xbf16, #tpu.memory_space<vmem>>, vector<1x8x8xbf16>
      %168 = vector.shape_cast %167 : vector<1x8x8xbf16> to vector<8x8xbf16>
      %169 = vector.shape_cast %166 : vector<8x8xbf16> to vector<1x8x8xbf16>
      tpu.vector_store %arg18[%c0_78, %c0_79, %c0_80], %169 {strides = array<i32>} : memref<4x8x8xbf16, #tpu.memory_space<vmem>>, vector<1x8x8xbf16>,
      %c0_81 = arith.constant 0 : index
      %c0_82 = arith.constant 0 : index
      %c0_83 = arith.constant 0 : index
      %170 = vector.load %arg8[%c0_81, %c0_82, %c0_83] : memref<4x32x8xbf16, #tpu.memory_space<vmem>>, vector<1x32x8xbf16>
      %171 = vector.shape_cast %170 : vector<1x32x8xbf16> to vector<32x8xbf16>
      %cst_84 = arith.constant dense<0.000000e+00> : vector<8x8xf32>
      %172 = tpu.matmul %162, %171, %cst_84 {dimension_numbers = #tpu.dot_dimension_numbers<[1], [0], [0], [1], [0, 0, 1, 1], [], []>} : vector<8x32xbf16>, vector<32x8xbf16>, vector<8x8xf32> -> vector<8x8xf32>
      %173 = arith.truncf %172 : vector<8x8xf32> to vector<8x8xbf16>
      %c0_85 = arith.constant 0 : index
      %c0_86 = arith.constant 0 : index
      %c0_87 = arith.constant 0 : index
      %174 = vector.load %arg19[%c0_85, %c0_86, %c0_87] : memref<4x8x8xbf16, #tpu.memory_space<vmem>>, vector<1x8x8xbf16>
      %175 = vector.shape_cast %174 : vector<1x8x8xbf16> to vector<8x8xbf16>
      %176 = vector.shape_cast %173 : vector<8x8xbf16> to vector<1x8x8xbf16>
      tpu.vector_store %arg19[%c0_85, %c0_86, %c0_87], %176 {strides = array<i32>} : memref<4x8x8xbf16, #tpu.memory_space<vmem>>, vector<1x8x8xbf16>,
      %c1_88 = arith.constant 1 : index
      %c0_89 = arith.constant 0 : index
      %c0_90 = arith.constant 0 : index
      %177 = vector.load %arg7[%c1_88, %c0_89, %c0_90] : memref<4x32x8xbf16, #tpu.memory_space<vmem>>, vector<1x32x8xbf16>
      %178 = vector.shape_cast %177 : vector<1x32x8xbf16> to vector<32x8xbf16>
      %cst_91 = arith.constant dense<0.000000e+00> : vector<8x8xf32>
      %179 = tpu.matmul %162, %178, %cst_91 {dimension_numbers = #tpu.dot_dimension_numbers<[1], [0], [0], [1], [0, 0, 1, 1], [], []>} : vector<8x32xbf16>, vector<32x8xbf16>, vector<8x8xf32> -> vector<8x8xf32>
      %180 = arith.truncf %179 : vector<8x8xf32> to vector<8x8xbf16>
      %c1_92 = arith.constant 1 : index
      %c0_93 = arith.constant 0 : index
      %c0_94 = arith.constant 0 : index
      %181 = vector.load %arg18[%c1_92, %c0_93, %c0_94] : memref<4x8x8xbf16, #tpu.memory_space<vmem>>, vector<1x8x8xbf16>
      %182 = vector.shape_cast %181 : vector<1x8x8xbf16> to vector<8x8xbf16>
      %183 = vector.shape_cast %180 : vector<8x8xbf16> to vector<1x8x8xbf16>
      tpu.vector_store %arg18[%c1_92, %c0_93, %c0_94], %183 {strides = array<i32>} : memref<4x8x8xbf16, #tpu.memory_space<vmem>>, vector<1x8x8xbf16>,
      %c1_95 = arith.constant 1 : index
      %c0_96 = arith.constant 0 : index
      %c0_97 = arith.constant 0 : index
      %184 = vector.load %arg8[%c1_95, %c0_96, %c0_97] : memref<4x32x8xbf16, #tpu.memory_space<vmem>>, vector<1x32x8xbf16>
      %185 = vector.shape_cast %184 : vector<1x32x8xbf16> to vector<32x8xbf16>
      %cst_98 = arith.constant dense<0.000000e+00> : vector<8x8xf32>
      %186 = tpu.matmul %162, %185, %cst_98 {dimension_numbers = #tpu.dot_dimension_numbers<[1], [0], [0], [1], [0, 0, 1, 1], [], []>} : vector<8x32xbf16>, vector<32x8xbf16>, vector<8x8xf32> -> vector<8x8xf32>
      %187 = arith.truncf %186 : vector<8x8xf32> to vector<8x8xbf16>
      %c1_99 = arith.constant 1 : index
      %c0_100 = arith.constant 0 : index
      %c0_101 = arith.constant 0 : index
      %188 = vector.load %arg19[%c1_99, %c0_100, %c0_101] : memref<4x8x8xbf16, #tpu.memory_space<vmem>>, vector<1x8x8xbf16>
      %189 = vector.shape_cast %188 : vector<1x8x8xbf16> to vector<8x8xbf16>
      %190 = vector.shape_cast %187 : vector<8x8xbf16> to vector<1x8x8xbf16>
      tpu.vector_store %arg19[%c1_99, %c0_100, %c0_101], %190 {strides = array<i32>} : memref<4x8x8xbf16, #tpu.memory_space<vmem>>, vector<1x8x8xbf16>,
      %c2_102 = arith.constant 2 : index
      %c0_103 = arith.constant 0 : index
      %c0_104 = arith.constant 0 : index
      %191 = vector.load %arg7[%c2_102, %c0_103, %c0_104] : memref<4x32x8xbf16, #tpu.memory_space<vmem>>, vector<1x32x8xbf16>
      %192 = vector.shape_cast %191 : vector<1x32x8xbf16> to vector<32x8xbf16>
      %cst_105 = arith.constant dense<0.000000e+00> : vector<8x8xf32>
      %193 = tpu.matmul %162, %192, %cst_105 {dimension_numbers = #tpu.dot_dimension_numbers<[1], [0], [0], [1], [0, 0, 1, 1], [], []>} : vector<8x32xbf16>, vector<32x8xbf16>, vector<8x8xf32> -> vector<8x8xf32>
      %194 = arith.truncf %193 : vector<8x8xf32> to vector<8x8xbf16>
      %c2_106 = arith.constant 2 : index
      %c0_107 = arith.constant 0 : index
      %c0_108 = arith.constant 0 : index
      %195 = vector.load %arg18[%c2_106, %c0_107, %c0_108] : memref<4x8x8xbf16, #tpu.memory_space<vmem>>, vector<1x8x8xbf16>
      %196 = vector.shape_cast %195 : vector<1x8x8xbf16> to vector<8x8xbf16>
      %197 = vector.shape_cast %194 : vector<8x8xbf16> to vector<1x8x8xbf16>
      tpu.vector_store %arg18[%c2_106, %c0_107, %c0_108], %197 {strides = array<i32>} : memref<4x8x8xbf16, #tpu.memory_space<vmem>>, vector<1x8x8xbf16>,
      %c2_109 = arith.constant 2 : index
      %c0_110 = arith.constant 0 : index
      %c0_111 = arith.constant 0 : index
      %198 = vector.load %arg8[%c2_109, %c0_110, %c0_111] : memref<4x32x8xbf16, #tpu.memory_space<vmem>>, vector<1x32x8xbf16>
      %199 = vector.shape_cast %198 : vector<1x32x8xbf16> to vector<32x8xbf16>
      %cst_112 = arith.constant dense<0.000000e+00> : vector<8x8xf32>
      %200 = tpu.matmul %162, %199, %cst_112 {dimension_numbers = #tpu.dot_dimension_numbers<[1], [0], [0], [1], [0, 0, 1, 1], [], []>} : vector<8x32xbf16>, vector<32x8xbf16>, vector<8x8xf32> -> vector<8x8xf32>
      %201 = arith.truncf %200 : vector<8x8xf32> to vector<8x8xbf16>
      %c2_113 = arith.constant 2 : index
      %c0_114 = arith.constant 0 : index
      %c0_115 = arith.constant 0 : index
      %202 = vector.load %arg19[%c2_113, %c0_114, %c0_115] : memref<4x8x8xbf16, #tpu.memory_space<vmem>>, vector<1x8x8xbf16>
      %203 = vector.shape_cast %202 : vector<1x8x8xbf16> to vector<8x8xbf16>
      %204 = vector.shape_cast %201 : vector<8x8xbf16> to vector<1x8x8xbf16>
      tpu.vector_store %arg19[%c2_113, %c0_114, %c0_115], %204 {strides = array<i32>} : memref<4x8x8xbf16, #tpu.memory_space<vmem>>, vector<1x8x8xbf16>,
      %c3_116 = arith.constant 3 : index
      %c0_117 = arith.constant 0 : index
      %c0_118 = arith.constant 0 : index
      %205 = vector.load %arg7[%c3_116, %c0_117, %c0_118] : memref<4x32x8xbf16, #tpu.memory_space<vmem>>, vector<1x32x8xbf16>
      %206 = vector.shape_cast %205 : vector<1x32x8xbf16> to vector<32x8xbf16>
      %cst_119 = arith.constant dense<0.000000e+00> : vector<8x8xf32>
      %207 = tpu.matmul %162, %206, %cst_119 {dimension_numbers = #tpu.dot_dimension_numbers<[1], [0], [0], [1], [0, 0, 1, 1], [], []>} : vector<8x32xbf16>, vector<32x8xbf16>, vector<8x8xf32> -> vector<8x8xf32>
      %208 = arith.truncf %207 : vector<8x8xf32> to vector<8x8xbf16>
      %c3_120 = arith.constant 3 : index
      %c0_121 = arith.constant 0 : index
      %c0_122 = arith.constant 0 : index
      %209 = vector.load %arg18[%c3_120, %c0_121, %c0_122] : memref<4x8x8xbf16, #tpu.memory_space<vmem>>, vector<1x8x8xbf16>
      %210 = vector.shape_cast %209 : vector<1x8x8xbf16> to vector<8x8xbf16>
      %211 = vector.shape_cast %208 : vector<8x8xbf16> to vector<1x8x8xbf16>
      tpu.vector_store %arg18[%c3_120, %c0_121, %c0_122], %211 {strides = array<i32>} : memref<4x8x8xbf16, #tpu.memory_space<vmem>>, vector<1x8x8xbf16>,
      %c3_123 = arith.constant 3 : index
      %c0_124 = arith.constant 0 : index
      %c0_125 = arith.constant 0 : index
      %212 = vector.load %arg8[%c3_123, %c0_124, %c0_125] : memref<4x32x8xbf16, #tpu.memory_space<vmem>>, vector<1x32x8xbf16>
      %213 = vector.shape_cast %212 : vector<1x32x8xbf16> to vector<32x8xbf16>
      %cst_126 = arith.constant dense<0.000000e+00> : vector<8x8xf32>
      %214 = tpu.matmul %162, %213, %cst_126 {dimension_numbers = #tpu.dot_dimension_numbers<[1], [0], [0], [1], [0, 0, 1, 1], [], []>} : vector<8x32xbf16>, vector<32x8xbf16>, vector<8x8xf32> -> vector<8x8xf32>
      %215 = arith.truncf %214 : vector<8x8xf32> to vector<8x8xbf16>
      %c3_127 = arith.constant 3 : index
      %c0_128 = arith.constant 0 : index
      %c0_129 = arith.constant 0 : index
      %216 = vector.load %arg19[%c3_127, %c0_128, %c0_129] : memref<4x8x8xbf16, #tpu.memory_space<vmem>>, vector<1x8x8xbf16>
      %217 = vector.shape_cast %216 : vector<1x8x8xbf16> to vector<8x8xbf16>
      %218 = vector.shape_cast %215 : vector<8x8xbf16> to vector<1x8x8xbf16>
      tpu.vector_store %arg19[%c3_127, %c0_128, %c0_129], %218 {strides = array<i32>} : memref<4x8x8xbf16, #tpu.memory_space<vmem>>, vector<1x8x8xbf16>,
    } else {
    }
    %c0_4 = arith.constant 0 : index
    %c0_5 = arith.constant 0 : index
    %c0_6 = arith.constant 0 : index
    %7 = vector.load %arg2[%c0_4, %c0_5, %c0_6] : memref<1x8x32xf32, #tpu.memory_space<vmem>>, vector<1x8x32xf32>
    %8 = vector.shape_cast %7 : vector<1x8x32xf32> to vector<8x32xf32>
    %cst = arith.constant dense<0.000000e+00> : vector<8xf32>
    %9 = vector.multi_reduction <add>, %8, %cst [1] : vector<8x32xf32> to vector<8xf32>
    %10 = vector.shape_cast %9 : vector<8xf32> to vector<8x1xf32>
    %cst_7 = arith.constant 3.200000e+01 : f32
    %11 = vector.broadcast %cst_7 : f32 to vector<8x1xf32>
    %12 = arith.divf %10, %11 : vector<8x1xf32>
    %13 = vector.broadcast %12 : vector<8x1xf32> to vector<8x32xf32>
    %14 = arith.subf %8, %13 : vector<8x32xf32>
    %15 = arith.mulf %14, %14 : vector<8x32xf32>
    %cst_8 = arith.constant dense<0.000000e+00> : vector<8xf32>
    %16 = vector.multi_reduction <add>, %15, %cst_8 [1] : vector<8x32xf32> to vector<8xf32>
    %17 = vector.shape_cast %16 : vector<8xf32> to vector<8x1xf32>
    %cst_9 = arith.constant 3.200000e+01 : f32
    %18 = vector.broadcast %cst_9 : f32 to vector<8x1xf32>
    %19 = arith.divf %17, %18 : vector<8x1xf32>
    %20 = vector.broadcast %12 : vector<8x1xf32> to vector<8x32xf32>
    %21 = arith.subf %8, %20 : vector<8x32xf32>
    %cst_10 = arith.constant 9.99999974E-6 : f32
    %22 = vector.broadcast %cst_10 : f32 to vector<8x1xf32>
    %23 = arith.addf %19, %22 : vector<8x1xf32>
    %24 = math.rsqrt %23 : vector<8x1xf32>
    %25 = vector.broadcast %24 : vector<8x1xf32> to vector<8x32xf32>
    %26 = arith.mulf %21, %25 : vector<8x32xf32>
    %27 = vector.shape_cast %1 : vector<32xf32> to vector<1x32xf32>
    %28 = vector.broadcast %27 : vector<1x32xf32> to vector<8x32xf32>
    %29 = arith.mulf %26, %28 : vector<8x32xf32>
    %30 = vector.shape_cast %3 : vector<32xf32> to vector<1x32xf32>
    %31 = vector.broadcast %30 : vector<1x32xf32> to vector<8x32xf32>
    %32 = arith.addf %29, %31 : vector<8x32xf32>
    %33 = arith.truncf %32 : vector<8x32xf32> to vector<8x32xbf16>
    %c0_11 = arith.constant 0 : index
    %c0_12 = arith.constant 0 : index
    %c0_13 = arith.constant 0 : index
    %34 = vector.load %arg6[%c0_11, %c0_12, %c0_13] : memref<4x32x8xbf16, #tpu.memory_space<vmem>>, vector<1x32x8xbf16>
    %35 = vector.shape_cast %34 : vector<1x32x8xbf16> to vector<32x8xbf16>
    %cst_14 = arith.constant dense<0.000000e+00> : vector<8x8xf32>
    %36 = tpu.matmul %33, %35, %cst_14 {dimension_numbers = #tpu.dot_dimension_numbers<[1], [0], [0], [1], [0, 0, 1, 1], [], []>} : vector<8x32xbf16>, vector<32x8xbf16>, vector<8x8xf32> -> vector<8x8xf32>
    %37 = arith.truncf %36 : vector<8x8xf32> to vector<8x8xbf16>
    %c1 = arith.constant 1 : index
    %c0_15 = arith.constant 0 : index
    %c0_16 = arith.constant 0 : index
    %38 = vector.load %arg6[%c1, %c0_15, %c0_16] : memref<4x32x8xbf16, #tpu.memory_space<vmem>>, vector<1x32x8xbf16>
    %39 = vector.shape_cast %38 : vector<1x32x8xbf16> to vector<32x8xbf16>
    %cst_17 = arith.constant dense<0.000000e+00> : vector<8x8xf32>
    %40 = tpu.matmul %33, %39, %cst_17 {dimension_numbers = #tpu.dot_dimension_numbers<[1], [0], [0], [1], [0, 0, 1, 1], [], []>} : vector<8x32xbf16>, vector<32x8xbf16>, vector<8x8xf32> -> vector<8x8xf32>
    %41 = arith.truncf %40 : vector<8x8xf32> to vector<8x8xbf16>
    %c2 = arith.constant 2 : index
    %c0_18 = arith.constant 0 : index
    %c0_19 = arith.constant 0 : index
    %42 = vector.load %arg6[%c2, %c0_18, %c0_19] : memref<4x32x8xbf16, #tpu.memory_space<vmem>>, vector<1x32x8xbf16>
    %43 = vector.shape_cast %42 : vector<1x32x8xbf16> to vector<32x8xbf16>
    %cst_20 = arith.constant dense<0.000000e+00> : vector<8x8xf32>
    %44 = tpu.matmul %33, %43, %cst_20 {dimension_numbers = #tpu.dot_dimension_numbers<[1], [0], [0], [1], [0, 0, 1, 1], [], []>} : vector<8x32xbf16>, vector<32x8xbf16>, vector<8x8xf32> -> vector<8x8xf32>
    %45 = arith.truncf %44 : vector<8x8xf32> to vector<8x8xbf16>
    %c3 = arith.constant 3 : index
    %c0_21 = arith.constant 0 : index
    %c0_22 = arith.constant 0 : index
    %46 = vector.load %arg6[%c3, %c0_21, %c0_22] : memref<4x32x8xbf16, #tpu.memory_space<vmem>>, vector<1x32x8xbf16>
    %47 = vector.shape_cast %46 : vector<1x32x8xbf16> to vector<32x8xbf16>
    %cst_23 = arith.constant dense<0.000000e+00> : vector<8x8xf32>
    %48 = tpu.matmul %33, %47, %cst_23 {dimension_numbers = #tpu.dot_dimension_numbers<[1], [0], [0], [1], [0, 0, 1, 1], [], []>} : vector<8x32xbf16>, vector<32x8xbf16>, vector<8x8xf32> -> vector<8x8xf32>
    %49 = arith.truncf %48 : vector<8x8xf32> to vector<8x8xbf16>
    %50 = vector.shape_cast %37 : vector<8x8xbf16> to vector<1x8x8xbf16>
    %51 = vector.shape_cast %41 : vector<8x8xbf16> to vector<1x8x8xbf16>
    %52 = vector.shape_cast %45 : vector<8x8xbf16> to vector<1x8x8xbf16>
    %53 = vector.shape_cast %49 : vector<8x8xbf16> to vector<1x8x8xbf16>
    %54 = tpu.concatenate %50, %51, %52, %53 in 0 : vector<1x8x8xbf16>, vector<1x8x8xbf16>, vector<1x8x8xbf16>, vector<1x8x8xbf16> -> vector<4x8x8xbf16>
    %c0_24 = arith.constant 0 : index
    %c0_25 = arith.constant 0 : index
    %c0_26 = arith.constant 0 : index
    %55 = vector.load %arg18[%c0_24, %c0_25, %c0_26] : memref<4x8x8xbf16, #tpu.memory_space<vmem>>, vector<4x8x8xbf16>
    "tpu.trace_start"() <{level = 10 : i32, message = "hqd,hkd->hqk"}> : () -> ()
    %cst_27 = arith.constant dense<0.000000e+00> : vector<4x8x8xf32>
    %56 = tpu.matmul %54, %55, %cst_27 {dimension_numbers = #tpu.dot_dimension_numbers<[2], [2], [1], [1], [0, 0, 0, 1, 1, 1], [0], [0]>} : vector<4x8x8xbf16>, vector<4x8x8xbf16>, vector<4x8x8xf32> -> vector<4x8x8xf32>
    "tpu.trace_stop"() : () -> ()
    %cst_28 = arith.constant dense<0xFF800000> : vector<4x8xf32>
    %57 = vector.multi_reduction <maximumf>, %56, %cst_28 [2] : vector<4x8x8xf32> to vector<4x8xf32>
    %58 = vector.shape_cast %57 : vector<4x8xf32> to vector<4x8x1xf32>
    %59 = vector.broadcast %58 : vector<4x8x1xf32> to vector<4x8x8xf32>
    %60 = arith.subf %56, %59 : vector<4x8x8xf32>
    %61 = math.exp %60 : vector<4x8x8xf32>
    %cst_29 = arith.constant dense<0.000000e+00> : vector<4x8xf32>
    %62 = vector.multi_reduction <add>, %61, %cst_29 [2] : vector<4x8x8xf32> to vector<4x8xf32>
    %63 = vector.shape_cast %62 : vector<4x8xf32> to vector<4x8x1xf32>
    %64 = arith.truncf %61 : vector<4x8x8xf32> to vector<4x8x8xbf16>
    %c0_30 = arith.constant 0 : index
    %c0_31 = arith.constant 0 : index
    %c0_32 = arith.constant 0 : index
    %65 = vector.load %arg19[%c0_30, %c0_31, %c0_32] : memref<4x8x8xbf16, #tpu.memory_space<vmem>>, vector<4x8x8xbf16>
    "tpu.trace_start"() <{level = 10 : i32, message = "hqk,hkd->hqd"}> : () -> ()
    %cst_33 = arith.constant dense<0.000000e+00> : vector<4x8x8xf32>
    %66 = tpu.matmul %64, %65, %cst_33 {dimension_numbers = #tpu.dot_dimension_numbers<[2], [1], [1], [2], [0, 0, 0, 1, 1, 2], [0], [0]>} : vector<4x8x8xbf16>, vector<4x8x8xbf16>, vector<4x8x8xf32> -> vector<4x8x8xf32>
    "tpu.trace_stop"() : () -> ()
    %67 = tpu.reciprocal %63 {approx = true} : vector<4x8x1xf32> -> vector<4x8x1xf32>
    %68 = vector.broadcast %67 : vector<4x8x1xf32> to vector<4x8x8xf32>
    %69 = arith.mulf %66, %68 : vector<4x8x8xf32>
    %70 = arith.truncf %69 : vector<4x8x8xf32> to vector<4x8x8xbf16>
    %c0_34 = arith.constant 0 : index
    %c0_35 = arith.constant 0 : index
    %c0_36 = arith.constant 0 : index
    %71 = vector.load %arg9[%c0_34, %c0_35, %c0_36] : memref<4x8x32xbf16, #tpu.memory_space<vmem>>, vector<4x8x32xbf16>
    "tpu.trace_start"() <{level = 10 : i32, message = "hqd,hdo->hqo"}> : () -> ()
    %cst_37 = arith.constant dense<0.000000e+00> : vector<4x8x32xf32>
    %72 = tpu.matmul %70, %71, %cst_37 {dimension_numbers = #tpu.dot_dimension_numbers<[2], [1], [1], [2], [0, 0, 0, 1, 1, 2], [0], [0]>} : vector<4x8x8xbf16>, vector<4x8x32xbf16>, vector<4x8x32xf32> -> vector<4x8x32xf32>
    "tpu.trace_stop"() : () -> ()
    %cst_38 = arith.constant dense<0.000000e+00> : vector<8x32xf32>
    %73 = vector.multi_reduction <add>, %72, %cst_38 [0] : vector<4x8x32xf32> to vector<8x32xf32>
    %c0_39 = arith.constant 0 : index
    %c0_40 = arith.constant 0 : index
    %74 = vector.load %arg10[%c0_39, %c0_40] : memref<1x32xf32, #tpu.memory_space<vmem>>, vector<1x32xf32>
    %75 = vector.shape_cast %74 : vector<1x32xf32> to vector<32xf32>
    %76 = vector.shape_cast %75 : vector<32xf32> to vector<1x32xf32>
    %77 = vector.broadcast %76 : vector<1x32xf32> to vector<8x32xf32>
    %78 = arith.addf %73, %77 : vector<8x32xf32>
    %79 = arith.addf %78, %8 : vector<8x32xf32>
    %c0_41 = arith.constant 0 : index
    %c0_42 = arith.constant 0 : index
    %80 = vector.load %arg11[%c0_41, %c0_42] : memref<1x32xf32, #tpu.memory_space<vmem>>, vector<1x32xf32>
    %81 = vector.shape_cast %80 : vector<1x32xf32> to vector<32xf32>
    %c0_43 = arith.constant 0 : index
    %c0_44 = arith.constant 0 : index
    %82 = vector.load %arg12[%c0_43, %c0_44] : memref<1x32xf32, #tpu.memory_space<vmem>>, vector<1x32xf32>
    %83 = vector.shape_cast %82 : vector<1x32xf32> to vector<32xf32>
    %cst_45 = arith.constant dense<0.000000e+00> : vector<8xf32>
    %84 = vector.multi_reduction <add>, %79, %cst_45 [1] : vector<8x32xf32> to vector<8xf32>
    %85 = vector.shape_cast %84 : vector<8xf32> to vector<8x1xf32>
    %cst_46 = arith.constant 3.200000e+01 : f32
    %86 = vector.broadcast %cst_46 : f32 to vector<8x1xf32>
    %87 = arith.divf %85, %86 : vector<8x1xf32>
    %88 = vector.broadcast %87 : vector<8x1xf32> to vector<8x32xf32>
    %89 = arith.subf %79, %88 : vector<8x32xf32>
    %90 = arith.mulf %89, %89 : vector<8x32xf32>
    %cst_47 = arith.constant dense<0.000000e+00> : vector<8xf32>
    %91 = vector.multi_reduction <add>, %90, %cst_47 [1] : vector<8x32xf32> to vector<8xf32>
    %92 = vector.shape_cast %91 : vector<8xf32> to vector<8x1xf32>
    %cst_48 = arith.constant 3.200000e+01 : f32
    %93 = vector.broadcast %cst_48 : f32 to vector<8x1xf32>
    %94 = arith.divf %92, %93 : vector<8x1xf32>
    %95 = vector.broadcast %87 : vector<8x1xf32> to vector<8x32xf32>
    %96 = arith.subf %79, %95 : vector<8x32xf32>
    %cst_49 = arith.constant 9.99999974E-6 : f32
    %97 = vector.broadcast %cst_49 : f32 to vector<8x1xf32>
    %98 = arith.addf %94, %97 : vector<8x1xf32>
    %99 = math.rsqrt %98 : vector<8x1xf32>
    %100 = vector.broadcast %99 : vector<8x1xf32> to vector<8x32xf32>
    %101 = arith.mulf %96, %100 : vector<8x32xf32>
    %102 = vector.shape_cast %81 : vector<32xf32> to vector<1x32xf32>
    %103 = vector.broadcast %102 : vector<1x32xf32> to vector<8x32xf32>
    %104 = arith.mulf %101, %103 : vector<8x32xf32>
    %105 = vector.shape_cast %83 : vector<32xf32> to vector<1x32xf32>
    %106 = vector.broadcast %105 : vector<1x32xf32> to vector<8x32xf32>
    %107 = arith.addf %104, %106 : vector<8x32xf32>
    %108 = arith.truncf %107 : vector<8x32xf32> to vector<8x32xbf16>
    %c0_50 = arith.constant 0 : index
    %c0_51 = arith.constant 0 : index
    %109 = vector.load %arg13[%c0_50, %c0_51] : memref<32x64xbf16, #tpu.memory_space<vmem>>, vector<32x64xbf16>
    %cst_52 = arith.constant dense<0.000000e+00> : vector<8x64xf32>
    %110 = tpu.matmul %108, %109, %cst_52 {dimension_numbers = #tpu.dot_dimension_numbers<[1], [0], [0], [1], [0, 0, 1, 1], [], []>} : vector<8x32xbf16>, vector<32x64xbf16>, vector<8x64xf32> -> vector<8x64xf32>
    %c0_53 = arith.constant 0 : index
    %c0_54 = arith.constant 0 : index
    %111 = vector.load %arg14[%c0_53, %c0_54] : memref<1x64xf32, #tpu.memory_space<vmem>>, vector<1x64xf32>
    %112 = vector.shape_cast %111 : vector<1x64xf32> to vector<64xf32>
    %113 = vector.shape_cast %112 : vector<64xf32> to vector<1x64xf32>
    %114 = vector.broadcast %113 : vector<1x64xf32> to vector<8x64xf32>
    %115 = arith.addf %110, %114 : vector<8x64xf32>
    %cst_55 = arith.constant 5.000000e-01 : f32
    %116 = vector.broadcast %cst_55 : f32 to vector<8x64xf32>
    %117 = arith.mulf %116, %115 : vector<8x64xf32>
    %cst_56 = arith.constant 0.707106769 : f32
    %118 = vector.broadcast %cst_56 : f32 to vector<8x64xf32>
    %119 = arith.mulf %115, %118 : vector<8x64xf32>
    %120 = math.erf %119 : vector<8x64xf32>
    %cst_57 = arith.constant 1.000000e+00 : f32
    %121 = vector.broadcast %cst_57 : f32 to vector<8x64xf32>
    %122 = arith.addf %121, %120 : vector<8x64xf32>
    %123 = arith.mulf %117, %122 : vector<8x64xf32>
    %124 = arith.truncf %123 : vector<8x64xf32> to vector<8x64xbf16>
    %c0_58 = arith.constant 0 : index
    %c0_59 = arith.constant 0 : index
    %125 = vector.load %arg15[%c0_58, %c0_59] : memref<64x32xbf16, #tpu.memory_space<vmem>>, vector<64x32xbf16>
    %cst_60 = arith.constant dense<0.000000e+00> : vector<8x32xf32>
    %126 = tpu.matmul %124, %125, %cst_60 {dimension_numbers = #tpu.dot_dimension_numbers<[1], [0], [0], [1], [0, 0, 1, 1], [], []>} : vector<8x64xbf16>, vector<64x32xbf16>, vector<8x32xf32> -> vector<8x32xf32>
    %c0_61 = arith.constant 0 : index
    %c0_62 = arith.constant 0 : index
    %127 = vector.load %arg16[%c0_61, %c0_62] : memref<1x32xf32, #tpu.memory_space<vmem>>, vector<1x32xf32>
    %128 = vector.shape_cast %127 : vector<1x32xf32> to vector<32xf32>
    %129 = vector.shape_cast %128 : vector<32xf32> to vector<1x32xf32>
    %130 = vector.broadcast %129 : vector<1x32xf32> to vector<8x32xf32>
    %131 = arith.addf %126, %130 : vector<8x32xf32>
    %132 = arith.addf %131, %79 : vector<8x32xf32>
    %c0_63 = arith.constant 0 : index
    %c0_64 = arith.constant 0 : index
    %c0_65 = arith.constant 0 : index
    %133 = vector.load %arg17[%c0_63, %c0_64, %c0_65] : memref<1x8x32xf32, #tpu.memory_space<vmem>>, vector<1x8x32xf32>
    %134 = vector.shape_cast %133 : vector<1x8x32xf32> to vector<8x32xf32>
    %135 = vector.shape_cast %132 : vector<8x32xf32> to vector<1x8x32xf32>
    tpu.vector_store %arg17[%c0_63, %c0_64, %c0_65], %135 {strides = array<i32>} : memref<1x8x32xf32, #tpu.memory_space<vmem>>, vector<1x8x32xf32>,
    return
  }
  func.func @transform_0(%arg0: i32, %arg1: i32) -> (i32, i32, i32) {
    %c0_i32 = arith.constant 0 : i32
    %c0_i32_0 = arith.constant 0 : i32
    return %arg0, %arg1, %c0_i32 : i32, i32, i32
  }
  func.func @transform_1(%arg0: i32, %arg1: i32) -> (i32, i32, i32) {
    %c0_i32 = arith.constant 0 : i32
    %c0_i32_0 = arith.constant 0 : i32
    %c0_i32_1 = arith.constant 0 : i32
    return %arg0, %c0_i32, %c0_i32_0 : i32, i32, i32
  }
  func.func @transform_2(%arg0: i32, %arg1: i32) -> (i32, i32) {
    %c0_i32 = arith.constant 0 : i32
    %c0_i32_0 = arith.constant 0 : i32
    %c0_i32_1 = arith.constant 0 : i32
    return %c0_i32, %c0_i32_0 : i32, i32
  }
  func.func @transform_3(%arg0: i32, %arg1: i32) -> (i32, i32) {
    %c0_i32 = arith.constant 0 : i32
    %c0_i32_0 = arith.constant 0 : i32
    %c0_i32_1 = arith.constant 0 : i32
    return %c0_i32, %c0_i32_0 : i32, i32
  }
  func.func @transform_4(%arg0: i32, %arg1: i32) -> (i32, i32, i32) {
    %c0_i32 = arith.constant 0 : i32
    %c0_i32_0 = arith.constant 0 : i32
    %c0_i32_1 = arith.constant 0 : i32
    %c0_i32_2 = arith.constant 0 : i32
    return %c0_i32, %c0_i32_0, %c0_i32_1 : i32, i32, i32
  }
  func.func @transform_5(%arg0: i32, %arg1: i32) -> (i32, i32, i32) {
    %c0_i32 = arith.constant 0 : i32
    %c0_i32_0 = arith.constant 0 : i32
    %c0_i32_1 = arith.constant 0 : i32
    %c0_i32_2 = arith.constant 0 : i32
    return %c0_i32, %c0_i32_0, %c0_i32_1 : i32, i32, i32
  }
  func.func @transform_6(%arg0: i32, %arg1: i32) -> (i32, i32, i32) {
    %c0_i32 = arith.constant 0 : i32
    %c0_i32_0 = arith.constant 0 : i32
    %c0_i32_1 = arith.constant 0 : i32
    %c0_i32_2 = arith.constant 0 : i32
    return %c0_i32, %c0_i32_0, %c0_i32_1 : i32, i32, i32
  }
  func.func @transform_7(%arg0: i32, %arg1: i32) -> (i32, i32, i32) {
    %c0_i32 = arith.constant 0 : i32
    %c0_i32_0 = arith.constant 0 : i32
    %c0_i32_1 = arith.constant 0 : i32
    %c0_i32_2 = arith.constant 0 : i32
    return %c0_i32, %c0_i32_0, %c0_i32_1 : i32, i32, i32
  }
  func.func @transform_8(%arg0: i32, %arg1: i32) -> (i32, i32) {
    %c0_i32 = arith.constant 0 : i32
    %c0_i32_0 = arith.constant 0 : i32
    %c0_i32_1 = arith.constant 0 : i32
    return %c0_i32, %c0_i32_0 : i32, i32
  }
  func.func @transform_9(%arg0: i32, %arg1: i32) -> (i32, i32) {
    %c0_i32 = arith.constant 0 : i32
    %c0_i32_0 = arith.constant 0 : i32
    %c0_i32_1 = arith.constant 0 : i32
    return %c0_i32, %c0_i32_0 : i32, i32
  }
  func.func @transform_10(%arg0: i32, %arg1: i32) -> (i32, i32) {
    %c0_i32 = arith.constant 0 : i32
    %c0_i32_0 = arith.constant 0 : i32
    %c0_i32_1 = arith.constant 0 : i32
    return %c0_i32, %c0_i32_0 : i32, i32
  }
  func.func @transform_11(%arg0: i32, %arg1: i32) -> (i32, i32) {
    %c0_i32 = arith.constant 0 : i32
    %c0_i32_0 = arith.constant 0 : i32
    %c0_i32_1 = arith.constant 0 : i32
    return %c0_i32, %c0_i32_0 : i32, i32
  }
  func.func @transform_12(%arg0: i32, %arg1: i32) -> (i32, i32) {
    %c0_i32 = arith.constant 0 : i32
    %c0_i32_0 = arith.constant 0 : i32
    %c0_i32_1 = arith.constant 0 : i32
    return %c0_i32, %c0_i32_0 : i32, i32
  }
  func.func @transform_13(%arg0: i32, %arg1: i32) -> (i32, i32) {
    %c0_i32 = arith.constant 0 : i32
    %c0_i32_0 = arith.constant 0 : i32
    %c0_i32_1 = arith.constant 0 : i32
    return %c0_i32, %c0_i32_0 : i32, i32
  }
  func.func @transform_14(%arg0: i32, %arg1: i32) -> (i32, i32) {
    %c0_i32 = arith.constant 0 : i32
    %c0_i32_0 = arith.constant 0 : i32
    %c0_i32_1 = arith.constant 0 : i32
    return %c0_i32, %c0_i32_0 : i32, i32
  }
  func.func @transform_15(%arg0: i32, %arg1: i32) -> (i32, i32, i32) {
    %c0_i32 = arith.constant 0 : i32
    %c0_i32_0 = arith.constant 0 : i32
    return %arg0, %arg1, %c0_i32 : i32, i32, i32
  }
}

</mosaic_0001>

<bundles_post_ra>
// kernel: tpu_custom_call.1
= control target key start
LH: loop header
LB: loop body
LE: loop exit
PB: predicated region body
PF: predicated region fallthrough
CT: control target
= control target key end

     0   :  { %s3285_s0 = inlined_call_operand.vmem [shape: f32[2,8,32], index: 0, kind: input, shape index: {}]   ;;  %s3286_s1 = inlined_call_operand.vmem [shape: f32[2,8,32], index: 1, kind: input, shape index: {}]   ;;  %s3287_s2 = inlined_call_operand.vmem [shape: f32[1,32], index: 2, kind: input, shape index: {}]   ;;  %s3288_s3 = inlined_call_operand.vmem [shape: f32[1,32], index: 3, kind: input, shape index: {}]   ;;  %s3289_s4 = inlined_call_operand.vmem [shape: bf16[4,32,8], index: 4, kind: input, shape index: {}]   ;;  %s3290_s5 = inlined_call_operand.vmem [shape: bf16[4,32,8], index: 5, kind: input, shape index: {}]   ;;  %s3291_s6 = inlined_call_operand.vmem [shape: bf16[4,32,8], index: 6, kind: input, shape index: {}]   ;;  %s3292_s7 = inlined_call_operand.vmem [shape: bf16[4,8,32], index: 7, kind: input, shape index: {}]   ;;  %s3293_s8 = inlined_call_operand.vmem [shape: f32[1,32], index: 8, kind: input, shape index: {}]   ;;  %s3294_s9 = inlined_call_operand.vmem [shape: f32[1,32], index: 9, kind: input, shape index: {}]   ;;  %s3295_s10 = inlined_call_operand.vmem [shape: f32[1,32], index: 10, kind: input, shape index: {}]   ;;  %s3296_s11 = inlined_call_operand.vmem [shape: bf16[32,64], index: 11, kind: input, shape index: {}]   ;;  %s3297_s12 = inlined_call_operand.vmem [shape: f32[1,64], index: 12, kind: input, shape index: {}]   ;;  %s3298_s13 = inlined_call_operand.vmem [shape: bf16[64,32], index: 13, kind: input, shape index: {}]   ;;  %s3299_s14 = inlined_call_operand.vmem [shape: f32[1,32], index: 14, kind: input, shape index: {}]   ;;  %s3300_s15 = inlined_call_operand.hbm [shape: f32[2,8,32], index: 15, kind: output, shape index: {}]  }
   0x1   :  { %3305 = sst [smem:[#allocation10_spill]] %s3285_s0 }
   0x2   :  { %3306 = sst [smem:[#allocation11_spill]] %s3286_s1 }
   0x3   :  { %3307 = sst [smem:[#allocation12_spill]] %s3287_s2 }
   0x4   :  { %3308 = sst [smem:[#allocation13_spill]] %s3300_s15 }
   0x5   :  { %20 = vsyncpa [#allocation5], 0 }
   0x6   :  { %22 = vsyncpa [#allocation5 + $0x1], 0  ;;  %s2875_s18 = smov 0   ;;  %s2877_s19 = smov 0  }
   0x7   :  { %s2879_s20 = smov 0   ;;  %s2881_s21 = smov 0  }
   0x8   :  { %s2883_s22 = smov 0   ;;  %s2885_s23 = smov 0  }
   0x9 LB: > { %3309 = sst [smem:[#allocation7_spill]] %s2770_s18  ;;  %s2234_s24 = sadd.s32 4294967295, %s2790_s23   ;;  %s2790_s23 = sphi %s2885_s23, %s28_s23   ;;  %s2786_s22 = sphi %s2883_s22, %s3320_s22   ;;  %s2782_s21 = sphi %s2881_s21, %s3319_s21   ;;  %s2778_s20 = sphi %s2879_s20, %s3323_s20   ;;  %s2774_s19 = sphi %s2877_s19, %s3322_s19   ;;  %s2770_s18 = sphi %s2875_s18, %s3321_s18  }
   0xa   : > { %3310 = sst [smem:[#allocation8_spill]] %s2786_s22  ;;  %s2235_s25 = sadd.s32 4294967294, %s2790_s23  }
   0xb   : > { %s40_s26 = sadd.s32 1, %s2786_s22  ;;  %s376_s27 = sadd.s32 1, %s2778_s20 }
   0xc   : > { %p42_p0 = scmp.ge.s32.totalorder %s40_s26, 2  ;;  %p386_p1 = scmp.ne.s32.totalorder %s2778_s20, %s2774_s19 }
   0xd   : > { %p387_p2 = scmp.eq.s32.totalorder %s2234_s24, 1  ;;  %p392_p3 = scmp.ne.s32.totalorder %s2774_s19, %s2770_s18 }
   0xe   : > { %s3325_s26 = smov (%p42_p0, %s40_s26), 0  ;;  %p393_p5 = scmp.eq.s32.totalorder %s2235_s25, 1 }
   0xf   : > { %3311 = sst [smem:[#allocation9_spill]] %s3325_s26  ;;  %p2915_p4 = por %p387_p2, %p386_p1 }
  0x10   : > { %s371_s29 = ssub.s32 %s2786_s22, %s3325_s26  ;;  %p2238_p6 = scmp.ge.s32.totalorder %s2790_s23, 1 }
  0x11   : > { %p374_p7 = scmp.eq.s32.totalorder %s371_s29, 0  ;;  %p2922_p8 = por %p393_p5, %p392_p3 }
  0x12   : > { %p467_p9 = scmp.lt.s32.totalorder %s2790_s23, 3 }
  0x13   : > { %s2928_s16 = scalar_select %p374_p7, %s2778_s20, %s376_s27  }
  0x14   : > { %p468_p10 = pnand %p2238_p6, %p467_p9 }
  0x15   : > { %p521_p11 = scmp.lt.s32.totalorder (!%p468_p10), %s2782_s21, 1  ;;  %vm540_vm0 = vcmask (!%p468_p10), 261120   ;;  %s3314_s1 = sld [smem:[#allocation11_spill]] (!%p468_p10)  ;;  %v2658_v14 = vld [vmem:[%s3290_s5] sm:$0xff] (!%p468_p10)   ;;  %v2792_v16 = vmov (!%p468_p10), 0.0   ;;  %v2660_v17 = vld [vmem:[%s3290_s5 + $0x8] sm:$0xff] (!%p468_p10)  }
  0x16   : > { %471 = sbr.rel (%p468_p10) target bundleno = 2191 (0x88f), region = 80  ;;  %s3315_s0 = sld [smem:[#allocation10_spill]] (!%p468_p10)  ;;  %v2659_v15 = vld [vmem:[%s3291_s6] sm:$0xff] (!%p468_p10)   ;;  %2413 = vmatprep.subr.bf16.mxu0 (!%p468_p10), %v2792_v16  ;;  %2421 = vmatprep.subr.bf16.mxu1 (!%p468_p10), %v2792_v16  ;;  %v2661_v18 = vld [vmem:[%s3291_s6 + $0x8] sm:$0xff] (!%p468_p10)   ;;  %vm2793_vm1 = vmmov (!%p468_p10), 0   ;;  %v2662_v30 = vld [vmem:[%s3290_s5 + $0x10] sm:$0xff] (!%p468_p10)  }
  0x17   : > { %2414 = vmatpush3.bf16.msra.mxu0 (!%p468_p10), %v2658_v14  ;;  %2422 = vmatpush3.bf16.msra.mxu1 (!%p468_p10), %v2659_v15  ;;  %s3316_s2 = sld [smem:[#allocation12_spill]] (!%p468_p10)  ;;  %v2978_v25 = vld [vmem:[%s3288_s3] ss:$0 sm:$0xff] (!%p468_p10)  ;;  %v2663_v31 = vld [vmem:[%s3291_s6 + $0x10] sm:$0xff] (!%p468_p10)   ;;  %v2664_v34 = vld [vmem:[%s3290_s5 + $0x18] sm:$0xff] (!%p468_p10)   ;;  %vm630_vm2 = vcmask (!%p468_p10), 60416  }
  0x18   : > { %2415 = vmatprep.subr.bf16.mxu0 (!%p468_p10), %v2792_v16  ;;  %2423 = vmatprep.subr.bf16.mxu1 (!%p468_p10), %v2792_v16  ;;  %v2665_v35 = vld [vmem:[%s3291_s6 + $0x18] sm:$0xff] (!%p468_p10)   ;;  %v2666_v36 = vld [vmem:[%s3290_s5 + $0x20] sm:$0xff] (!%p468_p10)   ;;  %v2668_v38 = vld [vmem:[%s3290_s5 + $0x28] sm:$0xff] (!%p468_p10)   ;;  %vm1319_vm3 = vcmask (!%p468_p10), 64512   ;;  %vm1551_vm4 = vcmask (!%p468_p10), 1043456   ;;  %vm2090_vm5 = vcmask (!%p468_p10), 523264  }
  0x19   : > { %2417 = vmatprep.mubr.msk.bf16.mxu0 (!%p468_p10), %vm2793_vm1, %v2792_v16  ;;  %2425 = vmatprep.mubr.msk.bf16.mxu1 (!%p468_p10), %vm2793_vm1, %v2792_v16  ;;  %v2667_v37 = vld [vmem:[%s3291_s6 + $0x20] sm:$0xff] (!%p468_p10)   ;;  %v2669_v39 = vld [vmem:[%s3291_s6 + $0x28] sm:$0xff] (!%p468_p10)   ;;  %v2670_v40 = vld [vmem:[%s3290_s5 + $0x30] sm:$0xff] (!%p468_p10)   ;;  %s518_s29 = sand.u32 (!%p468_p10), 1, %s2774_s19   ;;  %s2794_s18 = smov (!%p468_p10), [#allocation4]  }
  0x1a   : > { %v2671_v41 = vld [vmem:[%s3291_s6 + $0x30] sm:$0xff] (!%p468_p10)   ;;  %v2672_v43 = vld [vmem:[%s3290_s5 + $0x38] sm:$0xff] (!%p468_p10)   ;;  %v2674_v46 = vld [vmem:[%s3289_s4] sm:$0xff] (!%p468_p10)   ;;  %s2716_s22 = sshll.u32 (!%p468_p10), %s2794_s18, 4  ;;  %s2717_s22 = int_to_ptr.vmem [resolvable:$false] %s2716_s22 }
  0x1b   : > { %2416 = vmatpush3.bf16.msra.mxu0 (!%p468_p10), %v2660_v17  ;;  %2424 = vmatpush3.bf16.msra.mxu1 (!%p468_p10), %v2661_v18  ;;  %v2673_v44 = vld [vmem:[%s3291_s6 + $0x38] sm:$0xff] (!%p468_p10)   ;;  %v2675_v47 = vld [vmem:[%s3289_s4 + $0x10] sm:$0xff] (!%p468_p10)   ;;  %v2676_v49 = vld [vmem:[%s3289_s4 + $0x8] sm:$0xff] (!%p468_p10)  }
  0x1c   : > { %2429 = vmatprep.subr.bf16.mxu0 (!%p468_p10), %v2792_v16  ;;  %2437 = vmatprep.subr.bf16.mxu1 (!%p468_p10), %v2792_v16  ;;  %v2677_v50 = vld [vmem:[%s3289_s4 + $0x18] sm:$0xff] (!%p468_p10)   ;;  %v2678_v52 = vld [vmem:[%s3289_s4 + $0x20] sm:$0xff] (!%p468_p10)   ;;  %v2679_v53 = vld [vmem:[%s3289_s4 + $0x30] sm:$0xff] (!%p468_p10)  }
  0x1d   : > { %s522_s17 = scalar_select %p521_p11, %s2782_s21, 1  ;;  %v2343_v23 = vld [vmem:[%s3316_s2] ss:$0 sm:$0xff]  ;;  %v2680_v55 = vld [vmem:[%s3289_s4 + $0x28] sm:$0xff]   ;;  %v2681_v56 = vld [vmem:[%s3289_s4 + $0x38] sm:$0xff]  }
  0x1e   : > { %s2718_s2 = scalar_lea.vmem %s2717_s22, 256 }
  0x1f   : > { %s2240_s24 = sshll.u32 %s522_s17, 3 }
  0x20   : > { %s531_s26 = scalar_lea.vmem %s3314_s1, %s2240_s24  ;;  %s527_s15 = scalar_lea.vmem %s3315_s0, %s2240_s24 }
  0x21   : > { %v539_v0 = vld [vmem:[%s531_s26] sm:$0xff]  ;;  %s2340_s26 = sshll.u32 %s2782_s21, 7  ;;  %s3317_s0 = sld [smem:[#allocation13_spill]] }
  0x22   : > { %v2938_v1 = vld [vmem:[%s527_s15] sm:$0xff]  ;;  %v541_v2 = vsel %vm540_vm0, %v539_v0, 0.0  ;;  %s2239_s15 = sshll.u32 %s518_s29, 3  ;;  %s2137_s21 = scalar_lea.sflag [#allocation5], %s518_s29 }
  0x23   : > { %v1052_v3 = vsel %vm540_vm0, %v2938_v1, 0.0  ;;  %542 = vadd.xlane.f32.xlu0 %v541_v2  ;;  %s520_s27 = scalar_lea.vmem [#allocation4], %s2239_s15 }
  0x24   : > { %s2151_s17 = sshll.u32 %s520_s27, 4  ;;  %s3239_s17 = int_to_ptr.vmem [resolvable:$true] %s2151_s17 }
  0x25   : > { %s2712_s15 = scalar_lea.vmem %s3239_s17, 128  ;;  %p2719_p1 = scmp.lt.s32.totalorder %s3239_s17, %s2717_s22 }
  0x26   : > { %p2713_p12 = scmp.ne.s32.totalorder %s3239_s17, %s2712_s15  ;;  %p2720_p2 = scmp.lt.s32.totalorder %s2718_s2, %s2712_s15 }
  0x27   : > { %1053 = vadd.xlane.f32.xlu0 %v1052_v3  ;;  %s3237_s1 = scalar_lea.hbm %s3317_s0, %s2340_s26 }
  0x28   : > { %p2714_p13 = pnand %p2713_p12, %p2915_p4  ;;  %p2721_p3 = por %p2720_p2, %p2719_p1 }
  0x2a   : > { %p2715_p0 = pneg %p2714_p13 }
  0x2c   : > { %p2722_p5 = pnand %p2721_p3, %p2715_p0 }
  0xb0   : > { %v543_v4 = vpop.xlane.xlu0 %542 }
  0xb1   : > { %v545_v5 = vmul.f32 0.03125, %v543_v4 }
  0xb3   : > { %v546_v6 = vsub.f32 %v539_v0, %v545_v5 }
  0xb4   : > { %v1054_v7 = vpop.xlane.xlu0 %1053 }
  0xb5   : > { %v1056_v8 = vmul.f32 0.03125, %v1054_v7  ;;  %v547_v9 = vmul.f32 %v546_v6, %v546_v6 }
  0xb7   : > { %v2944_v10 = vsub.f32 %v2938_v1, %v1056_v8  ;;  %v548_v11 = vsel %vm540_vm0, %v547_v9, 0.0 }
  0xb8   : > { %549 = vadd.xlane.f32.xlu1 %v548_v11 }
  0xb9   : > { %v1058_v12 = vmul.f32 %v2944_v10, %v2944_v10 }
  0xbb   : > { %v1059_v13 = vsel %vm540_vm0, %v1058_v12, 0.0 }
  0xbc   : > { %1060 = vadd.xlane.f32.xlu1 %v1059_v13 }
 0x145   : > { %v550_v19 = vpop.xlane.xlu1 %549 }
 0x146   : > { %v551_v20 = vmul.f32 0.03125, %v550_v19 }
 0x148   : > { %v552_v21 = vadd.f32 1e-05, %v551_v20 }
 0x149   : > { %v1061_v27 = vpop.xlane.xlu1 %1060 }
 0x14a   : > { %2688 = vrsqrt.f32 %v552_v21  ;;  %v1062_v29 = vmul.f32 0.03125, %v1061_v27 }
 0x14c   : > { %v1063_v33 = vadd.f32 1e-05, %v1062_v29 }
 0x14e   : > { %2690 = vrsqrt.f32 %v1063_v33 }
 0x154   : > { %v2689_v22 = vpop.eup %2688 }
 0x155   : > { %v554_v24 = vmul.f32 %v2689_v22, %v546_v6 }
 0x157   : > { %v561_v26 = vmul.f32 %v2343_v23, %v554_v24 }
 0x158   : > { %v2691_v42 = vpop.eup %2690 }
 0x159   : > { %v568_v28 = vadd.f32 %v2978_v25, %v561_v26  ;;  %v1065_v45 = vmul.f32 %v2691_v42, %v2944_v10 }
 0x15b   : > { %v569_v32 = vpack.c.bf16 %v568_v28, %v568_v28  ;;  %v1072_v48 = vmul.f32 %v2343_v23, %v1065_v45 }
 0x15d   : > { %2418 = vmatmul.mubr.msk.bf16.vlgmr.msra.gmra.mrb[0].mxu0 %vm540_vm0, %v569_v32  ;;  %2426 = vmatmul.mubr.msk.bf16.vlgmr.msra.gmra.mrb[0].mxu1 %vm540_vm0, %v569_v32  ;;  %v1079_v51 = vadd.f32 %v2978_v25, %v1072_v48 }
 0x15e   : > { %2430 = vmatpush3.bf16.msra.mxu0 %v2662_v30  ;;  %2438 = vmatpush3.bf16.msra.mxu1 %v2663_v31 }
 0x15f   : > { %2431 = vmatprep.subr.bf16.mxu0 %v2792_v16  ;;  %2439 = vmatprep.subr.bf16.mxu1 %v2792_v16  ;;  %v1080_v54 = vpack.c.bf16 %v1079_v51, %v1079_v51 }
 0x160   : > { %2433 = vmatprep.mubr.msk.bf16.mxu0 %vm2793_vm1, %v2792_v16  ;;  %2441 = vmatprep.mubr.msk.bf16.mxu1 %vm2793_vm1, %v2792_v16 }
 0x162   : > { %2432 = vmatpush3.bf16.msra.mxu0 %v2664_v34  ;;  %2440 = vmatpush3.bf16.msra.mxu1 %v2665_v35 }
 0x163   : > { %2445 = vmatprep.subr.bf16.mxu0 %v2792_v16  ;;  %2453 = vmatprep.subr.bf16.mxu1 %v2792_v16 }
 0x165   : > { %2434 = vmatmul.mubr.msk.bf16.vlgmr.msra.gmra.mrb[4].mxu0 %vm540_vm0, %v569_v32  ;;  %2442 = vmatmul.mubr.msk.bf16.vlgmr.msra.gmra.mrb[4].mxu1 %vm540_vm0, %v569_v32 }
 0x166   : > { %2446 = vmatpush3.bf16.msra.mxu0 %v2666_v36  ;;  %2454 = vmatpush3.bf16.msra.mxu1 %v2667_v37 }
 0x167   : > { %2447 = vmatprep.subr.bf16.mxu0 %v2792_v16  ;;  %2455 = vmatprep.subr.bf16.mxu1 %v2792_v16 }
 0x168   : > { %2449 = vmatprep.mubr.msk.bf16.mxu0 %vm2793_vm1, %v2792_v16  ;;  %2457 = vmatprep.mubr.msk.bf16.mxu1 %vm2793_vm1, %v2792_v16 }
 0x16a   : > { %2448 = vmatpush3.bf16.msra.mxu0 %v2668_v38  ;;  %2456 = vmatpush3.bf16.msra.mxu1 %v2669_v39 }
 0x16b   : > { %2461 = vmatprep.subr.bf16.mxu0 %v2792_v16  ;;  %2469 = vmatprep.subr.bf16.mxu1 %v2792_v16 }
 0x16d   : > { %2450 = vmatmul.mubr.msk.bf16.vlgmr.msra.gmra.mrb[8].mxu0 %vm540_vm0, %v569_v32  ;;  %2458 = vmatmul.mubr.msk.bf16.vlgmr.msra.gmra.mrb[8].mxu1 %vm540_vm0, %v569_v32 }
 0x16e   : > { %2462 = vmatpush3.bf16.msra.mxu0 %v2670_v40  ;;  %2470 = vmatpush3.bf16.msra.mxu1 %v2671_v41 }
 0x16f   : > { %2463 = vmatprep.subr.bf16.mxu0 %v2792_v16  ;;  %2471 = vmatprep.subr.bf16.mxu1 %v2792_v16 }
 0x170   : > { %2465 = vmatprep.mubr.msk.bf16.mxu0 %vm2793_vm1, %v2792_v16  ;;  %2473 = vmatprep.mubr.msk.bf16.mxu1 %vm2793_vm1, %v2792_v16 }
 0x172   : > { %2464 = vmatpush3.bf16.msra.mxu0 %v2672_v43  ;;  %2472 = vmatpush3.bf16.msra.mxu1 %v2673_v44 }
 0x173   : > { %2477 = vmatprep.subr.bf16.mxu0 %v2792_v16  ;;  %2485 = vmatprep.subr.bf16.mxu1 %v2792_v16 }
 0x175   : > { %2466 = vmatmul.mubr.msk.bf16.vlgmr.msra.gmra.mrb[12].mxu0 %vm540_vm0, %v569_v32  ;;  %2474 = vmatmul.mubr.msk.bf16.vlgmr.msra.gmra.mrb[12].mxu1 %vm540_vm0, %v569_v32 }
 0x176   : > { %2478 = vmatpush3.bf16.msra.mxu0 %v2674_v46  ;;  %2486 = vmatpush3.bf16.msra.mxu1 %v2675_v47 }
 0x177   : > { %2479 = vmatprep.subr.bf16.mxu0 %v2792_v16  ;;  %2487 = vmatprep.subr.bf16.mxu1 %v2792_v16 }
 0x178   : > { %2481 = vmatprep.mubr.msk.bf16.mxu0 %vm2793_vm1, %v2792_v16  ;;  %2489 = vmatprep.mubr.msk.bf16.mxu1 %vm2793_vm1, %v2792_v16 }
 0x17a   : > { %2480 = vmatpush3.bf16.msra.mxu0 %v2676_v49  ;;  %2488 = vmatpush3.bf16.msra.mxu1 %v2677_v50 }
 0x17b   : > { %2493 = vmatprep.subr.bf16.mxu0 %v2792_v16  ;;  %2501 = vmatprep.subr.bf16.mxu1 %v2792_v16 }
 0x17d   : > { %2482 = vmatmul.mubr.msk.bf16.vlgmr.msra.gmra.mrb[16].mxu0 %vm540_vm0, %v1080_v54  ;;  %2490 = vmatmul.mubr.msk.bf16.vlgmr.msra.gmra.mrb[16].mxu1 %vm540_vm0, %v1080_v54 }
 0x17e   : > { %2494 = vmatpush3.bf16.msra.mxu0 %v2678_v52  ;;  %2502 = vmatpush3.bf16.msra.mxu1 %v2679_v53 }
 0x17f   : > { %2495 = vmatprep.subr.bf16.mxu0 %v2792_v16  ;;  %2503 = vmatprep.subr.bf16.mxu1 %v2792_v16 }
 0x180   : > { %2497 = vmatprep.mubr.msk.bf16.mxu0 %vm2793_vm1, %v2792_v16  ;;  %2505 = vmatprep.mubr.msk.bf16.mxu1 %vm2793_vm1, %v2792_v16 }
 0x182   : > { %2496 = vmatpush3.bf16.msra.mxu0 %v2680_v55  ;;  %2504 = vmatpush3.bf16.msra.mxu1 %v2681_v56 }
 0x183   : > { %2509 = vmatprep.subr.bf16.mxu0 %v2792_v16  ;;  %2515 = vmatprep.subr.bf16.mxu1 %v2792_v16 }
 0x185   : > { %2498 = vmatmul.mubr.msk.bf16.vlgmr.msra.gmra.mrb[20].mxu0 %vm540_vm0, %v1080_v54  ;;  %2506 = vmatmul.mubr.msk.bf16.vlgmr.msra.gmra.mrb[20].mxu1 %vm540_vm0, %v1080_v54 }
 0x186   : > { %2511 = vmatprep.mubr.msk.bf16.mxu0 %vm2793_vm1, %v2792_v16  ;;  %2517 = vmatprep.mubr.msk.bf16.mxu1 %vm2793_vm1, %v2792_v16 }
 0x230   : > { %v623_v57 = vpop.f32.mrb[0].mxu0  ;;  %v682_v58 = vpop.f32.mrb[0].mxu1 }
 0x231   : > { %v629_v59 = vpack.c.bf16 %v623_v57, %v623_v57  ;;  %v688_v60 = vpack.c.bf16 %v682_v58, %v682_v58  ;;  %v2419_v61 = vpop.f32.mrb[1].mxu0  ;;  %v2427_v62 = vpop.f32.mrb[1].mxu1 }
 0x232   : > { %v626_v63 = vpop.f32.mrb[2].mxu0  ;;  %v685_v0 = vpop.f32.mrb[2].mxu1 }
 0x233   : > { %631 = vst.msk [vmem:[#allocation2] sm:$0xf] %vm630_vm2, %v629_v59  ;;  %689 = vst.msk [vmem:[#allocation3] sm:$0xf] %vm630_vm2, %v688_v60  ;;  %v2420_v2 = vpop.f32.mrb[3].mxu0  ;;  %v2428_v3 = vpop.f32.mrb[3].mxu1 }
 0x238   : > { %v741_v4 = vpop.f32.mrb[4].mxu0  ;;  %v801_v5 = vpop.f32.mrb[4].mxu1 }
 0x239   : > { %v747_v6 = vpack.c.bf16 %v741_v4, %v741_v4  ;;  %v807_v7 = vpack.c.bf16 %v801_v5, %v801_v5  ;;  %v2435_v8 = vpop.f32.mrb[5].mxu0  ;;  %v2443_v9 = vpop.f32.mrb[5].mxu1 }
 0x23a   : > { %v744_v10 = vpop.f32.mrb[6].mxu0  ;;  %v804_v11 = vpop.f32.mrb[6].mxu1  ;;  %v1315_v12 = vld [vmem:[#allocation2] sm:$0xf]  ;;  %v1544_v55 = vld [vmem:[#allocation3] sm:$0xf] }
 0x23b   : > { %749 = vst.msk [vmem:[#allocation2 + $0x4] sm:$0xf] %vm630_vm2, %v747_v6  ;;  %809 = vst.msk [vmem:[#allocation3 + $0x4] sm:$0xf] %vm630_vm2, %v807_v7  ;;  %v2436_v13 = vpop.f32.mrb[7].mxu0  ;;  %v2444_v14 = vpop.f32.mrb[7].mxu1 }
 0x23c   : > { %v1324_v15 = vsel %vm1319_vm3, %v1315_v12, 0  ;;  %v1553_v2 = vsel %vm1551_vm4, %v1544_v55, 0 }
 0x23d   : > { %2510 = vmatpush3.bf16.xpose.msra.mxu0 %v1324_v15 }
 0x23e   : > { %2521 = vmatprep.subr.bf16.mxu0 %v2792_v16 }
 0x240   : > { %v861_v17 = vpop.f32.mrb[8].mxu0  ;;  %v921_v18 = vpop.f32.mrb[8].mxu1 }
 0x241   : > { %v867_v19 = vpack.c.bf16 %v861_v17, %v861_v17  ;;  %v927_v20 = vpack.c.bf16 %v921_v18, %v921_v18  ;;  %v2451_v21 = vpop.f32.mrb[9].mxu0  ;;  %v2459_v22 = vpop.f32.mrb[9].mxu1 }
 0x242   : > { %v864_v23 = vpop.f32.mrb[10].mxu0  ;;  %v924_v24 = vpop.f32.mrb[10].mxu1  ;;  %v1316_v25 = vld [vmem:[#allocation2 + $0x4] sm:$0xf]  ;;  %v1545_v56 = vld [vmem:[#allocation3 + $0x4] sm:$0xf] }
 0x243   : > { %869 = vst.msk [vmem:[#allocation2 + $0x8] sm:$0xf] %vm630_vm2, %v867_v19  ;;  %929 = vst.msk [vmem:[#allocation3 + $0x8] sm:$0xf] %vm630_vm2, %v927_v20  ;;  %v2452_v26 = vpop.f32.mrb[11].mxu0  ;;  %v2460_v27 = vpop.f32.mrb[11].mxu1 }
 0x244   : > { %v1370_v28 = vsel %vm1319_vm3, %v1316_v25, 0  ;;  %v1599_v3 = vsel %vm1551_vm4, %v1545_v56, 0 }
 0x245   : > { %2516 = vmatpush3.bf16.xpose.msra.mxu1 %v1370_v28 }
 0x246   : > { %2527 = vmatprep.subr.bf16.mxu1 %v2792_v16 }
 0x248   : > { %v981_v29 = vpop.f32.mrb[12].mxu0  ;;  %v1041_v30 = vpop.f32.mrb[12].mxu1 }
 0x249   : > { %v987_v31 = vpack.c.bf16 %v981_v29, %v981_v29  ;;  %v1047_v32 = vpack.c.bf16 %v1041_v30, %v1041_v30  ;;  %v2467_v33 = vpop.f32.mrb[13].mxu0  ;;  %v2475_v34 = vpop.f32.mrb[13].mxu1 }
 0x24a   : > { %v984_v35 = vpop.f32.mrb[14].mxu0  ;;  %v1044_v36 = vpop.f32.mrb[14].mxu1  ;;  %v1317_v41 = vld [vmem:[#allocation2 + $0x8] sm:$0xf] }
 0x24b   : > { %989 = vst.msk [vmem:[#allocation2 + $0xc] sm:$0xf] %vm630_vm2, %v987_v31  ;;  %1049 = vst.msk [vmem:[#allocation3 + $0xc] sm:$0xf] %vm630_vm2, %v1047_v32  ;;  %v2468_v37 = vpop.f32.mrb[15].mxu0  ;;  %v2476_v38 = vpop.f32.mrb[15].mxu1 }
 0x24c   : > { %v1416_v51 = vsel %vm1319_vm3, %v1317_v41, 0 }
 0x250   : > { %v1134_v39 = vpop.f32.mrb[16].mxu0  ;;  %v1192_v40 = vpop.f32.mrb[16].mxu1 }
 0x251   : > { %v1140_v42 = vpack.c.bf16 %v1134_v39, %v1134_v39  ;;  %v1198_v43 = vpack.c.bf16 %v1192_v40, %v1192_v40  ;;  %v2483_v44 = vpop.f32.mrb[17].mxu0  ;;  %v2491_v45 = vpop.f32.mrb[17].mxu1 }
 0x252   : > { %v1137_v46 = vpop.f32.mrb[18].mxu0  ;;  %v1195_v47 = vpop.f32.mrb[18].mxu1  ;;  %v1318_v48 = vld [vmem:[#allocation2 + $0xc] sm:$0xf]  ;;  %v1547_v38 = vld [vmem:[#allocation3 + $0xc] sm:$0xf] }
 0x253   : > { %v2484_v49 = vpop.f32.mrb[19].mxu0  ;;  %v2492_v50 = vpop.f32.mrb[19].mxu1  ;;  %2512 = vmatmul.mubr.msk.bf16.vlgmr.msra.gmra.mrb[24].mxu0 %vm1319_vm3, %v1140_v42  ;;  %2518 = vmatmul.mubr.msk.bf16.vlgmr.msra.gmra.mrb[24].mxu1 %vm1319_vm3, %v1198_v43  ;;  %v1462_v52 = vsel %vm1319_vm3, %v1318_v48, 0  ;;  %v1546_v42 = vld [vmem:[#allocation3 + $0x8] sm:$0xf]  ;;  %v1691_v45 = vsel %vm1551_vm4, %v1547_v38, 0 }
 0x254   : > { %2522 = vmatpush3.bf16.xpose.msra.mxu0 %v1416_v51  ;;  %2528 = vmatpush3.bf16.xpose.msra.mxu1 %v1462_v52  ;;  %v1645_v46 = vsel %vm1551_vm4, %v1546_v42, 0 }
 0x255   : > { %2523 = vmatprep.mubr.msk.bf16.mxu0 %vm2793_vm1, %v2792_v16  ;;  %2529 = vmatprep.mubr.msk.bf16.mxu1 %vm2793_vm1, %v2792_v16 }
 0x256   : > { %2533 = vmatprep.subr.bf16.mxu0 %v2792_v16  ;;  %2539 = vmatprep.subr.bf16.mxu1 %v2792_v16 }
 0x258   : > { %v1250_v53 = vpop.f32.mrb[20].mxu0  ;;  %v1308_v54 = vpop.f32.mrb[20].mxu1 }
 0x259   : > { %v1256_v57 = vpack.c.bf16 %v1250_v53, %v1250_v53  ;;  %v1314_v58 = vpack.c.bf16 %v1308_v54, %v1308_v54  ;;  %v2499_v59 = vpop.f32.mrb[21].mxu0  ;;  %v2507_v60 = vpop.f32.mrb[21].mxu1  ;;  %v1745_v53 = vld [vmem:[%s3292_s7] sm:$0xf]  ;;  %v1746_v54 = vld [vmem:[%s3292_s7 + $0x4] sm:$0xf] }
 0x25a   : > { %v1253_v61 = vpop.f32.mrb[22].mxu0  ;;  %v1311_v62 = vpop.f32.mrb[22].mxu1  ;;  %v1753_v55 = vsel %vm1551_vm4, %v1745_v53, 0  ;;  %v1799_v56 = vsel %vm1551_vm4, %v1746_v54, 0 }
 0x25b   : > { %v2500_v63 = vpop.f32.mrb[23].mxu0  ;;  %v2508_v0 = vpop.f32.mrb[23].mxu1  ;;  %2524 = vmatmul.mubr.msk.bf16.vlgmr.msra.gmra.mrb[28].mxu0 %vm1319_vm3, %v1256_v57  ;;  %2530 = vmatmul.mubr.msk.bf16.vlgmr.msra.gmra.mrb[28].mxu1 %vm1319_vm3, %v1314_v58 }
 0x25c   : > { %2534 = vmatpush3.bf16.msra.mxu0 %v1553_v2  ;;  %2540 = vmatpush3.bf16.msra.mxu1 %v1599_v3  ;;  %v1748_v63 = vld [vmem:[%s3292_s7 + $0xc] sm:$0xf] }
 0x25d   : > { %2541 = vmatprep.mubr.msk.bf16.mxu1 %vm2793_vm1, %v2792_v16  ;;  %2551 = vmatprep.subr.bf16.mxu1 %v2792_v16 }
 0x25e   : > { %2535 = vmatprep.mubr.msk.bf16.mxu0 %vm2793_vm1, %v2792_v16  ;;  %2545 = vmatprep.subr.bf16.mxu0 %v2792_v16 }
 0x326   : > { %v1360_v4 = vpop.f32.mrb[24].mxu0  ;;  %v1406_v5 = vpop.f32.mrb[24].mxu1 }
 0x327   : > { %v2513_v6 = vpop.f32.mrb[25].mxu0  ;;  %v2519_v7 = vpop.f32.mrb[25].mxu1  ;;  %v1507_v8 = vsel %vm1319_vm3, %v1406_v5, -inf  ;;  %v1504_v9 = vsel %vm1319_vm3, %v1360_v4, -inf }
 0x328   : > { %1508 = vmax.xlane.f32.xlu1 %v1507_v8  ;;  %v1409_v10 = vpop.f32.mrb[26].mxu1  ;;  %1505 = vmax.xlane.f32.xlu0 %v1504_v9  ;;  %v1363_v11 = vpop.f32.mrb[26].mxu0 }
 0x329   : > { %v2514_v12 = vpop.f32.mrb[27].mxu0  ;;  %v2520_v13 = vpop.f32.mrb[27].mxu1 }
 0x32a   : > { %v1891_v12 = vsel %vm1551_vm4, %v1748_v63, 0  ;;  %v2682_v63 = vld [vmem:[%s3296_s11] sm:$0xff]  }
 0x32e   : > { %v1452_v14 = vpop.f32.mrb[28].mxu0  ;;  %v1498_v15 = vpop.f32.mrb[28].mxu1 }
 0x32f   : > { %v2525_v17 = vpop.f32.mrb[29].mxu0  ;;  %v2531_v18 = vpop.f32.mrb[29].mxu1  ;;  %v1513_v19 = vsel %vm1319_vm3, %v1498_v15, -inf  ;;  %v1510_v20 = vsel %vm1319_vm3, %v1452_v14, -inf }
 0x330   : > { %1514 = vmax.xlane.f32.xlu1 %v1513_v19  ;;  %v1501_v21 = vpop.f32.mrb[30].mxu1  ;;  %1511 = vmax.xlane.f32.xlu0 %v1510_v20  ;;  %v1455_v22 = vpop.f32.mrb[30].mxu0 }
 0x331   : > { %v2526_v23 = vpop.f32.mrb[31].mxu0  ;;  %v2532_v24 = vpop.f32.mrb[31].mxu1 }
 0x3b5   : > { %v1509_v25 = vpop.xlane.xlu1 %1508  ;;  %v1506_v26 = vpop.xlane.xlu0 %1505 }
 0x3b6   : > { %v1517_v27 = vsub.f32 %v1406_v5, %v1509_v25  ;;  %v1516_v28 = vsub.f32 %v1360_v4, %v1506_v26  ;;  %v1747_v5 = vld [vmem:[%s3292_s7 + $0x8] sm:$0xf] }
 0x3b8   : > { %v1522_v29 = vmul.f32 1.442695, %v1517_v27  ;;  %v1520_v30 = vmul.f32 1.442695, %v1516_v28 }
 0x3ba   : > { %2692 = vpow2.f32 %v1522_v29 }
 0x3bb   : > { %2694 = vpow2.f32 %v1520_v30 }
 0x3bd   : > { %v1515_v31 = vpop.xlane.xlu1 %1514  ;;  %v1512_v32 = vpop.xlane.xlu0 %1511 }
 0x3be   : > { %v1519_v33 = vsub.f32 %v1498_v15, %v1515_v31  ;;  %v1518_v34 = vsub.f32 %v1452_v14, %v1512_v32  ;;  %v1845_v15 = vsel %vm1551_vm4, %v1747_v5, 0  ;;  %v2327_v5 = vld [vmem:[%s3294_s9] ss:$0 sm:$0xff] }
 0x3c0   : > { %v1526_v35 = vmul.f32 1.442695, %v1519_v33  ;;  %v1524_v36 = vmul.f32 1.442695, %v1518_v34 }
 0x3c2   : > { %2696 = vpow2.f32 %v1526_v35 }
 0x3c3   : > { %2698 = vpow2.f32 %v1524_v36 }
 0x3c4   : > { %v2693_v37 = vpop.eup %2692 }
 0x3c5   : > { %v2695_v39 = vpop.eup %2694  ;;  %v1531_v40 = vsel %vm1319_vm3, %v2693_v37, 0.0  ;;  %v1541_v41 = vpack.c.bf16 %v2693_v37, %v2693_v37 }
 0x3c6   : > { %1532 = vadd.xlane.f32.xlu1 %v1531_v40  ;;  %v1528_v43 = vsel %vm1319_vm3, %v2695_v39, 0.0  ;;  %v1540_v44 = vpack.c.bf16 %v2695_v39, %v2695_v39 }
 0x3c7   : > { %1529 = vadd.xlane.f32.xlu0 %v1528_v43  ;;  %2542 = vmatmul.mubr.msk.bf16.vlgmr.msra.gmra.mrb[32].mxu1 %vm1319_vm3, %v1541_v41 }
 0x3c8   : > { %2536 = vmatmul.mubr.msk.bf16.vlgmr.msra.gmra.mrb[32].mxu0 %vm1319_vm3, %v1540_v44  ;;  %2552 = vmatpush3.bf16.msra.mxu1 %v1691_v45 }
 0x3c9   : > { %2546 = vmatpush3.bf16.msra.mxu0 %v1645_v46  ;;  %2553 = vmatprep.mubr.msk.bf16.mxu1 %vm2793_vm1, %v2792_v16 }
 0x3ca   : > { %2547 = vmatprep.mubr.msk.bf16.mxu0 %vm2793_vm1, %v2792_v16  ;;  %2557 = vmatprep.subr.bf16.mxu0 %v2792_v16 }
 0x3cb   : > { %2563 = vmatprep.subr.bf16.mxu1 %v2792_v16 }
 0x3cc   : > { %v2697_v47 = vpop.eup %2696 }
 0x3cd   : > { %v2699_v48 = vpop.eup %2698  ;;  %v1537_v49 = vsel %vm1319_vm3, %v2697_v47, 0.0  ;;  %v1543_v50 = vpack.c.bf16 %v2697_v47, %v2697_v47 }
 0x3ce   : > { %1538 = vadd.xlane.f32.xlu1 %v1537_v49  ;;  %v1534_v51 = vsel %vm1319_vm3, %v2699_v48, 0.0  ;;  %v1542_v52 = vpack.c.bf16 %v2699_v48, %v2699_v48 }
 0x3cf   : > { %1535 = vadd.xlane.f32.xlu0 %v1534_v51  ;;  %2554 = vmatmul.mubr.msk.bf16.vlgmr.msra.gmra.mrb[36].mxu1 %vm1319_vm3, %v1543_v50 }
 0x3d0   : > { %2548 = vmatmul.mubr.msk.bf16.vlgmr.msra.gmra.mrb[36].mxu0 %vm1319_vm3, %v1542_v52  ;;  %2565 = vmatprep.mubr.msk.bf16.mxu1 %vm2793_vm1, %v2792_v16  ;;  %v2326_v52 = vld [vmem:[%s3293_s8] ss:$0 sm:$0xff] }
 0x3d1   : > { %2559 = vmatprep.mubr.msk.bf16.mxu0 %vm2793_vm1, %v2792_v16  ;;  %2558 = vmatpush3.bf16.msra.mxu0 %v1753_v55 }
 0x3d2   : > { %2564 = vmatpush3.bf16.msra.mxu1 %v1799_v56  ;;  %2569 = vmatprep.subr.bf16.mxu0 %v2792_v16 }
 0x3d3   : > { %2575 = vmatprep.subr.bf16.mxu1 %v2792_v16 }
 0x453   : > { %v1533_v57 = vpop.xlane.xlu1 %1532 }
 0x454   : > { %v1530_v58 = vpop.xlane.xlu0 %1529  ;;  %2700 = vrcp.f32 %v1533_v57 }
 0x455   : > { %2702 = vrcp.f32 %v1530_v58 }
 0x45b   : > { %v1539_v59 = vpop.xlane.xlu1 %1538 }
 0x45c   : > { %v1536_v60 = vpop.xlane.xlu0 %1535  ;;  %2704 = vrcp.f32 %v1539_v59 }
 0x45d   : > { %2706 = vrcp.f32 %v1536_v60 }
 0x45e   : > { %v2701_v61 = vpop.eup %2700 }
 0x45f   : > { %v2703_v0 = vpop.eup %2702 }
 0x466   : > { %v2705_v17 = vpop.eup %2704 }
 0x467   : > { %v2707_v19 = vpop.eup %2706 }
 0x49a   : > { %v1635_v62 = vpop.f32.mrb[32].mxu1 }
 0x49b   : > { %v1589_v2 = vpop.f32.mrb[32].mxu0  ;;  %v1738_v3 = vmul.f32 %v2701_v61, %v1635_v62  ;;  %v2543_v4 = vpop.f32.mrb[33].mxu1 }
 0x49c   : > { %v1737_v6 = vmul.f32 %v2703_v0, %v1589_v2  ;;  %v2537_v7 = vpop.f32.mrb[33].mxu0  ;;  %v1638_v8 = vpop.f32.mrb[34].mxu1  ;;  %v2683_v0 = vld [vmem:[%s3296_s11 + $0x8] sm:$0xff]  }
 0x49d   : > { %v1742_v9 = vpack.c.bf16 %v1738_v3, %v1738_v3  ;;  %v1592_v10 = vpop.f32.mrb[34].mxu0  ;;  %v2544_v11 = vpop.f32.mrb[35].mxu1  ;;  %v2328_v7 = vld [vmem:[%s3295_s10] ss:$0 sm:$0xff] }
 0x49e   : > { %v1741_v13 = vpack.c.bf16 %v1737_v6, %v1737_v6  ;;  %v2538_v14 = vpop.f32.mrb[35].mxu0  ;;  %v2684_v11 = vld [vmem:[%s3298_s13] sm:$0xff]  }
 0x49f   : > { %2566 = vmatmul.mubr.msk.bf16.vlgmr.msra.gmra.mrb[40].mxu1 %vm1319_vm3, %v1742_v9  ;;  %v2687_v14 = vld [vmem:[%s3298_s13 + $0x18] sm:$0xff]  }
 0x4a0   : > { %2560 = vmatmul.mubr.msk.bf16.vlgmr.msra.gmra.mrb[40].mxu0 %vm1319_vm3, %v1741_v13  ;;  %2576 = vmatpush3.bf16.msra.mxu1 %v1891_v12  ;;  %v2685_v12 = vld [vmem:[%s3298_s13 + $0x8] sm:$0xff]   ;;  %v2686_v13 = vld [vmem:[%s3298_s13 + $0x10] sm:$0xff]  }
 0x4a1   : > { %2570 = vmatpush3.bf16.msra.mxu0 %v1845_v15  ;;  %2571 = vmatprep.mubr.msk.bf16.mxu0 %vm2793_vm1, %v2792_v16  ;;  %v2329_v15 = vld [vmem:[%s3297_s12] ss:$0 sm:$0xff] }
 0x4a2   : > { %v1727_v18 = vpop.f32.mrb[36].mxu1  ;;  %2577 = vmatprep.mubr.msk.bf16.mxu1 %vm2793_vm1, %v2792_v16  ;;  %2581 = vmatprep.subr.bf16.mxu0 %v2792_v16 }
 0x4a3   : > { %v1681_v20 = vpop.f32.mrb[36].mxu0  ;;  %v1740_v21 = vmul.f32 %v2705_v17, %v1727_v18  ;;  %v2555_v22 = vpop.f32.mrb[37].mxu1  ;;  %2589 = vmatprep.subr.bf16.mxu1 %v2792_v16 }
 0x4a4   : > { %v1739_v23 = vmul.f32 %v2707_v19, %v1681_v20  ;;  %v2549_v24 = vpop.f32.mrb[37].mxu0  ;;  %v1730_v25 = vpop.f32.mrb[38].mxu1 }
 0x4a5   : > { %v1744_v26 = vpack.c.bf16 %v1740_v21, %v1740_v21  ;;  %v1684_v27 = vpop.f32.mrb[38].mxu0  ;;  %v2556_v28 = vpop.f32.mrb[39].mxu1 }
 0x4a6   : > { %v1743_v29 = vpack.c.bf16 %v1739_v23, %v1739_v23  ;;  %v2550_v30 = vpop.f32.mrb[39].mxu0  ;;  %v2333_v27 = vld [vmem:[%s3299_s14] ss:$0 sm:$0xff] }
 0x4a7   : > { %2578 = vmatmul.mubr.msk.bf16.vlgmr.msra.gmra.mrb[44].mxu1 %vm1319_vm3, %v1744_v26 }
 0x4a8   : > { %2572 = vmatmul.mubr.msk.bf16.vlgmr.msra.gmra.mrb[44].mxu0 %vm1319_vm3, %v1743_v29  ;;  %2597 = vmatprep.mubr.msk.bf16.mxu1 %vm2793_vm1, %v2792_v16 }
 0x4a9   : > { %2585 = vmatprep.mubr.msk.bf16.mxu0 %vm2793_vm1, %v2792_v16  ;;  %2582 = vmatpush3.bf16.msra.mxu0 %v2682_v63 }
 0x4aa   : > { %2583 = vmatprep.subr.bf16.mxu0 %v2792_v16  ;;  %2590 = vmatpush3.bf16.msra.mxu1 %v2684_v11 }
 0x4ab   : > { %2591 = vmatprep.subr.bf16.mxu1 %v2792_v16 }
 0x4ad   : > { %2584 = vmatpush3.bf16.msra.mxu0 %v2683_v0 }
 0x4ae   : > { %2592 = vmatpush3.bf16.msra.mxu1 %v2685_v12 }
 0x4af   : > { %2593 = vmatprep.subr.bf16.mxu1 %v2792_v16 }
 0x4b2   : > { %2594 = vmatpush3.bf16.msra.mxu1 %v2686_v13 }
 0x4b3   : > { %2595 = vmatprep.subr.bf16.mxu1 %v2792_v16 }
 0x4b6   : > { %2596 = vmatpush3.bf16.msra.mxu1 %v2687_v14 }
 0x572   : > { %v1835_v31 = vpop.f32.mrb[40].mxu1 }
 0x573   : > { %v1789_v32 = vpop.f32.mrb[40].mxu0  ;;  %v1934_v33 = vsel %vm540_vm0, %v1835_v31, 0.0  ;;  %v2567_v34 = vpop.f32.mrb[41].mxu1 }
 0x574   : > { %v1933_v35 = vsel %vm540_vm0, %v1789_v32, 0.0  ;;  %v2561_v36 = vpop.f32.mrb[41].mxu0  ;;  %v1838_v37 = vpop.f32.mrb[42].mxu1 }
 0x575   : > { %v1935_v38 = vadd.f32 %v1934_v33, %v1933_v35  ;;  %v1792_v39 = vpop.f32.mrb[42].mxu0  ;;  %v2568_v40 = vpop.f32.mrb[43].mxu1 }
 0x576   : > { %v2562_v41 = vpop.f32.mrb[43].mxu0 }
 0x57a   : > { %v1927_v42 = vpop.f32.mrb[44].mxu1 }
 0x57b   : > { %v1881_v43 = vpop.f32.mrb[44].mxu0  ;;  %v2579_v44 = vpop.f32.mrb[45].mxu1  ;;  %v1938_v51 = vsel %vm540_vm0, %v1927_v42, 0.0 }
 0x57c   : > { %v1936_v45 = vsel %vm540_vm0, %v1881_v43, 0.0  ;;  %v2573_v46 = vpop.f32.mrb[45].mxu0  ;;  %v1930_v47 = vpop.f32.mrb[46].mxu1 }
 0x57d   : > { %v1937_v48 = vadd.f32 %v1936_v45, %v1935_v38  ;;  %v1884_v49 = vpop.f32.mrb[46].mxu0  ;;  %v2580_v50 = vpop.f32.mrb[47].mxu1 }
 0x57e   : > { %v2574_v53 = vpop.f32.mrb[47].mxu0 }
 0x57f   : > { %v1939_v54 = vadd.f32 %v1938_v51, %v1937_v48 }
 0x581   : > { %v1947_v55 = vadd.f32 %v2326_v52, %v1939_v54 }
 0x583   : > { %v1948_v56 = vadd.f32 %v1947_v55, %v2938_v1 }
 0x585   : > { %v1951_v57 = vsel %vm540_vm0, %v1948_v56, 0.0 }
 0x586   : > { %1952 = vadd.xlane.f32.xlu0 %v1951_v57 }
 0x613   : > { %v1953_v58 = vpop.xlane.xlu0 %1952 }
 0x614   : > { %v1954_v59 = vmul.f32 0.03125, %v1953_v58 }
 0x616   : > { %v1955_v60 = vsub.f32 %v1948_v56, %v1954_v59 }
 0x618   : > { %v1956_v61 = vmul.f32 %v1955_v60, %v1955_v60 }
 0x61a   : > { %v1957_v62 = vsel %vm540_vm0, %v1956_v61, 0.0 }
 0x61b   : > { %1958 = vadd.xlane.f32.xlu1 %v1957_v62 }
 0x6a8   : > { %v1959_v1 = vpop.xlane.xlu1 %1958 }
 0x6a9   : > { %v1960_v2 = vmul.f32 0.03125, %v1959_v1 }
 0x6ab   : > { %v1961_v3 = vadd.f32 1e-05, %v1960_v2 }
 0x6ad   : > { %2708 = vrsqrt.f32 %v1961_v3 }
 0x6b7   : > { %v2709_v4 = vpop.eup %2708 }
 0x6b8   : > { %v1963_v6 = vmul.f32 %v2709_v4, %v1955_v60 }
 0x6ba   : > { %v1970_v8 = vmul.f32 %v2327_v5, %v1963_v6 }
 0x6bc   : > { %v1977_v9 = vadd.f32 %v2328_v7, %v1970_v8 }
 0x6be   : > { %v1978_v10 = vpack.c.bf16 %v1977_v9, %v1977_v9 }
 0x6c0   : > { %2586 = vmatmul.mubr.msk.bf16.vlgmr.msra.gmra.mrb[48].mxu0 %vm540_vm0, %v1978_v10 }
 0x793   : > { %v2039_v17 = vpop.f32.mrb[48].mxu0 }
 0x794   : > { %v2040_v18 = vadd.f32 %v2329_v15, %v2039_v17  ;;  %v2587_v19 = vpop.f32.mrb[49].mxu0 }
 0x795   : > { %v2042_v20 = vpop.f32.mrb[50].mxu0 }
 0x796   : > { %v2046_v21 = vmul.f32 0.70710677, %v2040_v18  ;;  %v2588_v22 = vpop.f32.mrb[51].mxu0  ;;  %v2045_v16 = vmul.f32 0.5, %v2040_v18 }
 0x798   : > { %2710 = verf.f32 %v2046_v21 }
 0x7a2   : > { %v2711_v23 = vpop.eup %2710 }
 0x7a3   : > { %v2048_v24 = vadd.f32 1.0, %v2711_v23 }
 0x7a5   : > { %v2049_v25 = vmul.f32 %v2048_v24, %v2045_v16 }
 0x7a7   : > { %v2050_v26 = vpack.c.bf16 %v2049_v25, %v2049_v25 }
 0x7a9   : > { %2598 = vmatmul.mubr.msk.bf16.vlgmr.msra.gmra.mrb[48].mxu1 %vm2090_vm5, %v2050_v26 }
 0x87c   : > { %v2128_v28 = vpop.f32.mrb[48].mxu1 }
 0x87d   : > { %v2129_v29 = vadd.f32 %v2333_v27, %v2128_v28  ;;  %v2599_v30 = vpop.f32.mrb[49].mxu1 }
 0x87e   : > { %v2131_v31 = vpop.f32.mrb[50].mxu1 }
 0x87f   : > { %v2134_v32 = vadd.f32 %v2129_v29, %v1948_v56  ;;  %v2600_v33 = vpop.f32.mrb[51].mxu1 }
 0x881   : > { %2135 = vst.msk [vmem:[%s520_s27] sm:$0xff] %vm540_vm0, %v2134_v32 }
 0x882   : > { %2725 = shalt.err (!%p2722_p5)
}
 0x883   : > { %s2726_s29 = scalar_lea.hbm %s3237_s1, 128  ;;  %s2730_s24 = scalar_lea.hbm %s3317_s0, 256 }
 0x884   : > { %p2727_p6 = scmp.ne.s32.totalorder %s3237_s1, %s2726_s29  ;;  %p2731_p10 = scmp.lt.u32.totalorder %s3237_s1, %s3317_s0 }
 0x885   : > { %p2732_p11 = scmp.lt.u32.totalorder %s2730_s24, %s2726_s29  ;;  %p2734_p13 = scmp.lt.u32.totalorder %s2726_s29, %s3237_s1 }
 0x886   : > { %p2728_p7 = pnand %p2727_p6, %p2915_p4 }
 0x887   : > { %p2733_p12 = por %p2732_p11, %p2731_p10 }
 0x888   : > { %p2729_p9 = pneg %p2728_p7 }
 0x889   : > { %p2735_p0 = por %p2734_p13, %p2733_p12 }
 0x88b   : > { %p2736_p1 = pnand %p2735_p0, %p2729_p9 }
 0x88d   : > { %2739 = shalt.err (!%p2736_p1)
}
 0x88e   : > { %2601 = dma.vmem_to_hbm [thread:$0]  (%p2915_p4), %s3239_s17, 128, %s3237_s1, %s2137_s21  }
 0x88f PF: > { %s3318_s2 = sld [smem:[#allocation7_spill]]  ;;  %p2607_p2 = scmp.ge.s32.totalorder %s2790_s23, 2 }
 0x891   : > { %p2604_p3 = pnand %p2607_p2, %p2922_p8 }
 0x895   : > { %s2163_s15 = sand.u32 1, %s3318_s2  }
 0x896   : > { %s2164_s22 = scalar_lea.sflag [#allocation5], %s2163_s15 }
 0x897   : > { %2765 = dma.done.wait (!%p2604_p3), %s2164_s22, 128  }
 0x898   : > { %2767 = vsyncadd (!%p2604_p3), %s2164_s22, 4294967168  ;;  %s28_s23 = sadd.s32 1, %s2790_s23   ;;  %s3319_s21 = sld [smem:[#allocation8_spill]] }
 0x899   : > { %p25_p5 = scmp.ge.s32.totalorder %s28_s23, 4   ;;  %s3320_s22 = sld [smem:[#allocation9_spill]] }
 0x89a   : > { %s3321_s18 = smov %s2774_s19  ;;  %s3322_s19 = smov %s2778_s20 }
 0x89b   : > { %s3323_s20 = smov %s2928_s16  ;;  %27 = sbr.rel (!%p25_p5) target bundleno = 9 (0x9), region = 137 }
 0x8a2   :  { %2169 = vsyncpa [#allocation5], 1 }
 0x8a3   :  { %2171 = vsyncpa [#allocation5 + $0x1], 1 }

// kernel: tpu_custom_call.1
= control target key start
LH: loop header
LB: loop body
LE: loop exit
PB: predicated region body
PF: predicated region fallthrough
CT: control target
= control target key end

     0   :  { %s3285_s0 = inlined_call_operand.vmem [shape: f32[2,8,32], index: 0, kind: input, shape index: {}]   ;;  %s3286_s1 = inlined_call_operand.vmem [shape: f32[2,8,32], index: 1, kind: input, shape index: {}]   ;;  %s3287_s2 = inlined_call_operand.vmem [shape: f32[1,32], index: 2, kind: input, shape index: {}]   ;;  %s3288_s3 = inlined_call_operand.vmem [shape: f32[1,32], index: 3, kind: input, shape index: {}]   ;;  %s3289_s4 = inlined_call_operand.vmem [shape: bf16[4,32,8], index: 4, kind: input, shape index: {}]   ;;  %s3290_s5 = inlined_call_operand.vmem [shape: bf16[4,32,8], index: 5, kind: input, shape index: {}]   ;;  %s3291_s6 = inlined_call_operand.vmem [shape: bf16[4,32,8], index: 6, kind: input, shape index: {}]   ;;  %s3292_s7 = inlined_call_operand.vmem [shape: bf16[4,8,32], index: 7, kind: input, shape index: {}]   ;;  %s3293_s8 = inlined_call_operand.vmem [shape: f32[1,32], index: 8, kind: input, shape index: {}]   ;;  %s3294_s9 = inlined_call_operand.vmem [shape: f32[1,32], index: 9, kind: input, shape index: {}]   ;;  %s3295_s10 = inlined_call_operand.vmem [shape: f32[1,32], index: 10, kind: input, shape index: {}]   ;;  %s3296_s11 = inlined_call_operand.vmem [shape: bf16[32,64], index: 11, kind: input, shape index: {}]   ;;  %s3297_s12 = inlined_call_operand.vmem [shape: f32[1,64], index: 12, kind: input, shape index: {}]   ;;  %s3298_s13 = inlined_call_operand.vmem [shape: bf16[64,32], index: 13, kind: input, shape index: {}]   ;;  %s3299_s14 = inlined_call_operand.vmem [shape: f32[1,32], index: 14, kind: input, shape index: {}]   ;;  %s3300_s15 = inlined_call_operand.hbm [shape: f32[2,8,32], index: 15, kind: output, shape index: {}]  }
   0x1   :  { %3305 = sst [smem:[#allocation10_spill]] %s3285_s0 }
   0x2   :  { %3306 = sst [smem:[#allocation11_spill]] %s3286_s1 }
   0x3   :  { %3307 = sst [smem:[#allocation12_spill]] %s3287_s2 }
   0x4   :  { %3308 = sst [smem:[#allocation13_spill]] %s3300_s15 }
   0x5   :  { %20 = vsyncpa [#allocation5], 0 }
   0x6   :  { %22 = vsyncpa [#allocation5 + $0x1], 0  ;;  %s2875_s18 = smov 0   ;;  %s2877_s19 = smov 0  }
   0x7   :  { %s2879_s20 = smov 0   ;;  %s2881_s21 = smov 0  }
   0x8   :  { %s2883_s22 = smov 0   ;;  %s2885_s23 = smov 0  }
   0x9 LB: > { %3309 = sst [smem:[#allocation7_spill]] %s2770_s18  ;;  %s2234_s24 = sadd.s32 4294967295, %s2790_s23   ;;  %s2790_s23 = sphi %s2885_s23, %s28_s23   ;;  %s2786_s22 = sphi %s2883_s22, %s3320_s22   ;;  %s2782_s21 = sphi %s2881_s21, %s3319_s21   ;;  %s2778_s20 = sphi %s2879_s20, %s3323_s20   ;;  %s2774_s19 = sphi %s2877_s19, %s3322_s19   ;;  %s2770_s18 = sphi %s2875_s18, %s3321_s18  }
   0xa   : > { %3310 = sst [smem:[#allocation8_spill]] %s2786_s22  ;;  %s2235_s25 = sadd.s32 4294967294, %s2790_s23  }
   0xb   : > { %s40_s26 = sadd.s32 1, %s2786_s22  ;;  %s376_s27 = sadd.s32 1, %s2778_s20 }
   0xc   : > { %p42_p0 = scmp.ge.s32.totalorder %s40_s26, 2  ;;  %p386_p1 = scmp.ne.s32.totalorder %s2778_s20, %s2774_s19 }
   0xd   : > { %p387_p2 = scmp.eq.s32.totalorder %s2234_s24, 1  ;;  %p392_p3 = scmp.ne.s32.totalorder %s2774_s19, %s2770_s18 }
   0xe   : > { %s3325_s26 = smov (%p42_p0, %s40_s26), 0  ;;  %p393_p5 = scmp.eq.s32.totalorder %s2235_s25, 1 }
   0xf   : > { %3311 = sst [smem:[#allocation9_spill]] %s3325_s26  ;;  %p2915_p4 = por %p387_p2, %p386_p1 }
  0x10   : > { %s371_s29 = ssub.s32 %s2786_s22, %s3325_s26  ;;  %p2238_p6 = scmp.ge.s32.totalorder %s2790_s23, 1 }
  0x11   : > { %p374_p7 = scmp.eq.s32.totalorder %s371_s29, 0  ;;  %p2922_p8 = por %p393_p5, %p392_p3 }
  0x12   : > { %p467_p9 = scmp.lt.s32.totalorder %s2790_s23, 3 }
  0x13   : > { %s2928_s16 = scalar_select %p374_p7, %s2778_s20, %s376_s27  }
  0x14   : > { %p468_p10 = pnand %p2238_p6, %p467_p9 }
  0x15   : > { %p521_p11 = scmp.lt.s32.totalorder (!%p468_p10), %s2782_s21, 1  ;;  %vm540_vm0 = vcmask (!%p468_p10), 261120   ;;  %s3314_s1 = sld [smem:[#allocation11_spill]] (!%p468_p10)  ;;  %v2658_v14 = vld [vmem:[%s3290_s5] sm:$0xff] (!%p468_p10)   ;;  %v2792_v16 = vmov (!%p468_p10), 0.0   ;;  %v2660_v17 = vld [vmem:[%s3290_s5 + $0x8] sm:$0xff] (!%p468_p10)  }
  0x16   : > { %471 = sbr.rel (%p468_p10) target bundleno = 2191 (0x88f), region = 80  ;;  %s3315_s0 = sld [smem:[#allocation10_spill]] (!%p468_p10)  ;;  %v2659_v15 = vld [vmem:[%s3291_s6] sm:$0xff] (!%p468_p10)   ;;  %2413 = vmatprep.subr.bf16.mxu0 (!%p468_p10), %v2792_v16  ;;  %2421 = vmatprep.subr.bf16.mxu1 (!%p468_p10), %v2792_v16  ;;  %v2661_v18 = vld [vmem:[%s3291_s6 + $0x8] sm:$0xff] (!%p468_p10)   ;;  %vm2793_vm1 = vmmov (!%p468_p10), 0   ;;  %v2662_v30 = vld [vmem:[%s3290_s5 + $0x10] sm:$0xff] (!%p468_p10)  }
  0x17   : > { %2414 = vmatpush3.bf16.msra.mxu0 (!%p468_p10), %v2658_v14  ;;  %2422 = vmatpush3.bf16.msra.mxu1 (!%p468_p10), %v2659_v15  ;;  %s3316_s2 = sld [smem:[#allocation12_spill]] (!%p468_p10)  ;;  %v2978_v25 = vld [vmem:[%s3288_s3] ss:$0 sm:$0xff] (!%p468_p10)  ;;  %v2663_v31 = vld [vmem:[%s3291_s6 + $0x10] sm:$0xff] (!%p468_p10)   ;;  %v2664_v34 = vld [vmem:[%s3290_s5 + $0x18] sm:$0xff] (!%p468_p10)   ;;  %vm630_vm2 = vcmask (!%p468_p10), 60416  }
  0x18   : > { %2415 = vmatprep.subr.bf16.mxu0 (!%p468_p10), %v2792_v16  ;;  %2423 = vmatprep.subr.bf16.mxu1 (!%p468_p10), %v2792_v16  ;;  %v2665_v35 = vld [vmem:[%s3291_s6 + $0x18] sm:$0xff] (!%p468_p10)   ;;  %v2666_v36 = vld [vmem:[%s3290_s5 + $0x20] sm:$0xff] (!%p468_p10)   ;;  %v2668_v38 = vld [vmem:[%s3290_s5 + $0x28] sm:$0xff] (!%p468_p10)   ;;  %vm1319_vm3 = vcmask (!%p468_p10), 64512   ;;  %vm1551_vm4 = vcmask (!%p468_p10), 1043456   ;;  %vm2090_vm5 = vcmask (!%p468_p10), 523264  }
  0x19   : > { %2417 = vmatprep.mubr.msk.bf16.mxu0 (!%p468_p10), %vm2793_vm1, %v2792_v16  ;;  %2425 = vmatprep.mubr.msk.bf16.mxu1 (!%p468_p10), %vm2793_vm1, %v2792_v16  ;;  %v2667_v37 = vld [vmem:[%s3291_s6 + $0x20] sm:$0xff] (!%p468_p10)   ;;  %v2669_v39 = vld [vmem:[%s3291_s6 + $0x28] sm:$0xff] (!%p468_p10)   ;;  %v2670_v40 = vld [vmem:[%s3290_s5 + $0x30] sm:$0xff] (!%p468_p10)   ;;  %s518_s29 = sand.u32 (!%p468_p10), 1, %s2774_s19   ;;  %s2794_s18 = smov (!%p468_p10), [#allocation4]  }
  0x1a   : > { %v2671_v41 = vld [vmem:[%s3291_s6 + $0x30] sm:$0xff] (!%p468_p10)   ;;  %v2672_v43 = vld [vmem:[%s3290_s5 + $0x38] sm:$0xff] (!%p468_p10)   ;;  %v2674_v46 = vld [vmem:[%s3289_s4] sm:$0xff] (!%p468_p10)   ;;  %s2716_s22 = sshll.u32 (!%p468_p10), %s2794_s18, 4  ;;  %s2717_s22 = int_to_ptr.vmem [resolvable:$false] %s2716_s22 }
  0x1b   : > { %2416 = vmatpush3.bf16.msra.mxu0 (!%p468_p10), %v2660_v17  ;;  %2424 = vmatpush3.bf16.msra.mxu1 (!%p468_p10), %v2661_v18  ;;  %v2673_v44 = vld [vmem:[%s3291_s6 + $0x38] sm:$0xff] (!%p468_p10)   ;;  %v2675_v47 = vld [vmem:[%s3289_s4 + $0x10] sm:$0xff] (!%p468_p10)   ;;  %v2676_v49 = vld [vmem:[%s3289_s4 + $0x8] sm:$0xff] (!%p468_p10)  }
  0x1c   : > { %2429 = vmatprep.subr.bf16.mxu0 (!%p468_p10), %v2792_v16  ;;  %2437 = vmatprep.subr.bf16.mxu1 (!%p468_p10), %v2792_v16  ;;  %v2677_v50 = vld [vmem:[%s3289_s4 + $0x18] sm:$0xff] (!%p468_p10)   ;;  %v2678_v52 = vld [vmem:[%s3289_s4 + $0x20] sm:$0xff] (!%p468_p10)   ;;  %v2679_v53 = vld [vmem:[%s3289_s4 + $0x30] sm:$0xff] (!%p468_p10)  }
  0x1d   : > { %s522_s17 = scalar_select %p521_p11, %s2782_s21, 1  ;;  %v2343_v23 = vld [vmem:[%s3316_s2] ss:$0 sm:$0xff]  ;;  %v2680_v55 = vld [vmem:[%s3289_s4 + $0x28] sm:$0xff]   ;;  %v2681_v56 = vld [vmem:[%s3289_s4 + $0x38] sm:$0xff]  }
  0x1e   : > { %s2718_s2 = scalar_lea.vmem %s2717_s22, 256 }
  0x1f   : > { %s2240_s24 = sshll.u32 %s522_s17, 3 }
  0x20   : > { %s531_s26 = scalar_lea.vmem %s3314_s1, %s2240_s24  ;;  %s527_s15 = scalar_lea.vmem %s3315_s0, %s2240_s24 }
  0x21   : > { %v539_v0 = vld [vmem:[%s531_s26] sm:$0xff]  ;;  %s2340_s26 = sshll.u32 %s2782_s21, 7  ;;  %s3317_s0 = sld [smem:[#allocation13_spill]] }
  0x22   : > { %v2938_v1 = vld [vmem:[%s527_s15] sm:$0xff]  ;;  %v541_v2 = vsel %vm540_vm0, %v539_v0, 0.0  ;;  %s2239_s15 = sshll.u32 %s518_s29, 3  ;;  %s2137_s21 = scalar_lea.sflag [#allocation5], %s518_s29 }
  0x23   : > { %v1052_v3 = vsel %vm540_vm0, %v2938_v1, 0.0  ;;  %542 = vadd.xlane.f32.xlu0 %v541_v2  ;;  %s520_s27 = scalar_lea.vmem [#allocation4], %s2239_s15 }
  0x24   : > { %s2151_s17 = sshll.u32 %s520_s27, 4  ;;  %s3239_s17 = int_to_ptr.vmem [resolvable:$true] %s2151_s17 }
  0x25   : > { %s2712_s15 = scalar_lea.vmem %s3239_s17, 128  ;;  %p2719_p1 = scmp.lt.s32.totalorder %s3239_s17, %s2717_s22 }
  0x26   : > { %p2713_p12 = scmp.ne.s32.totalorder %s3239_s17, %s2712_s15  ;;  %p2720_p2 = scmp.lt.s32.totalorder %s2718_s2, %s2712_s15 }
  0x27   : > { %1053 = vadd.xlane.f32.xlu0 %v1052_v3  ;;  %s3237_s1 = scalar_lea.hbm %s3317_s0, %s2340_s26 }
  0x28   : > { %p2714_p13 = pnand %p2713_p12, %p2915_p4  ;;  %p2721_p3 = por %p2720_p2, %p2719_p1 }
  0x2a   : > { %p2715_p0 = pneg %p2714_p13 }
  0x2c   : > { %p2722_p5 = pnand %p2721_p3, %p2715_p0 }
  0xb0   : > { %v543_v4 = vpop.xlane.xlu0 %542 }
  0xb1   : > { %v545_v5 = vmul.f32 0.03125, %v543_v4 }
  0xb3   : > { %v546_v6 = vsub.f32 %v539_v0, %v545_v5 }
  0xb4   : > { %v1054_v7 = vpop.xlane.xlu0 %1053 }
  0xb5   : > { %v1056_v8 = vmul.f32 0.03125, %v1054_v7  ;;  %v547_v9 = vmul.f32 %v546_v6, %v546_v6 }
  0xb7   : > { %v2944_v10 = vsub.f32 %v2938_v1, %v1056_v8  ;;  %v548_v11 = vsel %vm540_vm0, %v547_v9, 0.0 }
  0xb8   : > { %549 = vadd.xlane.f32.xlu1 %v548_v11 }
  0xb9   : > { %v1058_v12 = vmul.f32 %v2944_v10, %v2944_v10 }
  0xbb   : > { %v1059_v13 = vsel %vm540_vm0, %v1058_v12, 0.0 }
  0xbc   : > { %1060 = vadd.xlane.f32.xlu1 %v1059_v13 }
 0x145   : > { %v550_v19 = vpop.xlane.xlu1 %549 }
 0x146   : > { %v551_v20 = vmul.f32 0.03125, %v550_v19 }
 0x148   : > { %v552_v21 = vadd.f32 1e-05, %v551_v20 }
 0x149   : > { %v1061_v27 = vpop.xlane.xlu1 %1060 }
 0x14a   : > { %2688 = vrsqrt.f32 %v552_v21  ;;  %v1062_v29 = vmul.f32 0.03125, %v1061_v27 }
 0x14c   : > { %v1063_v33 = vadd.f32 1e-05, %v1062_v29 }
 0x14e   : > { %2690 = vrsqrt.f32 %v1063_v33 }
 0x154   : > { %v2689_v22 = vpop.eup %2688 }
 0x155   : > { %v554_v24 = vmul.f32 %v2689_v22, %v546_v6 }
 0x157   : > { %v561_v26 = vmul.f32 %v2343_v23, %v554_v24 }
 0x158   : > { %v2691_v42 = vpop.eup %2690 }
 0x159   : > { %v568_v28 = vadd.f32 %v2978_v25, %v561_v26  ;;  %v1065_v45 = vmul.f32 %v2691_v42, %v2944_v10 }
 0x15b   : > { %v569_v32 = vpack.c.bf16 %v568_v28, %v568_v28  ;;  %v1072_v48 = vmul.f32 %v2343_v23, %v1065_v45 }
 0x15d   : > { %2418 = vmatmul.mubr.msk.bf16.vlgmr.msra.gmra.mrb[0].mxu0 %vm540_vm0, %v569_v32  ;;  %2426 = vmatmul.mubr.msk.bf16.vlgmr.msra.gmra.mrb[0].mxu1 %vm540_vm0, %v569_v32  ;;  %v1079_v51 = vadd.f32 %v2978_v25, %v1072_v48 }
 0x15e   : > { %2430 = vmatpush3.bf16.msra.mxu0 %v2662_v30  ;;  %2438 = vmatpush3.bf16.msra.mxu1 %v2663_v31 }
 0x15f   : > { %2431 = vmatprep.subr.bf16.mxu0 %v2792_v16  ;;  %2439 = vmatprep.subr.bf16.mxu1 %v2792_v16  ;;  %v1080_v54 = vpack.c.bf16 %v1079_v51, %v1079_v51 }
 0x160   : > { %2433 = vmatprep.mubr.msk.bf16.mxu0 %vm2793_vm1, %v2792_v16  ;;  %2441 = vmatprep.mubr.msk.bf16.mxu1 %vm2793_vm1, %v2792_v16 }
 0x162   : > { %2432 = vmatpush3.bf16.msra.mxu0 %v2664_v34  ;;  %2440 = vmatpush3.bf16.msra.mxu1 %v2665_v35 }
 0x163   : > { %2445 = vmatprep.subr.bf16.mxu0 %v2792_v16  ;;  %2453 = vmatprep.subr.bf16.mxu1 %v2792_v16 }
 0x165   : > { %2434 = vmatmul.mubr.msk.bf16.vlgmr.msra.gmra.mrb[4].mxu0 %vm540_vm0, %v569_v32  ;;  %2442 = vmatmul.mubr.msk.bf16.vlgmr.msra.gmra.mrb[4].mxu1 %vm540_vm0, %v569_v32 }
 0x166   : > { %2446 = vmatpush3.bf16.msra.mxu0 %v2666_v36  ;;  %2454 = vmatpush3.bf16.msra.mxu1 %v2667_v37 }
 0x167   : > { %2447 = vmatprep.subr.bf16.mxu0 %v2792_v16  ;;  %2455 = vmatprep.subr.bf16.mxu1 %v2792_v16 }
 0x168   : > { %2449 = vmatprep.mubr.msk.bf16.mxu0 %vm2793_vm1, %v2792_v16  ;;  %2457 = vmatprep.mubr.msk.bf16.mxu1 %vm2793_vm1, %v2792_v16 }
 0x16a   : > { %2448 = vmatpush3.bf16.msra.mxu0 %v2668_v38  ;;  %2456 = vmatpush3.bf16.msra.mxu1 %v2669_v39 }
 0x16b   : > { %2461 = vmatprep.subr.bf16.mxu0 %v2792_v16  ;;  %2469 = vmatprep.subr.bf16.mxu1 %v2792_v16 }
 0x16d   : > { %2450 = vmatmul.mubr.msk.bf16.vlgmr.msra.gmra.mrb[8].mxu0 %vm540_vm0, %v569_v32  ;;  %2458 = vmatmul.mubr.msk.bf16.vlgmr.msra.gmra.mrb[8].mxu1 %vm540_vm0, %v569_v32 }
 0x16e   : > { %2462 = vmatpush3.bf16.msra.mxu0 %v2670_v40  ;;  %2470 = vmatpush3.bf16.msra.mxu1 %v2671_v41 }
 0x16f   : > { %2463 = vmatprep.subr.bf16.mxu0 %v2792_v16  ;;  %2471 = vmatprep.subr.bf16.mxu1 %v2792_v16 }
 0x170   : > { %2465 = vmatprep.mubr.msk.bf16.mxu0 %vm2793_vm1, %v2792_v16  ;;  %2473 = vmatprep.mubr.msk.bf16.mxu1 %vm2793_vm1, %v2792_v16 }
 0x172   : > { %2464 = vmatpush3.bf16.msra.mxu0 %v2672_v43  ;;  %2472 = vmatpush3.bf16.msra.mxu1 %v2673_v44 }
 0x173   : > { %2477 = vmatprep.subr.bf16.mxu0 %v2792_v16  ;;  %2485 = vmatprep.subr.bf16.mxu1 %v2792_v16 }
 0x175   : > { %2466 = vmatmul.mubr.msk.bf16.vlgmr.msra.gmra.mrb[12].mxu0 %vm540_vm0, %v569_v32  ;;  %2474 = vmatmul.mubr.msk.bf16.vlgmr.msra.gmra.mrb[12].mxu1 %vm540_vm0, %v569_v32 }
 0x176   : > { %2478 = vmatpush3.bf16.msra.mxu0 %v2674_v46  ;;  %2486 = vmatpush3.bf16.msra.mxu1 %v2675_v47 }
 0x177   : > { %2479 = vmatprep.subr.bf16.mxu0 %v2792_v16  ;;  %2487 = vmatprep.subr.bf16.mxu1 %v2792_v16 }
 0x178   : > { %2481 = vmatprep.mubr.msk.bf16.mxu0 %vm2793_vm1, %v2792_v16  ;;  %2489 = vmatprep.mubr.msk.bf16.mxu1 %vm2793_vm1, %v2792_v16 }
 0x17a   : > { %2480 = vmatpush3.bf16.msra.mxu0 %v2676_v49  ;;  %2488 = vmatpush3.bf16.msra.mxu1 %v2677_v50 }
 0x17b   : > { %2493 = vmatprep.subr.bf16.mxu0 %v2792_v16  ;;  %2501 = vmatprep.subr.bf16.mxu1 %v2792_v16 }
 0x17d   : > { %2482 = vmatmul.mubr.msk.bf16.vlgmr.msra.gmra.mrb[16].mxu0 %vm540_vm0, %v1080_v54  ;;  %2490 = vmatmul.mubr.msk.bf16.vlgmr.msra.gmra.mrb[16].mxu1 %vm540_vm0, %v1080_v54 }
 0x17e   : > { %2494 = vmatpush3.bf16.msra.mxu0 %v2678_v52  ;;  %2502 = vmatpush3.bf16.msra.mxu1 %v2679_v53 }
 0x17f   : > { %2495 = vmatprep.subr.bf16.mxu0 %v2792_v16  ;;  %2503 = vmatprep.subr.bf16.mxu1 %v2792_v16 }
 0x180   : > { %2497 = vmatprep.mubr.msk.bf16.mxu0 %vm2793_vm1, %v2792_v16  ;;  %2505 = vmatprep.mubr.msk.bf16.mxu1 %vm2793_vm1, %v2792_v16 }
 0x182   : > { %2496 = vmatpush3.bf16.msra.mxu0 %v2680_v55  ;;  %2504 = vmatpush3.bf16.msra.mxu1 %v2681_v56 }
 0x183   : > { %2509 = vmatprep.subr.bf16.mxu0 %v2792_v16  ;;  %2515 = vmatprep.subr.bf16.mxu1 %v2792_v16 }
 0x185   : > { %2498 = vmatmul.mubr.msk.bf16.vlgmr.msra.gmra.mrb[20].mxu0 %vm540_vm0, %v1080_v54  ;;  %2506 = vmatmul.mubr.msk.bf16.vlgmr.msra.gmra.mrb[20].mxu1 %vm540_vm0, %v1080_v54 }
 0x186   : > { %2511 = vmatprep.mubr.msk.bf16.mxu0 %vm2793_vm1, %v2792_v16  ;;  %2517 = vmatprep.mubr.msk.bf16.mxu1 %vm2793_vm1, %v2792_v16 }
 0x230   : > { %v623_v57 = vpop.f32.mrb[0].mxu0  ;;  %v682_v58 = vpop.f32.mrb[0].mxu1 }
 0x231   : > { %v629_v59 = vpack.c.bf16 %v623_v57, %v623_v57  ;;  %v688_v60 = vpack.c.bf16 %v682_v58, %v682_v58  ;;  %v2419_v61 = vpop.f32.mrb[1].mxu0  ;;  %v2427_v62 = vpop.f32.mrb[1].mxu1 }
 0x232   : > { %v626_v63 = vpop.f32.mrb[2].mxu0  ;;  %v685_v0 = vpop.f32.mrb[2].mxu1 }
 0x233   : > { %631 = vst.msk [vmem:[#allocation2] sm:$0xf] %vm630_vm2, %v629_v59  ;;  %689 = vst.msk [vmem:[#allocation3] sm:$0xf] %vm630_vm2, %v688_v60  ;;  %v2420_v2 = vpop.f32.mrb[3].mxu0  ;;  %v2428_v3 = vpop.f32.mrb[3].mxu1 }
 0x238   : > { %v741_v4 = vpop.f32.mrb[4].mxu0  ;;  %v801_v5 = vpop.f32.mrb[4].mxu1 }
 0x239   : > { %v747_v6 = vpack.c.bf16 %v741_v4, %v741_v4  ;;  %v807_v7 = vpack.c.bf16 %v801_v5, %v801_v5  ;;  %v2435_v8 = vpop.f32.mrb[5].mxu0  ;;  %v2443_v9 = vpop.f32.mrb[5].mxu1 }
 0x23a   : > { %v744_v10 = vpop.f32.mrb[6].mxu0  ;;  %v804_v11 = vpop.f32.mrb[6].mxu1  ;;  %v1315_v12 = vld [vmem:[#allocation2] sm:$0xf]  ;;  %v1544_v55 = vld [vmem:[#allocation3] sm:$0xf] }
 0x23b   : > { %749 = vst.msk [vmem:[#allocation2 + $0x4] sm:$0xf] %vm630_vm2, %v747_v6  ;;  %809 = vst.msk [vmem:[#allocation3 + $0x4] sm:$0xf] %vm630_vm2, %v807_v7  ;;  %v2436_v13 = vpop.f32.mrb[7].mxu0  ;;  %v2444_v14 = vpop.f32.mrb[7].mxu1 }
 0x23c   : > { %v1324_v15 = vsel %vm1319_vm3, %v1315_v12, 0  ;;  %v1553_v2 = vsel %vm1551_vm4, %v1544_v55, 0 }
 0x23d   : > { %2510 = vmatpush3.bf16.xpose.msra.mxu0 %v1324_v15 }
 0x23e   : > { %2521 = vmatprep.subr.bf16.mxu0 %v2792_v16 }
 0x240   : > { %v861_v17 = vpop.f32.mrb[8].mxu0  ;;  %v921_v18 = vpop.f32.mrb[8].mxu1 }
 0x241   : > { %v867_v19 = vpack.c.bf16 %v861_v17, %v861_v17  ;;  %v927_v20 = vpack.c.bf16 %v921_v18, %v921_v18  ;;  %v2451_v21 = vpop.f32.mrb[9].mxu0  ;;  %v2459_v22 = vpop.f32.mrb[9].mxu1 }
 0x242   : > { %v864_v23 = vpop.f32.mrb[10].mxu0  ;;  %v924_v24 = vpop.f32.mrb[10].mxu1  ;;  %v1316_v25 = vld [vmem:[#allocation2 + $0x4] sm:$0xf]  ;;  %v1545_v56 = vld [vmem:[#allocation3 + $0x4] sm:$0xf] }
 0x243   : > { %869 = vst.msk [vmem:[#allocation2 + $0x8] sm:$0xf] %vm630_vm2, %v867_v19  ;;  %929 = vst.msk [vmem:[#allocation3 + $0x8] sm:$0xf] %vm630_vm2, %v927_v20  ;;  %v2452_v26 = vpop.f32.mrb[11].mxu0  ;;  %v2460_v27 = vpop.f32.mrb[11].mxu1 }
 0x244   : > { %v1370_v28 = vsel %vm1319_vm3, %v1316_v25, 0  ;;  %v1599_v3 = vsel %vm1551_vm4, %v1545_v56, 0 }
 0x245   : > { %2516 = vmatpush3.bf16.xpose.msra.mxu1 %v1370_v28 }
 0x246   : > { %2527 = vmatprep.subr.bf16.mxu1 %v2792_v16 }
 0x248   : > { %v981_v29 = vpop.f32.mrb[12].mxu0  ;;  %v1041_v30 = vpop.f32.mrb[12].mxu1 }
 0x249   : > { %v987_v31 = vpack.c.bf16 %v981_v29, %v981_v29  ;;  %v1047_v32 = vpack.c.bf16 %v1041_v30, %v1041_v30  ;;  %v2467_v33 = vpop.f32.mrb[13].mxu0  ;;  %v2475_v34 = vpop.f32.mrb[13].mxu1 }
 0x24a   : > { %v984_v35 = vpop.f32.mrb[14].mxu0  ;;  %v1044_v36 = vpop.f32.mrb[14].mxu1  ;;  %v1317_v41 = vld [vmem:[#allocation2 + $0x8] sm:$0xf] }
 0x24b   : > { %989 = vst.msk [vmem:[#allocation2 + $0xc] sm:$0xf] %vm630_vm2, %v987_v31  ;;  %1049 = vst.msk [vmem:[#allocation3 + $0xc] sm:$0xf] %vm630_vm2, %v1047_v32  ;;  %v2468_v37 = vpop.f32.mrb[15].mxu0  ;;  %v2476_v38 = vpop.f32.mrb[15].mxu1 }
 0x24c   : > { %v1416_v51 = vsel %vm1319_vm3, %v1317_v41, 0 }
 0x250   : > { %v1134_v39 = vpop.f32.mrb[16].mxu0  ;;  %v1192_v40 = vpop.f32.mrb[16].mxu1 }
 0x251   : > { %v1140_v42 = vpack.c.bf16 %v1134_v39, %v1134_v39  ;;  %v1198_v43 = vpack.c.bf16 %v1192_v40, %v1192_v40  ;;  %v2483_v44 = vpop.f32.mrb[17].mxu0  ;;  %v2491_v45 = vpop.f32.mrb[17].mxu1 }
 0x252   : > { %v1137_v46 = vpop.f32.mrb[18].mxu0  ;;  %v1195_v47 = vpop.f32.mrb[18].mxu1  ;;  %v1318_v48 = vld [vmem:[#allocation2 + $0xc] sm:$0xf]  ;;  %v1547_v38 = vld [vmem:[#allocation3 + $0xc] sm:$0xf] }
 0x253   : > { %v2484_v49 = vpop.f32.mrb[19].mxu0  ;;  %v2492_v50 = vpop.f32.mrb[19].mxu1  ;;  %2512 = vmatmul.mubr.msk.bf16.vlgmr.msra.gmra.mrb[24].mxu0 %vm1319_vm3, %v1140_v42  ;;  %2518 = vmatmul.mubr.msk.bf16.vlgmr.msra.gmra.mrb[24].mxu1 %vm1319_vm3, %v1198_v43  ;;  %v1462_v52 = vsel %vm1319_vm3, %v1318_v48, 0  ;;  %v1546_v42 = vld [vmem:[#allocation3 + $0x8] sm:$0xf]  ;;  %v1691_v45 = vsel %vm1551_vm4, %v1547_v38, 0 }
 0x254   : > { %2522 = vmatpush3.bf16.xpose.msra.mxu0 %v1416_v51  ;;  %2528 = vmatpush3.bf16.xpose.msra.mxu1 %v1462_v52  ;;  %v1645_v46 = vsel %vm1551_vm4, %v1546_v42, 0 }
 0x255   : > { %2523 = vmatprep.mubr.msk.bf16.mxu0 %vm2793_vm1, %v2792_v16  ;;  %2529 = vmatprep.mubr.msk.bf16.mxu1 %vm2793_vm1, %v2792_v16 }
 0x256   : > { %2533 = vmatprep.subr.bf16.mxu0 %v2792_v16  ;;  %2539 = vmatprep.subr.bf16.mxu1 %v2792_v16 }
 0x258   : > { %v1250_v53 = vpop.f32.mrb[20].mxu0  ;;  %v1308_v54 = vpop.f32.mrb[20].mxu1 }
 0x259   : > { %v1256_v57 = vpack.c.bf16 %v1250_v53, %v1250_v53  ;;  %v1314_v58 = vpack.c.bf16 %v1308_v54, %v1308_v54  ;;  %v2499_v59 = vpop.f32.mrb[21].mxu0  ;;  %v2507_v60 = vpop.f32.mrb[21].mxu1  ;;  %v1745_v53 = vld [vmem:[%s3292_s7] sm:$0xf]  ;;  %v1746_v54 = vld [vmem:[%s3292_s7 + $0x4] sm:$0xf] }
 0x25a   : > { %v1253_v61 = vpop.f32.mrb[22].mxu0  ;;  %v1311_v62 = vpop.f32.mrb[22].mxu1  ;;  %v1753_v55 = vsel %vm1551_vm4, %v1745_v53, 0  ;;  %v1799_v56 = vsel %vm1551_vm4, %v1746_v54, 0 }
 0x25b   : > { %v2500_v63 = vpop.f32.mrb[23].mxu0  ;;  %v2508_v0 = vpop.f32.mrb[23].mxu1  ;;  %2524 = vmatmul.mubr.msk.bf16.vlgmr.msra.gmra.mrb[28].mxu0 %vm1319_vm3, %v1256_v57  ;;  %2530 = vmatmul.mubr.msk.bf16.vlgmr.msra.gmra.mrb[28].mxu1 %vm1319_vm3, %v1314_v58 }
 0x25c   : > { %2534 = vmatpush3.bf16.msra.mxu0 %v1553_v2  ;;  %2540 = vmatpush3.bf16.msra.mxu1 %v1599_v3  ;;  %v1748_v63 = vld [vmem:[%s3292_s7 + $0xc] sm:$0xf] }
 0x25d   : > { %2541 = vmatprep.mubr.msk.bf16.mxu1 %vm2793_vm1, %v2792_v16  ;;  %2551 = vmatprep.subr.bf16.mxu1 %v2792_v16 }
 0x25e   : > { %2535 = vmatprep.mubr.msk.bf16.mxu0 %vm2793_vm1, %v2792_v16  ;;  %2545 = vmatprep.subr.bf16.mxu0 %v2792_v16 }
 0x326   : > { %v1360_v4 = vpop.f32.mrb[24].mxu0  ;;  %v1406_v5 = vpop.f32.mrb[24].mxu1 }
 0x327   : > { %v2513_v6 = vpop.f32.mrb[25].mxu0  ;;  %v2519_v7 = vpop.f32.mrb[25].mxu1  ;;  %v1507_v8 = vsel %vm1319_vm3, %v1406_v5, -inf  ;;  %v1504_v9 = vsel %vm1319_vm3, %v1360_v4, -inf }
 0x328   : > { %1508 = vmax.xlane.f32.xlu1 %v1507_v8  ;;  %v1409_v10 = vpop.f32.mrb[26].mxu1  ;;  %1505 = vmax.xlane.f32.xlu0 %v1504_v9  ;;  %v1363_v11 = vpop.f32.mrb[26].mxu0 }
 0x329   : > { %v2514_v12 = vpop.f32.mrb[27].mxu0  ;;  %v2520_v13 = vpop.f32.mrb[27].mxu1 }
 0x32a   : > { %v1891_v12 = vsel %vm1551_vm4, %v1748_v63, 0  ;;  %v2682_v63 = vld [vmem:[%s3296_s11] sm:$0xff]  }
 0x32e   : > { %v1452_v14 = vpop.f32.mrb[28].mxu0  ;;  %v1498_v15 = vpop.f32.mrb[28].mxu1 }
 0x32f   : > { %v2525_v17 = vpop.f32.mrb[29].mxu0  ;;  %v2531_v18 = vpop.f32.mrb[29].mxu1  ;;  %v1513_v19 = vsel %vm1319_vm3, %v1498_v15, -inf  ;;  %v1510_v20 = vsel %vm1319_vm3, %v1452_v14, -inf }
 0x330   : > { %1514 = vmax.xlane.f32.xlu1 %v1513_v19  ;;  %v1501_v21 = vpop.f32.mrb[30].mxu1  ;;  %1511 = vmax.xlane.f32.xlu0 %v1510_v20  ;;  %v1455_v22 = vpop.f32.mrb[30].mxu0 }
 0x331   : > { %v2526_v23 = vpop.f32.mrb[31].mxu0  ;;  %v2532_v24 = vpop.f32.mrb[31].mxu1 }
 0x3b5   : > { %v1509_v25 = vpop.xlane.xlu1 %1508  ;;  %v1506_v26 = vpop.xlane.xlu0 %1505 }
 0x3b6   : > { %v1517_v27 = vsub.f32 %v1406_v5, %v1509_v25  ;;  %v1516_v28 = vsub.f32 %v1360_v4, %v1506_v26  ;;  %v1747_v5 = vld [vmem:[%s3292_s7 + $0x8] sm:$0xf] }
 0x3b8   : > { %v1522_v29 = vmul.f32 1.442695, %v1517_v27  ;;  %v1520_v30 = vmul.f32 1.442695, %v1516_v28 }
 0x3ba   : > { %2692 = vpow2.f32 %v1522_v29 }
 0x3bb   : > { %2694 = vpow2.f32 %v1520_v30 }
 0x3bd   : > { %v1515_v31 = vpop.xlane.xlu1 %1514  ;;  %v1512_v32 = vpop.xlane.xlu0 %1511 }
 0x3be   : > { %v1519_v33 = vsub.f32 %v1498_v15, %v1515_v31  ;;  %v1518_v34 = vsub.f32 %v1452_v14, %v1512_v32  ;;  %v1845_v15 = vsel %vm1551_vm4, %v1747_v5, 0  ;;  %v2327_v5 = vld [vmem:[%s3294_s9] ss:$0 sm:$0xff] }
 0x3c0   : > { %v1526_v35 = vmul.f32 1.442695, %v1519_v33  ;;  %v1524_v36 = vmul.f32 1.442695, %v1518_v34 }
 0x3c2   : > { %2696 = vpow2.f32 %v1526_v35 }
 0x3c3   : > { %2698 = vpow2.f32 %v1524_v36 }
 0x3c4   : > { %v2693_v37 = vpop.eup %2692 }
 0x3c5   : > { %v2695_v39 = vpop.eup %2694  ;;  %v1531_v40 = vsel %vm1319_vm3, %v2693_v37, 0.0  ;;  %v1541_v41 = vpack.c.bf16 %v2693_v37, %v2693_v37 }
 0x3c6   : > { %1532 = vadd.xlane.f32.xlu1 %v1531_v40  ;;  %v1528_v43 = vsel %vm1319_vm3, %v2695_v39, 0.0  ;;  %v1540_v44 = vpack.c.bf16 %v2695_v39, %v2695_v39 }
 0x3c7   : > { %1529 = vadd.xlane.f32.xlu0 %v1528_v43  ;;  %2542 = vmatmul.mubr.msk.bf16.vlgmr.msra.gmra.mrb[32].mxu1 %vm1319_vm3, %v1541_v41 }
 0x3c8   : > { %2536 = vmatmul.mubr.msk.bf16.vlgmr.msra.gmra.mrb[32].mxu0 %vm1319_vm3, %v1540_v44  ;;  %2552 = vmatpush3.bf16.msra.mxu1 %v1691_v45 }
 0x3c9   : > { %2546 = vmatpush3.bf16.msra.mxu0 %v1645_v46  ;;  %2553 = vmatprep.mubr.msk.bf16.mxu1 %vm2793_vm1, %v2792_v16 }
 0x3ca   : > { %2547 = vmatprep.mubr.msk.bf16.mxu0 %vm2793_vm1, %v2792_v16  ;;  %2557 = vmatprep.subr.bf16.mxu0 %v2792_v16 }
 0x3cb   : > { %2563 = vmatprep.subr.bf16.mxu1 %v2792_v16 }
 0x3cc   : > { %v2697_v47 = vpop.eup %2696 }
 0x3cd   : > { %v2699_v48 = vpop.eup %2698  ;;  %v1537_v49 = vsel %vm1319_vm3, %v2697_v47, 0.0  ;;  %v1543_v50 = vpack.c.bf16 %v2697_v47, %v2697_v47 }
 0x3ce   : > { %1538 = vadd.xlane.f32.xlu1 %v1537_v49  ;;  %v1534_v51 = vsel %vm1319_vm3, %v2699_v48, 0.0  ;;  %v1542_v52 = vpack.c.bf16 %v2699_v48, %v2699_v48 }
 0x3cf   : > { %1535 = vadd.xlane.f32.xlu0 %v1534_v51  ;;  %2554 = vmatmul.mubr.msk.bf16.vlgmr.msra.gmra.mrb[36].mxu1 %vm1319_vm3, %v1543_v50 }
 0x3d0   : > { %2548 = vmatmul.mubr.msk.bf16.vlgmr.msra.gmra.mrb[36].mxu0 %vm1319_vm3, %v1542_v52  ;;  %2565 = vmatprep.mubr.msk.bf16.mxu1 %vm2793_vm1, %v2792_v16  ;;  %v2326_v52 = vld [vmem:[%s3293_s8] ss:$0 sm:$0xff] }
 0x3d1   : > { %2559 = vmatprep.mubr.msk.bf16.mxu0 %vm2793_vm1, %v2792_v16  ;;  %2558 = vmatpush3.bf16.msra.mxu0 %v1753_v55 }
 0x3d2   : > { %2564 = vmatpush3.bf16.msra.mxu1 %v1799_v56  ;;  %2569 = vmatprep.subr.bf16.mxu0 %v2792_v16 }
 0x3d3   : > { %2575 = vmatprep.subr.bf16.mxu1 %v2792_v16 }
 0x453   : > { %v1533_v57 = vpop.xlane.xlu1 %1532 }
 0x454   : > { %v1530_v58 = vpop.xlane.xlu0 %1529  ;;  %2700 = vrcp.f32 %v1533_v57 }
 0x455   : > { %2702 = vrcp.f32 %v1530_v58 }
 0x45b   : > { %v1539_v59 = vpop.xlane.xlu1 %1538 }
 0x45c   : > { %v1536_v60 = vpop.xlane.xlu0 %1535  ;;  %2704 = vrcp.f32 %v1539_v59 }
 0x45d   : > { %2706 = vrcp.f32 %v1536_v60 }
 0x45e   : > { %v2701_v61 = vpop.eup %2700 }
 0x45f   : > { %v2703_v0 = vpop.eup %2702 }
 0x466   : > { %v2705_v17 = vpop.eup %2704 }
 0x467   : > { %v2707_v19 = vpop.eup %2706 }
 0x49a   : > { %v1635_v62 = vpop.f32.mrb[32].mxu1 }
 0x49b   : > { %v1589_v2 = vpop.f32.mrb[32].mxu0  ;;  %v1738_v3 = vmul.f32 %v2701_v61, %v1635_v62  ;;  %v2543_v4 = vpop.f32.mrb[33].mxu1 }
 0x49c   : > { %v1737_v6 = vmul.f32 %v2703_v0, %v1589_v2  ;;  %v2537_v7 = vpop.f32.mrb[33].mxu0  ;;  %v1638_v8 = vpop.f32.mrb[34].mxu1  ;;  %v2683_v0 = vld [vmem:[%s3296_s11 + $0x8] sm:$0xff]  }
 0x49d   : > { %v1742_v9 = vpack.c.bf16 %v1738_v3, %v1738_v3  ;;  %v1592_v10 = vpop.f32.mrb[34].mxu0  ;;  %v2544_v11 = vpop.f32.mrb[35].mxu1  ;;  %v2328_v7 = vld [vmem:[%s3295_s10] ss:$0 sm:$0xff] }
 0x49e   : > { %v1741_v13 = vpack.c.bf16 %v1737_v6, %v1737_v6  ;;  %v2538_v14 = vpop.f32.mrb[35].mxu0  ;;  %v2684_v11 = vld [vmem:[%s3298_s13] sm:$0xff]  }
 0x49f   : > { %2566 = vmatmul.mubr.msk.bf16.vlgmr.msra.gmra.mrb[40].mxu1 %vm1319_vm3, %v1742_v9  ;;  %v2687_v14 = vld [vmem:[%s3298_s13 + $0x18] sm:$0xff]  }
 0x4a0   : > { %2560 = vmatmul.mubr.msk.bf16.vlgmr.msra.gmra.mrb[40].mxu0 %vm1319_vm3, %v1741_v13  ;;  %2576 = vmatpush3.bf16.msra.mxu1 %v1891_v12  ;;  %v2685_v12 = vld [vmem:[%s3298_s13 + $0x8] sm:$0xff]   ;;  %v2686_v13 = vld [vmem:[%s3298_s13 + $0x10] sm:$0xff]  }
 0x4a1   : > { %2570 = vmatpush3.bf16.msra.mxu0 %v1845_v15  ;;  %2571 = vmatprep.mubr.msk.bf16.mxu0 %vm2793_vm1, %v2792_v16  ;;  %v2329_v15 = vld [vmem:[%s3297_s12] ss:$0 sm:$0xff] }
 0x4a2   : > { %v1727_v18 = vpop.f32.mrb[36].mxu1  ;;  %2577 = vmatprep.mubr.msk.bf16.mxu1 %vm2793_vm1, %v2792_v16  ;;  %2581 = vmatprep.subr.bf16.mxu0 %v2792_v16 }
 0x4a3   : > { %v1681_v20 = vpop.f32.mrb[36].mxu0  ;;  %v1740_v21 = vmul.f32 %v2705_v17, %v1727_v18  ;;  %v2555_v22 = vpop.f32.mrb[37].mxu1  ;;  %2589 = vmatprep.subr.bf16.mxu1 %v2792_v16 }
 0x4a4   : > { %v1739_v23 = vmul.f32 %v2707_v19, %v1681_v20  ;;  %v2549_v24 = vpop.f32.mrb[37].mxu0  ;;  %v1730_v25 = vpop.f32.mrb[38].mxu1 }
 0x4a5   : > { %v1744_v26 = vpack.c.bf16 %v1740_v21, %v1740_v21  ;;  %v1684_v27 = vpop.f32.mrb[38].mxu0  ;;  %v2556_v28 = vpop.f32.mrb[39].mxu1 }
 0x4a6   : > { %v1743_v29 = vpack.c.bf16 %v1739_v23, %v1739_v23  ;;  %v2550_v30 = vpop.f32.mrb[39].mxu0  ;;  %v2333_v27 = vld [vmem:[%s3299_s14] ss:$0 sm:$0xff] }
 0x4a7   : > { %2578 = vmatmul.mubr.msk.bf16.vlgmr.msra.gmra.mrb[44].mxu1 %vm1319_vm3, %v1744_v26 }
 0x4a8   : > { %2572 = vmatmul.mubr.msk.bf16.vlgmr.msra.gmra.mrb[44].mxu0 %vm1319_vm3, %v1743_v29  ;;  %2597 = vmatprep.mubr.msk.bf16.mxu1 %vm2793_vm1, %v2792_v16 }
 0x4a9   : > { %2585 = vmatprep.mubr.msk.bf16.mxu0 %vm2793_vm1, %v2792_v16  ;;  %2582 = vmatpush3.bf16.msra.mxu0 %v2682_v63 }
 0x4aa   : > { %2583 = vmatprep.subr.bf16.mxu0 %v2792_v16  ;;  %2590 = vmatpush3.bf16.msra.mxu1 %v2684_v11 }
 0x4ab   : > { %2591 = vmatprep.subr.bf16.mxu1 %v2792_v16 }
 0x4ad   : > { %2584 = vmatpush3.bf16.msra.mxu0 %v2683_v0 }
 0x4ae   : > { %2592 = vmatpush3.bf16.msra.mxu1 %v2685_v12 }
 0x4af   : > { %2593 = vmatprep.subr.bf16.mxu1 %v2792_v16 }
 0x4b2   : > { %2594 = vmatpush3.bf16.msra.mxu1 %v2686_v13 }
 0x4b3   : > { %2595 = vmatprep.subr.bf16.mxu1 %v2792_v16 }
 0x4b6   : > { %2596 = vmatpush3.bf16.msra.mxu1 %v2687_v14 }
 0x572   : > { %v1835_v31 = vpop.f32.mrb[40].mxu1 }
 0x573   : > { %v1789_v32 = vpop.f32.mrb[40].mxu0  ;;  %v1934_v33 = vsel %vm540_vm0, %v1835_v31, 0.0  ;;  %v2567_v34 = vpop.f32.mrb[41].mxu1 }
 0x574   : > { %v1933_v35 = vsel %vm540_vm0, %v1789_v32, 0.0  ;;  %v2561_v36 = vpop.f32.mrb[41].mxu0  ;;  %v1838_v37 = vpop.f32.mrb[42].mxu1 }
 0x575   : > { %v1935_v38 = vadd.f32 %v1934_v33, %v1933_v35  ;;  %v1792_v39 = vpop.f32.mrb[42].mxu0  ;;  %v2568_v40 = vpop.f32.mrb[43].mxu1 }
 0x576   : > { %v2562_v41 = vpop.f32.mrb[43].mxu0 }
 0x57a   : > { %v1927_v42 = vpop.f32.mrb[44].mxu1 }
 0x57b   : > { %v1881_v43 = vpop.f32.mrb[44].mxu0  ;;  %v2579_v44 = vpop.f32.mrb[45].mxu1  ;;  %v1938_v51 = vsel %vm540_vm0, %v1927_v42, 0.0 }
 0x57c   : > { %v1936_v45 = vsel %vm540_vm0, %v1881_v43, 0.0  ;;  %v2573_v46 = vpop.f32.mrb[45].mxu0  ;;  %v1930_v47 = vpop.f32.mrb[46].mxu1 }
 0x57d   : > { %v1937_v48 = vadd.f32 %v1936_v45, %v1935_v38  ;;  %v1884_v49 = vpop.f32.mrb[46].mxu0  ;;  %v2580_v50 = vpop.f32.mrb[47].mxu1 }
 0x57e   : > { %v2574_v53 = vpop.f32.mrb[47].mxu0 }
 0x57f   : > { %v1939_v54 = vadd.f32 %v1938_v51, %v1937_v48 }
 0x581   : > { %v1947_v55 = vadd.f32 %v2326_v52, %v1939_v54 }
 0x583   : > { %v1948_v56 = vadd.f32 %v1947_v55, %v2938_v1 }
 0x585   : > { %v1951_v57 = vsel %vm540_vm0, %v1948_v56, 0.0 }
 0x586   : > { %1952 = vadd.xlane.f32.xlu0 %v1951_v57 }
 0x613   : > { %v1953_v58 = vpop.xlane.xlu0 %1952 }
 0x614   : > { %v1954_v59 = vmul.f32 0.03125, %v1953_v58 }
 0x616   : > { %v1955_v60 = vsub.f32 %v1948_v56, %v1954_v59 }
 0x618   : > { %v1956_v61 = vmul.f32 %v1955_v60, %v1955_v60 }
 0x61a   : > { %v1957_v62 = vsel %vm540_vm0, %v1956_v61, 0.0 }
 0x61b   : > { %1958 = vadd.xlane.f32.xlu1 %v1957_v62 }
 0x6a8   : > { %v1959_v1 = vpop.xlane.xlu1 %1958 }
 0x6a9   : > { %v1960_v2 = vmul.f32 0.03125, %v1959_v1 }
 0x6ab   : > { %v1961_v3 = vadd.f32 1e-05, %v1960_v2 }
 0x6ad   : > { %2708 = vrsqrt.f32 %v1961_v3 }
 0x6b7   : > { %v2709_v4 = vpop.eup %2708 }
 0x6b8   : > { %v1963_v6 = vmul.f32 %v2709_v4, %v1955_v60 }
 0x6ba   : > { %v1970_v8 = vmul.f32 %v2327_v5, %v1963_v6 }
 0x6bc   : > { %v1977_v9 = vadd.f32 %v2328_v7, %v1970_v8 }
 0x6be   : > { %v1978_v10 = vpack.c.bf16 %v1977_v9, %v1977_v9 }
 0x6c0   : > { %2586 = vmatmul.mubr.msk.bf16.vlgmr.msra.gmra.mrb[48].mxu0 %vm540_vm0, %v1978_v10 }
 0x793   : > { %v2039_v17 = vpop.f32.mrb[48].mxu0 }
 0x794   : > { %v2040_v18 = vadd.f32 %v2329_v15, %v2039_v17  ;;  %v2587_v19 = vpop.f32.mrb[49].mxu0 }
 0x795   : > { %v2042_v20 = vpop.f32.mrb[50].mxu0 }
 0x796   : > { %v2046_v21 = vmul.f32 0.70710677, %v2040_v18  ;;  %v2588_v22 = vpop.f32.mrb[51].mxu0  ;;  %v2045_v16 = vmul.f32 0.5, %v2040_v18 }
 0x798   : > { %2710 = verf.f32 %v2046_v21 }
 0x7a2   : > { %v2711_v23 = vpop.eup %2710 }
 0x7a3   : > { %v2048_v24 = vadd.f32 1.0, %v2711_v23 }
 0x7a5   : > { %v2049_v25 = vmul.f32 %v2048_v24, %v2045_v16 }
 0x7a7   : > { %v2050_v26 = vpack.c.bf16 %v2049_v25, %v2049_v25 }
 0x7a9   : > { %2598 = vmatmul.mubr.msk.bf16.vlgmr.msra.gmra.mrb[48].mxu1 %vm2090_vm5, %v2050_v26 }
 0x87c   : > { %v2128_v28 = vpop.f32.mrb[48].mxu1 }
 0x87d   : > { %v2129_v29 = vadd.f32 %v2333_v27, %v2128_v28  ;;  %v2599_v30 = vpop.f32.mrb[49].mxu1 }
 0x87e   : > { %v2131_v31 = vpop.f32.mrb[50].mxu1 }
 0x87f   : > { %v2134_v32 = vadd.f32 %v2129_v29, %v1948_v56  ;;  %v2600_v33 = vpop.f32.mrb[51].mxu1 }
 0x881   : > { %2135 = vst.msk [vmem:[%s520_s27] sm:$0xff] %vm540_vm0, %v2134_v32 }
 0x882   : > { %2725 = shalt.err (!%p2722_p5)
}
 0x883   : > { %s2726_s29 = scalar_lea.hbm %s3237_s1, 128  ;;  %s2730_s24 = scalar_lea.hbm %s3317_s0, 256 }
 0x884   : > { %p2727_p6 = scmp.ne.s32.totalorder %s3237_s1, %s2726_s29  ;;  %p2731_p10 = scmp.lt.u32.totalorder %s3237_s1, %s3317_s0 }
 0x885   : > { %p2732_p11 = scmp.lt.u32.totalorder %s2730_s24, %s2726_s29  ;;  %p2734_p13 = scmp.lt.u32.totalorder %s2726_s29, %s3237_s1 }
 0x886   : > { %p2728_p7 = pnand %p2727_p6, %p2915_p4 }
 0x887   : > { %p2733_p12 = por %p2732_p11, %p2731_p10 }
 0x888   : > { %p2729_p9 = pneg %p2728_p7 }
 0x889   : > { %p2735_p0 = por %p2734_p13, %p2733_p12 }
 0x88b   : > { %p2736_p1 = pnand %p2735_p0, %p2729_p9 }
 0x88d   : > { %2739 = shalt.err (!%p2736_p1)
}
 0x88e   : > { %2601 = dma.vmem_to_hbm [thread:$0]  (%p2915_p4), %s3239_s17, 128, %s3237_s1, %s2137_s21  }
 0x88f PF: > { %s3318_s2 = sld [smem:[#allocation7_spill]]  ;;  %p2607_p2 = scmp.ge.s32.totalorder %s2790_s23, 2 }
 0x891   : > { %p2604_p3 = pnand %p2607_p2, %p2922_p8 }
 0x895   : > { %s2163_s15 = sand.u32 1, %s3318_s2  }
 0x896   : > { %s2164_s22 = scalar_lea.sflag [#allocation5], %s2163_s15 }
 0x897   : > { %2765 = dma.done.wait (!%p2604_p3), %s2164_s22, 128  }
 0x898   : > { %2767 = vsyncadd (!%p2604_p3), %s2164_s22, 4294967168  ;;  %s28_s23 = sadd.s32 1, %s2790_s23   ;;  %s3319_s21 = sld [smem:[#allocation8_spill]] }
 0x899   : > { %p25_p5 = scmp.ge.s32.totalorder %s28_s23, 4   ;;  %s3320_s22 = sld [smem:[#allocation9_spill]] }
 0x89a   : > { %s3321_s18 = smov %s2774_s19  ;;  %s3322_s19 = smov %s2778_s20 }
 0x89b   : > { %s3323_s20 = smov %s2928_s16  ;;  %27 = sbr.rel (!%p25_p5) target bundleno = 9 (0x9), region = 137 }
 0x8a2   :  { %2169 = vsyncpa [#allocation5], 1 }
 0x8a3   :  { %2171 = vsyncpa [#allocation5 + $0x1], 1 }

</bundles_post_ra>
